<compile_context>
chip_gen: v7x
topology: tpu7x:2x2x1
jax: 0.10.0
libtpu: 0.0.40
codegen_flags: <defaults>
</compile_context>

<pallas_src>
import numpy as np

import jax
import jax.numpy as jnp
from jax.experimental import pallas as pl
from jax.experimental.pallas import tpu as pltpu

REP_DIM = 32
L_IN = 128
NEG_SLOPE = 0.01
BN_EPS = 1e-4


# ----------------------------- in-kernel helpers -----------------------------
def _leaky(x):
    return jnp.where(x >= 0, x, NEG_SLOPE * x)


def _bn_flat(h, mask, n_elems, s_ref, st_ref):
    """BatchNorm1d(affine=False, eps=1e-4), training-mode (batch) statistics.

    h       : (bb, N) f32 activation slab (N = C * positions-per-channel)
    mask    : (1, bb) f32 row-validity mask (padded rows excluded from stats)
    n_elems : scalar f32 = (#valid rows) * positions-per-channel
    s_ref   : (N, C) 0/1 column->channel selector
    st_ref  : (C, N) transposed selector (broadcast channel value back to cols)

    Batch axis is reduced first with M=1 matmuls; the selector matmuls are M=1
    as well, so the whole BN costs a handful of MXU pushes per call.
    """
    s = s_ref[...]
    st = st_ref[...]
    colsum = jnp.dot(mask, h, preferred_element_type=jnp.float32)         # (1, N)
    colsq = jnp.dot(mask, h * h, preferred_element_type=jnp.float32)      # (1, N)
    sums = jnp.dot(colsum, s, preferred_element_type=jnp.float32)         # (1, C)
    sqs = jnp.dot(colsq, s, preferred_element_type=jnp.float32)           # (1, C)
    mean = sums / n_elems
    ex2 = sqs / n_elems
    var = jnp.maximum(ex2 - mean * mean, 0.0)                             # biased var
    inv_std = jax.lax.rsqrt(var + BN_EPS)                                 # (1, C)
    # broadcast scale/shift back to columns (tiny K=C, M=1 matmuls), then one
    # fused mul+add slab pass: h * scale + shift.
    scale_b = jnp.dot(inv_std, st, preferred_element_type=jnp.float32)    # (1, N)
    shift_b = jnp.dot(-mean * inv_std, st,
                      preferred_element_type=jnp.float32)                 # (1, N)
    return h * scale_b + shift_b


# --------------------------------- the kernel --------------------------------
def ae_kernel(n_ref, x_ref, w1_ref, s1_ref, s1t_ref, w2_ref, s2_ref, s2t_ref,
              wfc_ref, u1_ref, s3_ref, s3t_ref, u2_ref, s4_ref, s4t_ref,
              u3_ref, out_ref):
    bb = x_ref.shape[0]
    blk = pl.program_id(0)

    # rows of this block that correspond to real (non-padded) samples
    rem = n_ref[0] - blk * bb
    n_valid = jnp.minimum(bb, rem).astype(jnp.float32)
    row_ids = jax.lax.broadcasted_iota(jnp.int32, (1, bb), 1)
    mask = (row_ids < rem).astype(jnp.float32)                            # (1, bb)

    x = x_ref[...].astype(jnp.bfloat16)                                   # (bb, 128)

    # -------- encoder --------
    # conv1 (1->8, L=128); output columns ordered [phase(2), ch(8), pos(64)]
    h = jnp.dot(x, w1_ref[...], preferred_element_type=jnp.float32)       # (bb, 1024)
    h = _leaky(_bn_flat(h, mask, n_valid * 128.0, s1_ref, s1t_ref))
    h = jnp.maximum(h[:, :512], h[:, 512:])                               # MaxPool1d(2) -> (bb, 512)

    # conv2 (8->4, L=64); output columns ordered [phase(2), ch(4), pos(32)]
    h = jnp.dot(h.astype(jnp.bfloat16), w2_ref[...],
                preferred_element_type=jnp.float32)                       # (bb, 256)
    h = _leaky(_bn_flat(h, mask, n_valid * 64.0, s2_ref, s2t_ref))
    h = jnp.maximum(h[:, :128], h[:, 128:])                               # (bb, 128) == torch .view(B, -1)

    # fc1 (zero-padded to 128 output lanes; cols >= 32 are exactly zero)
    z = jnp.dot(h, wfc_ref[...], preferred_element_type=jnp.float32)      # (bb, 128)

    # -------- decoder --------
    # z.view(B, 2, 16) -> leaky -> (upsample x2 + deconv1) folded into u1
    # (u1 rows >= 32 are zero, so the padded z lanes contribute nothing)
    d = jnp.dot(_leaky(z), u1_ref[...], preferred_element_type=jnp.float32)  # (bb, 128)
    d = _leaky(_bn_flat(d, mask, n_valid * 32.0, s3_ref, s3t_ref))
    d = jnp.dot(d.astype(jnp.bfloat16), u2_ref[...],
                preferred_element_type=jnp.float32)                       # (bb, 512)
    d = _leaky(_bn_flat(d, mask, n_valid * 64.0, s4_ref, s4t_ref))
    d = jnp.dot(d.astype(jnp.bfloat16), u3_ref[...],
                preferred_element_type=jnp.float32)                       # (bb, 128)

    out_ref[...] = jax.nn.sigmoid(d)


# --------------------- Toeplitz / selector matrix builders -------------------
def _deconv_as_conv(w_iok):
    # ConvTranspose1d weight (Cin, Cout, K), stride=1, padding=2 -> equivalent
    # Conv1d weight (Cout, Cin, K): w_conv[co, ci, k] = w_t[ci, co, K-1-k]
    w = np.asarray(w_iok, np.float32)
    return np.transpose(w, (1, 0, 2))[:, :, ::-1].copy()


def _enc_conv_matrix(w_conv, length):
    """'same' conv (k=5, pad=2) as a Toeplitz matmul with phase-split columns.

    Input rows : ci * L + li                           (channel-major flatten)
    Output cols: (lo % 2) * (Cout*L/2) + co * (L/2) + lo // 2
    so the following MaxPool1d(2) is max of the two contiguous column halves.
    """
    w = np.asarray(w_conv, np.float32)
    c_out, c_in, k = w.shape
    half = length // 2
    mat = np.zeros((c_in * length, c_out * length), np.float32)
    for co in range(c_out):
        for ci in range(c_in):
            for kk in range(k):
                dk = kk - k // 2
                for lo in range(length):
                    li = lo + dk
                    if 0 <= li < length:
                        col = (lo % 2) * (c_out * half) + co * half + lo // 2
                        mat[ci * length + li, col] += w[co, ci, kk]
    return mat


def _dec_upconv_matrix(w_conv, length_in):
    """Nearest x2 upsample + 'same' conv (k=5, pad=2) folded into one matrix.

    Input rows : ci * L_in + li      Output cols: co * (2*L_in) + lo
    """
    w = np.asarray(w_conv, np.float32)
    c_out, c_in, k = w.shape
    length_out = 2 * length_in
    mat = np.zeros((c_in * length_in, c_out * length_out), np.float32)
    for co in range(c_out):
        for ci in range(c_in):
            for kk in range(k):
                dk = kk - k // 2
                for lo in range(length_out):
                    lu = lo + dk
                    if 0 <= lu < length_out:
                        mat[ci * length_in + lu // 2, co * length_out + lo] += w[co, ci, kk]
    return mat


def _phase_selector(c, half):
    # columns laid out as [phase(2), channel(c), pos(half)] -> (N, c) 0/1 matrix
    n = 2 * c * half
    sel = np.zeros((n, c), np.float32)
    cols = np.arange(n)
    sel[cols, (cols % (c * half)) // half] = 1.0
    return sel


def _chan_selector(c, length):
    # columns laid out as [channel(c), pos(length)] -> (N, c) 0/1 matrix
    n = c * length
    sel = np.zeros((n, c), np.float32)
    cols = np.arange(n)
    sel[cols, cols // length] = 1.0
    return sel


def prepare_kernel_params(raw):
    """PyTorch-layout weights -> (Toeplitz matmul weights, BN selectors).

    Large Toeplitz matrices are stored in bf16 (MXU-native on v5e/v6e/v7x);
    fc1/deconv1 and the BN selectors stay f32.  fc1 / deconv1 are zero-padded
    to (128, 128) so the latent is a full 128-lane slab.
    """
    w1 = _enc_conv_matrix(raw["conv1"], 128)                            # (128, 1024)
    w2 = _enc_conv_matrix(raw["conv2"], 64)                             # (512, 256)

    wfc = np.zeros((128, 128), np.float32)
    wfc[:, :REP_DIM] = np.asarray(raw["fc1"], np.float32).T             # (128, 128)

    u1_small = _dec_upconv_matrix(_deconv_as_conv(raw["deconv1"]), 16)  # (32, 128)
    u1 = np.zeros((128, 128), np.float32)
    u1[:REP_DIM, :] = u1_small                                          # (128, 128)

    u2 = _dec_upconv_matrix(_deconv_as_conv(raw["deconv2"]), 32)        # (128, 512)
    u3 = _dec_upconv_matrix(_deconv_as_conv(raw["deconv3"]), 64)        # (512, 128)

    s1 = _phase_selector(8, 64)                                         # (1024, 8)
    s2 = _phase_selector(4, 32)                                         # (256, 4)
    s3 = _chan_selector(4, 32)                                          # (128, 4)
    s4 = _chan_selector(8, 64)                                          # (512, 8)

    f32 = lambda a: jnp.asarray(a, jnp.float32)
    bf16 = lambda a: jnp.asarray(a, jnp.bfloat16)
    return (bf16(w1), f32(s1), f32(np.ascontiguousarray(s1.T)),
            bf16(w2), f32(s2), f32(np.ascontiguousarray(s2.T)),
            f32(wfc),
            f32(u1), f32(s3), f32(np.ascontiguousarray(s3.T)),
            bf16(u2), f32(s4), f32(np.ascontiguousarray(s4.T)),
            bf16(u3))


# ------------------------------- JAX-side glue --------------------------------
def _round_up(n, m):
    return ((n + m - 1) // m) * m


def ucr_autoencoder_forward(x, kernel_params, *, block_b=512):
    """x: (B, 1, 128) (or anything reshapeable to (B, 128)) -> (B, 1, 128)."""
    xf = jnp.asarray(x, jnp.float32).reshape(-1, L_IN)
    batch = xf.shape[0]

    # Block-size policy:
    #  * small batches: one block (rounded up to a sublane multiple of 8)
    #  * medium batches: split into >= 2 blocks so v7x's two TensorCores both
    #    get work via the "parallel" grid axis (no-op on v5e/v6e, 1 TC)
    #  * large batches: block_b-sized blocks (512 keeps peak live slabs well
    #    under default scoped VMEM on every generation)
    if batch <= 64:
        bb = max(8, _round_up(batch, 8))
    elif batch <= 2 * block_b:
        bb = _round_up((batch + 1) // 2, 8)
    else:
        bb = _round_up(block_b, 8)

    padded = _round_up(batch, bb)
    if padded != batch:
        xf = jnp.pad(xf, ((0, padded - batch), (0, 0)))
    n_blocks = padded // bb

    # NOTE: when n_blocks > 1, BatchNorm statistics are per batch block
    # ("ghost BN"); padded rows are excluded via the in-kernel row mask.
    # TODO(synk): exact full-batch-stat BN across blocks would need a two-pass
    # sum / sum-of-squares scheme over the grid.

    n_total = jnp.asarray([batch], jnp.int32)                 # scalar-prefetched

    act_spec = pl.BlockSpec((bb, L_IN), lambda i, n: (i, 0))
    out_spec = pl.BlockSpec((bb, L_IN), lambda i, n: (i, 0))
    # Constant index_maps keep every weight VMEM-resident (DMA'd once).
    weight_specs = [pl.BlockSpec(w.shape, lambda i, n: (0, 0)) for w in kernel_params]

    matmul_flops = 2 * padded * (128 * 1024 + 512 * 256 + 128 * 128 +
                                 128 * 128 + 128 * 512 + 512 * 128)
    bytes_accessed = int(padded * L_IN * 4 * 2 +
                         sum(int(w.size) * w.dtype.itemsize for w in kernel_params))

    out = pl.pallas_call(
        ae_kernel,
        out_shape=jax.ShapeDtypeStruct((padded, L_IN), jnp.float32),
        grid_spec=pltpu.PrefetchScalarGridSpec(
            num_scalar_prefetch=1,
            grid=(n_blocks,),
            in_specs=[act_spec] + weight_specs,
            out_specs=out_spec),
        compiler_params=pltpu.CompilerParams(
            dimension_semantics=("parallel",)),
        cost_estimate=pl.CostEstimate(
            flops=matmul_flops,
            transcendentals=padded * L_IN,
            bytes_accessed=bytes_accessed),
    )(n_total, xf, *kernel_params)

    return out[:batch].reshape(batch, 1, L_IN)


def init_raw_params(key):
    ks = jax.random.split(key, 6)
    sc = 0.2
    return {
        "conv1":   sc * jax.random.normal(ks[0], (8, 1, 5), jnp.float32),      # Conv1d(1, 8, 5)
        "conv2":   sc * jax.random.normal(ks[1], (4, 8, 5), jnp.float32),      # Conv1d(8, 4, 5)
        "fc1":     sc * jax.random.normal(ks[2], (REP_DIM, 128), jnp.float32), # Linear(128, 32)
        "deconv1": sc * jax.random.normal(ks[3], (2, 4, 5), jnp.float32),      # ConvTranspose1d(2, 4, 5)
        "deconv2": sc * jax.random.normal(ks[4], (4, 8, 5), jnp.float32),      # ConvTranspose1d(4, 8, 5)
        "deconv3": sc * jax.random.normal(ks[5], (8, 1, 5), jnp.float32),      # ConvTranspose1d(8, 1, 5)
    }


# --------------------------- pure-JAX reference check -------------------------
def _conv1d_ref(x, w_oik):
    return jax.lax.conv_general_dilated(
        x, jnp.asarray(w_oik, jnp.float32), window_strides=(1,),
        padding=((2, 2),), dimension_numbers=("NCH", "OIH", "NCH"))


def _bn_ref(x):
    mean = jnp.mean(x, axis=(0, 2), keepdims=True)
    var = jnp.mean(jnp.square(x - mean), axis=(0, 2), keepdims=True)
    return (x - mean) * jax.lax.rsqrt(var + BN_EPS)


def _pool_ref(x):
    b, c, l = x.shape
    return jnp.max(x.reshape(b, c, l // 2, 2), axis=-1)


def _up_ref(x):
    return jnp.repeat(x, 2, axis=-1)


def reference_forward(x, raw):
    x = jnp.asarray(x, jnp.float32).reshape(-1, 1, L_IN)
    b = x.shape[0]
    h = _conv1d_ref(x, raw["conv1"])
    h = _pool_ref(_leaky(_bn_ref(h)))
    h = _conv1d_ref(h, raw["conv2"])
    h = _pool_ref(_leaky(_bn_ref(h)))
    z = h.reshape(b, -1) @ jnp.asarray(raw["fc1"], jnp.float32).T
    d = z.reshape(b, REP_DIM // 16, 16)
    d = _up_ref(_leaky(d))
    d = _conv1d_ref(d, _deconv_as_conv(raw["deconv1"]))
    d = _up_ref(_leaky(_bn_ref(d)))
    d = _conv1d_ref(d, _deconv_as_conv(raw["deconv2"]))
    d = _up_ref(_leaky(_bn_ref(d)))
    d = _conv1d_ref(d, _deconv_as_conv(raw["deconv3"]))
    return jax.nn.sigmoid(d)


if __name__ == "__main__":
    key = jax.random.PRNGKey(0)
    k_x, k_p = jax.random.split(key)
    B = 8
    x = jax.random.uniform(k_x, (B, 1, L_IN), jnp.float32)

    raw = init_raw_params(k_p)
    kparams = prepare_kernel_params(raw)

    out = jax.block_until_ready(ucr_autoencoder_forward(x, kparams))
    ref = jax.block_until_ready(reference_forward(x, raw))

    assert out.shape == (B, 1, L_IN), out.shape
    err_max = float(jnp.max(jnp.abs(out - ref)))
    err_mean = float(jnp.mean(jnp.abs(out - ref)))
    # bf16 matmuls (f32 accumulation) vs the pure-f32 reference
    assert err_max < 5e-2 and err_mean < 1e-2, (err_max, err_mean)
    print("KERNEL_OK")
</pallas_src>

<mosaic_0001>
module attributes {stable_mosaic.version = 11 : i64} {
  func.func @ae_kernel(%arg0: i32, %arg1: memref<1xi32, #tpu.memory_space<smem>>, %arg2: memref<8x128xf32, #tpu.memory_space<vmem>>, %arg3: memref<128x1024xbf16, #tpu.memory_space<vmem>>, %arg4: memref<1024x8xf32, #tpu.memory_space<vmem>>, %arg5: memref<8x1024xf32, #tpu.memory_space<vmem>>, %arg6: memref<512x256xbf16, #tpu.memory_space<vmem>>, %arg7: memref<256x4xf32, #tpu.memory_space<vmem>>, %arg8: memref<4x256xf32, #tpu.memory_space<vmem>>, %arg9: memref<128x128xf32, #tpu.memory_space<vmem>>, %arg10: memref<128x128xf32, #tpu.memory_space<vmem>>, %arg11: memref<128x4xf32, #tpu.memory_space<vmem>>, %arg12: memref<4x128xf32, #tpu.memory_space<vmem>>, %arg13: memref<128x512xbf16, #tpu.memory_space<vmem>>, %arg14: memref<512x8xf32, #tpu.memory_space<vmem>>, %arg15: memref<8x512xf32, #tpu.memory_space<vmem>>, %arg16: memref<512x128xbf16, #tpu.memory_space<vmem>>, %arg17: memref<8x128xf32, #tpu.memory_space<vmem>>) attributes {dimension_semantics = [#tpu.dimension_semantics<parallel>], iteration_bounds = array<i64: 1>, scalar_prefetch = 1 : i64, scratch_operands = 0 : i64, tpu.core_type = #tpu.core_type<tc>, window_params = [{transform_indices = @transform_0, window_bounds = array<i64: 8, 128>}, {pipeline_mode = #tpu.pipeline_mode<synchronous>, transform_indices = @transform_1, window_bounds = array<i64: 128, 1024>}, {pipeline_mode = #tpu.pipeline_mode<synchronous>, transform_indices = @transform_2, window_bounds = array<i64: 1024, 8>}, {pipeline_mode = #tpu.pipeline_mode<synchronous>, transform_indices = @transform_3, window_bounds = array<i64: 8, 1024>}, {pipeline_mode = #tpu.pipeline_mode<synchronous>, transform_indices = @transform_4, window_bounds = array<i64: 512, 256>}, {pipeline_mode = #tpu.pipeline_mode<synchronous>, transform_indices = @transform_5, window_bounds = array<i64: 256, 4>}, {pipeline_mode = #tpu.pipeline_mode<synchronous>, transform_indices = @transform_6, window_bounds = array<i64: 4, 256>}, {pipeline_mode = #tpu.pipeline_mode<synchronous>, transform_indices = @transform_7, window_bounds = array<i64: 128, 128>}, {pipeline_mode = #tpu.pipeline_mode<synchronous>, transform_indices = @transform_8, window_bounds = array<i64: 128, 128>}, {pipeline_mode = #tpu.pipeline_mode<synchronous>, transform_indices = @transform_9, window_bounds = array<i64: 128, 4>}, {pipeline_mode = #tpu.pipeline_mode<synchronous>, transform_indices = @transform_10, window_bounds = array<i64: 4, 128>}, {pipeline_mode = #tpu.pipeline_mode<synchronous>, transform_indices = @transform_11, window_bounds = array<i64: 128, 512>}, {pipeline_mode = #tpu.pipeline_mode<synchronous>, transform_indices = @transform_12, window_bounds = array<i64: 512, 8>}, {pipeline_mode = #tpu.pipeline_mode<synchronous>, transform_indices = @transform_13, window_bounds = array<i64: 8, 512>}, {pipeline_mode = #tpu.pipeline_mode<synchronous>, transform_indices = @transform_14, window_bounds = array<i64: 512, 128>}, {transform_indices = @transform_15, window_bounds = array<i64: 8, 128>}]} {
    %c0 = arith.constant 0 : index
    %0 = memref.load %arg1[%c0] : memref<1xi32, #tpu.memory_space<smem>>
    %c8_i32 = arith.constant 8 : i32
    %1 = arith.muli %arg0, %c8_i32 : i32
    %2 = arith.subi %0, %1 : i32
    %c8_i32_0 = arith.constant 8 : i32
    %3 = arith.minsi %c8_i32_0, %2 : i32
    %4 = arith.sitofp %3 : i32 to f32
    %5 = tpu.iota {dimensions = array<i32: 1>} : vector<1x8xi32>
    %6 = vector.broadcast %2 : i32 to vector<1x8xi32>
    %7 = arith.cmpi slt, %5, %6 : vector<1x8xi32>
    %8 = arith.extui %7 : vector<1x8xi1> to vector<1x8xi32>
    %9 = arith.sitofp %8 : vector<1x8xi32> to vector<1x8xf32>
    %c0_1 = arith.constant 0 : index
    %c0_2 = arith.constant 0 : index
    %10 = vector.load %arg2[%c0_1, %c0_2] : memref<8x128xf32, #tpu.memory_space<vmem>>, vector<8x128xf32>
    %11 = arith.truncf %10 : vector<8x128xf32> to vector<8x128xbf16>
    %c0_3 = arith.constant 0 : index
    %c0_4 = arith.constant 0 : index
    %12 = vector.load %arg3[%c0_3, %c0_4] : memref<128x1024xbf16, #tpu.memory_space<vmem>>, vector<128x1024xbf16>
    %cst = arith.constant dense<0.000000e+00> : vector<8x1024xf32>
    %13 = tpu.matmul %11, %12, %cst {dimension_numbers = #tpu.dot_dimension_numbers<[1], [0], [0], [1], [0, 0, 1, 1], [], []>} : vector<8x128xbf16>, vector<128x1024xbf16>, vector<8x1024xf32> -> vector<8x1024xf32>
    %cst_5 = arith.constant 1.280000e+02 : f32
    %14 = arith.mulf %4, %cst_5 : f32
    %c0_6 = arith.constant 0 : index
    %c0_7 = arith.constant 0 : index
    %15 = vector.load %arg4[%c0_6, %c0_7] : memref<1024x8xf32, #tpu.memory_space<vmem>>, vector<1024x8xf32>
    %c0_8 = arith.constant 0 : index
    %c0_9 = arith.constant 0 : index
    %16 = vector.load %arg5[%c0_8, %c0_9] : memref<8x1024xf32, #tpu.memory_space<vmem>>, vector<8x1024xf32>
    %cst_10 = arith.constant dense<0.000000e+00> : vector<1x1024xf32>
    %17 = tpu.matmul %9, %13, %cst_10 {dimension_numbers = #tpu.dot_dimension_numbers<[1], [0], [0], [1], [0, 0, 1, 1], [], []>} : vector<1x8xf32>, vector<8x1024xf32>, vector<1x1024xf32> -> vector<1x1024xf32>
    %18 = arith.mulf %13, %13 : vector<8x1024xf32>
    %cst_11 = arith.constant dense<0.000000e+00> : vector<1x1024xf32>
    %19 = tpu.matmul %9, %18, %cst_11 {dimension_numbers = #tpu.dot_dimension_numbers<[1], [0], [0], [1], [0, 0, 1, 1], [], []>} : vector<1x8xf32>, vector<8x1024xf32>, vector<1x1024xf32> -> vector<1x1024xf32>
    %cst_12 = arith.constant dense<0.000000e+00> : vector<1x8xf32>
    %20 = tpu.matmul %17, %15, %cst_12 {dimension_numbers = #tpu.dot_dimension_numbers<[1], [0], [0], [1], [0, 0, 1, 1], [], []>} : vector<1x1024xf32>, vector<1024x8xf32>, vector<1x8xf32> -> vector<1x8xf32>
    %cst_13 = arith.constant dense<0.000000e+00> : vector<1x8xf32>
    %21 = tpu.matmul %19, %15, %cst_13 {dimension_numbers = #tpu.dot_dimension_numbers<[1], [0], [0], [1], [0, 0, 1, 1], [], []>} : vector<1x1024xf32>, vector<1024x8xf32>, vector<1x8xf32> -> vector<1x8xf32>
    %22 = vector.broadcast %14 : f32 to vector<1x8xf32>
    %23 = arith.divf %20, %22 : vector<1x8xf32>
    %24 = vector.broadcast %14 : f32 to vector<1x8xf32>
    %25 = arith.divf %21, %24 : vector<1x8xf32>
    %26 = arith.mulf %23, %23 : vector<1x8xf32>
    %27 = arith.subf %25, %26 : vector<1x8xf32>
    %cst_14 = arith.constant 0.000000e+00 : f32
    %28 = vector.broadcast %cst_14 : f32 to vector<1x8xf32>
    %29 = arith.maximumf %27, %28 : vector<1x8xf32>
    %cst_15 = arith.constant 9.99999974E-5 : f32
    %30 = vector.broadcast %cst_15 : f32 to vector<1x8xf32>
    %31 = arith.addf %29, %30 : vector<1x8xf32>
    %32 = math.rsqrt %31 : vector<1x8xf32>
    %cst_16 = arith.constant dense<0.000000e+00> : vector<1x1024xf32>
    %33 = tpu.matmul %32, %16, %cst_16 {dimension_numbers = #tpu.dot_dimension_numbers<[1], [0], [0], [1], [0, 0, 1, 1], [], []>} : vector<1x8xf32>, vector<8x1024xf32>, vector<1x1024xf32> -> vector<1x1024xf32>
    %cst_17 = arith.constant 0.000000e+00 : f32
    %34 = vector.broadcast %cst_17 : f32 to vector<1x8xf32>
    %35 = arith.subf %34, %23 : vector<1x8xf32>
    %36 = arith.mulf %35, %32 : vector<1x8xf32>
    %cst_18 = arith.constant dense<0.000000e+00> : vector<1x1024xf32>
    %37 = tpu.matmul %36, %16, %cst_18 {dimension_numbers = #tpu.dot_dimension_numbers<[1], [0], [0], [1], [0, 0, 1, 1], [], []>} : vector<1x8xf32>, vector<8x1024xf32>, vector<1x1024xf32> -> vector<1x1024xf32>
    %38 = vector.broadcast %33 : vector<1x1024xf32> to vector<8x1024xf32>
    %39 = arith.mulf %13, %38 : vector<8x1024xf32>
    %40 = vector.broadcast %37 : vector<1x1024xf32> to vector<8x1024xf32>
    %41 = arith.addf %39, %40 : vector<8x1024xf32>
    %cst_19 = arith.constant 0.000000e+00 : f32
    %42 = vector.broadcast %cst_19 : f32 to vector<8x1024xf32>
    %43 = arith.cmpf oge, %41, %42 : vector<8x1024xf32>
    %cst_20 = arith.constant 0.00999999977 : f32
    %44 = vector.broadcast %cst_20 : f32 to vector<8x1024xf32>
    %45 = arith.mulf %44, %41 : vector<8x1024xf32>
    %46 = arith.select %43, %41, %45 : vector<8x1024xi1>, vector<8x1024xf32>
    %47 = vector.extract_strided_slice %46 {offsets = [0, 0], sizes = [8, 512], strides = [1, 1]} : vector<8x1024xf32> to vector<8x512xf32>
    %48 = vector.extract_strided_slice %46 {offsets = [0, 512], sizes = [8, 512], strides = [1, 1]} : vector<8x1024xf32> to vector<8x512xf32>
    %49 = arith.maximumf %47, %48 : vector<8x512xf32>
    %50 = arith.truncf %49 : vector<8x512xf32> to vector<8x512xbf16>
    %c0_21 = arith.constant 0 : index
    %c0_22 = arith.constant 0 : index
    %51 = vector.load %arg6[%c0_21, %c0_22] : memref<512x256xbf16, #tpu.memory_space<vmem>>, vector<512x256xbf16>
    %cst_23 = arith.constant dense<0.000000e+00> : vector<8x256xf32>
    %52 = tpu.matmul %50, %51, %cst_23 {dimension_numbers = #tpu.dot_dimension_numbers<[1], [0], [0], [1], [0, 0, 1, 1], [], []>} : vector<8x512xbf16>, vector<512x256xbf16>, vector<8x256xf32> -> vector<8x256xf32>
    %cst_24 = arith.constant 6.400000e+01 : f32
    %53 = arith.mulf %4, %cst_24 : f32
    %c0_25 = arith.constant 0 : index
    %c0_26 = arith.constant 0 : index
    %54 = vector.load %arg7[%c0_25, %c0_26] : memref<256x4xf32, #tpu.memory_space<vmem>>, vector<256x4xf32>
    %c0_27 = arith.constant 0 : index
    %c0_28 = arith.constant 0 : index
    %55 = vector.load %arg8[%c0_27, %c0_28] : memref<4x256xf32, #tpu.memory_space<vmem>>, vector<4x256xf32>
    %cst_29 = arith.constant dense<0.000000e+00> : vector<1x256xf32>
    %56 = tpu.matmul %9, %52, %cst_29 {dimension_numbers = #tpu.dot_dimension_numbers<[1], [0], [0], [1], [0, 0, 1, 1], [], []>} : vector<1x8xf32>, vector<8x256xf32>, vector<1x256xf32> -> vector<1x256xf32>
    %57 = arith.mulf %52, %52 : vector<8x256xf32>
    %cst_30 = arith.constant dense<0.000000e+00> : vector<1x256xf32>
    %58 = tpu.matmul %9, %57, %cst_30 {dimension_numbers = #tpu.dot_dimension_numbers<[1], [0], [0], [1], [0, 0, 1, 1], [], []>} : vector<1x8xf32>, vector<8x256xf32>, vector<1x256xf32> -> vector<1x256xf32>
    %cst_31 = arith.constant dense<0.000000e+00> : vector<1x4xf32>
    %59 = tpu.matmul %56, %54, %cst_31 {dimension_numbers = #tpu.dot_dimension_numbers<[1], [0], [0], [1], [0, 0, 1, 1], [], []>} : vector<1x256xf32>, vector<256x4xf32>, vector<1x4xf32> -> vector<1x4xf32>
    %cst_32 = arith.constant dense<0.000000e+00> : vector<1x4xf32>
    %60 = tpu.matmul %58, %54, %cst_32 {dimension_numbers = #tpu.dot_dimension_numbers<[1], [0], [0], [1], [0, 0, 1, 1], [], []>} : vector<1x256xf32>, vector<256x4xf32>, vector<1x4xf32> -> vector<1x4xf32>
    %61 = vector.broadcast %53 : f32 to vector<1x4xf32>
    %62 = arith.divf %59, %61 : vector<1x4xf32>
    %63 = vector.broadcast %53 : f32 to vector<1x4xf32>
    %64 = arith.divf %60, %63 : vector<1x4xf32>
    %65 = arith.mulf %62, %62 : vector<1x4xf32>
    %66 = arith.subf %64, %65 : vector<1x4xf32>
    %cst_33 = arith.constant 0.000000e+00 : f32
    %67 = vector.broadcast %cst_33 : f32 to vector<1x4xf32>
    %68 = arith.maximumf %66, %67 : vector<1x4xf32>
    %cst_34 = arith.constant 9.99999974E-5 : f32
    %69 = vector.broadcast %cst_34 : f32 to vector<1x4xf32>
    %70 = arith.addf %68, %69 : vector<1x4xf32>
    %71 = math.rsqrt %70 : vector<1x4xf32>
    %cst_35 = arith.constant dense<0.000000e+00> : vector<1x256xf32>
    %72 = tpu.matmul %71, %55, %cst_35 {dimension_numbers = #tpu.dot_dimension_numbers<[1], [0], [0], [1], [0, 0, 1, 1], [], []>} : vector<1x4xf32>, vector<4x256xf32>, vector<1x256xf32> -> vector<1x256xf32>
    %cst_36 = arith.constant 0.000000e+00 : f32
    %73 = vector.broadcast %cst_36 : f32 to vector<1x4xf32>
    %74 = arith.subf %73, %62 : vector<1x4xf32>
    %75 = arith.mulf %74, %71 : vector<1x4xf32>
    %cst_37 = arith.constant dense<0.000000e+00> : vector<1x256xf32>
    %76 = tpu.matmul %75, %55, %cst_37 {dimension_numbers = #tpu.dot_dimension_numbers<[1], [0], [0], [1], [0, 0, 1, 1], [], []>} : vector<1x4xf32>, vector<4x256xf32>, vector<1x256xf32> -> vector<1x256xf32>
    %77 = vector.broadcast %72 : vector<1x256xf32> to vector<8x256xf32>
    %78 = arith.mulf %52, %77 : vector<8x256xf32>
    %79 = vector.broadcast %76 : vector<1x256xf32> to vector<8x256xf32>
    %80 = arith.addf %78, %79 : vector<8x256xf32>
    %cst_38 = arith.constant 0.000000e+00 : f32
    %81 = vector.broadcast %cst_38 : f32 to vector<8x256xf32>
    %82 = arith.cmpf oge, %80, %81 : vector<8x256xf32>
    %cst_39 = arith.constant 0.00999999977 : f32
    %83 = vector.broadcast %cst_39 : f32 to vector<8x256xf32>
    %84 = arith.mulf %83, %80 : vector<8x256xf32>
    %85 = arith.select %82, %80, %84 : vector<8x256xi1>, vector<8x256xf32>
    %86 = vector.extract_strided_slice %85 {offsets = [0, 0], sizes = [8, 128], strides = [1, 1]} : vector<8x256xf32> to vector<8x128xf32>
    %87 = vector.extract_strided_slice %85 {offsets = [0, 128], sizes = [8, 128], strides = [1, 1]} : vector<8x256xf32> to vector<8x128xf32>
    %88 = arith.maximumf %86, %87 : vector<8x128xf32>
    %c0_40 = arith.constant 0 : index
    %c0_41 = arith.constant 0 : index
    %89 = vector.load %arg9[%c0_40, %c0_41] : memref<128x128xf32, #tpu.memory_space<vmem>>, vector<128x128xf32>
    %cst_42 = arith.constant dense<0.000000e+00> : vector<8x128xf32>
    %90 = tpu.matmul %88, %89, %cst_42 {dimension_numbers = #tpu.dot_dimension_numbers<[1], [0], [0], [1], [0, 0, 1, 1], [], []>} : vector<8x128xf32>, vector<128x128xf32>, vector<8x128xf32> -> vector<8x128xf32>
    %cst_43 = arith.constant 0.000000e+00 : f32
    %91 = vector.broadcast %cst_43 : f32 to vector<8x128xf32>
    %92 = arith.cmpf oge, %90, %91 : vector<8x128xf32>
    %cst_44 = arith.constant 0.00999999977 : f32
    %93 = vector.broadcast %cst_44 : f32 to vector<8x128xf32>
    %94 = arith.mulf %93, %90 : vector<8x128xf32>
    %95 = arith.select %92, %90, %94 : vector<8x128xi1>, vector<8x128xf32>
    %c0_45 = arith.constant 0 : index
    %c0_46 = arith.constant 0 : index
    %96 = vector.load %arg10[%c0_45, %c0_46] : memref<128x128xf32, #tpu.memory_space<vmem>>, vector<128x128xf32>
    %cst_47 = arith.constant dense<0.000000e+00> : vector<8x128xf32>
    %97 = tpu.matmul %95, %96, %cst_47 {dimension_numbers = #tpu.dot_dimension_numbers<[1], [0], [0], [1], [0, 0, 1, 1], [], []>} : vector<8x128xf32>, vector<128x128xf32>, vector<8x128xf32> -> vector<8x128xf32>
    %cst_48 = arith.constant 3.200000e+01 : f32
    %98 = arith.mulf %4, %cst_48 : f32
    %c0_49 = arith.constant 0 : index
    %c0_50 = arith.constant 0 : index
    %99 = vector.load %arg11[%c0_49, %c0_50] : memref<128x4xf32, #tpu.memory_space<vmem>>, vector<128x4xf32>
    %c0_51 = arith.constant 0 : index
    %c0_52 = arith.constant 0 : index
    %100 = vector.load %arg12[%c0_51, %c0_52] : memref<4x128xf32, #tpu.memory_space<vmem>>, vector<4x128xf32>
    %cst_53 = arith.constant dense<0.000000e+00> : vector<1x128xf32>
    %101 = tpu.matmul %9, %97, %cst_53 {dimension_numbers = #tpu.dot_dimension_numbers<[1], [0], [0], [1], [0, 0, 1, 1], [], []>} : vector<1x8xf32>, vector<8x128xf32>, vector<1x128xf32> -> vector<1x128xf32>
    %102 = arith.mulf %97, %97 : vector<8x128xf32>
    %cst_54 = arith.constant dense<0.000000e+00> : vector<1x128xf32>
    %103 = tpu.matmul %9, %102, %cst_54 {dimension_numbers = #tpu.dot_dimension_numbers<[1], [0], [0], [1], [0, 0, 1, 1], [], []>} : vector<1x8xf32>, vector<8x128xf32>, vector<1x128xf32> -> vector<1x128xf32>
    %cst_55 = arith.constant dense<0.000000e+00> : vector<1x4xf32>
    %104 = tpu.matmul %101, %99, %cst_55 {dimension_numbers = #tpu.dot_dimension_numbers<[1], [0], [0], [1], [0, 0, 1, 1], [], []>} : vector<1x128xf32>, vector<128x4xf32>, vector<1x4xf32> -> vector<1x4xf32>
    %cst_56 = arith.constant dense<0.000000e+00> : vector<1x4xf32>
    %105 = tpu.matmul %103, %99, %cst_56 {dimension_numbers = #tpu.dot_dimension_numbers<[1], [0], [0], [1], [0, 0, 1, 1], [], []>} : vector<1x128xf32>, vector<128x4xf32>, vector<1x4xf32> -> vector<1x4xf32>
    %106 = vector.broadcast %98 : f32 to vector<1x4xf32>
    %107 = arith.divf %104, %106 : vector<1x4xf32>
    %108 = vector.broadcast %98 : f32 to vector<1x4xf32>
    %109 = arith.divf %105, %108 : vector<1x4xf32>
    %110 = arith.mulf %107, %107 : vector<1x4xf32>
    %111 = arith.subf %109, %110 : vector<1x4xf32>
    %cst_57 = arith.constant 0.000000e+00 : f32
    %112 = vector.broadcast %cst_57 : f32 to vector<1x4xf32>
    %113 = arith.maximumf %111, %112 : vector<1x4xf32>
    %cst_58 = arith.constant 9.99999974E-5 : f32
    %114 = vector.broadcast %cst_58 : f32 to vector<1x4xf32>
    %115 = arith.addf %113, %114 : vector<1x4xf32>
    %116 = math.rsqrt %115 : vector<1x4xf32>
    %cst_59 = arith.constant dense<0.000000e+00> : vector<1x128xf32>
    %117 = tpu.matmul %116, %100, %cst_59 {dimension_numbers = #tpu.dot_dimension_numbers<[1], [0], [0], [1], [0, 0, 1, 1], [], []>} : vector<1x4xf32>, vector<4x128xf32>, vector<1x128xf32> -> vector<1x128xf32>
    %cst_60 = arith.constant 0.000000e+00 : f32
    %118 = vector.broadcast %cst_60 : f32 to vector<1x4xf32>
    %119 = arith.subf %118, %107 : vector<1x4xf32>
    %120 = arith.mulf %119, %116 : vector<1x4xf32>
    %cst_61 = arith.constant dense<0.000000e+00> : vector<1x128xf32>
    %121 = tpu.matmul %120, %100, %cst_61 {dimension_numbers = #tpu.dot_dimension_numbers<[1], [0], [0], [1], [0, 0, 1, 1], [], []>} : vector<1x4xf32>, vector<4x128xf32>, vector<1x128xf32> -> vector<1x128xf32>
    %122 = vector.broadcast %117 : vector<1x128xf32> to vector<8x128xf32>
    %123 = arith.mulf %97, %122 : vector<8x128xf32>
    %124 = vector.broadcast %121 : vector<1x128xf32> to vector<8x128xf32>
    %125 = arith.addf %123, %124 : vector<8x128xf32>
    %cst_62 = arith.constant 0.000000e+00 : f32
    %126 = vector.broadcast %cst_62 : f32 to vector<8x128xf32>
    %127 = arith.cmpf oge, %125, %126 : vector<8x128xf32>
    %cst_63 = arith.constant 0.00999999977 : f32
    %128 = vector.broadcast %cst_63 : f32 to vector<8x128xf32>
    %129 = arith.mulf %128, %125 : vector<8x128xf32>
    %130 = arith.select %127, %125, %129 : vector<8x128xi1>, vector<8x128xf32>
    %131 = arith.truncf %130 : vector<8x128xf32> to vector<8x128xbf16>
    %c0_64 = arith.constant 0 : index
    %c0_65 = arith.constant 0 : index
    %132 = vector.load %arg13[%c0_64, %c0_65] : memref<128x512xbf16, #tpu.memory_space<vmem>>, vector<128x512xbf16>
    %cst_66 = arith.constant dense<0.000000e+00> : vector<8x512xf32>
    %133 = tpu.matmul %131, %132, %cst_66 {dimension_numbers = #tpu.dot_dimension_numbers<[1], [0], [0], [1], [0, 0, 1, 1], [], []>} : vector<8x128xbf16>, vector<128x512xbf16>, vector<8x512xf32> -> vector<8x512xf32>
    %cst_67 = arith.constant 6.400000e+01 : f32
    %134 = arith.mulf %4, %cst_67 : f32
    %c0_68 = arith.constant 0 : index
    %c0_69 = arith.constant 0 : index
    %135 = vector.load %arg14[%c0_68, %c0_69] : memref<512x8xf32, #tpu.memory_space<vmem>>, vector<512x8xf32>
    %c0_70 = arith.constant 0 : index
    %c0_71 = arith.constant 0 : index
    %136 = vector.load %arg15[%c0_70, %c0_71] : memref<8x512xf32, #tpu.memory_space<vmem>>, vector<8x512xf32>
    %cst_72 = arith.constant dense<0.000000e+00> : vector<1x512xf32>
    %137 = tpu.matmul %9, %133, %cst_72 {dimension_numbers = #tpu.dot_dimension_numbers<[1], [0], [0], [1], [0, 0, 1, 1], [], []>} : vector<1x8xf32>, vector<8x512xf32>, vector<1x512xf32> -> vector<1x512xf32>
    %138 = arith.mulf %133, %133 : vector<8x512xf32>
    %cst_73 = arith.constant dense<0.000000e+00> : vector<1x512xf32>
    %139 = tpu.matmul %9, %138, %cst_73 {dimension_numbers = #tpu.dot_dimension_numbers<[1], [0], [0], [1], [0, 0, 1, 1], [], []>} : vector<1x8xf32>, vector<8x512xf32>, vector<1x512xf32> -> vector<1x512xf32>
    %cst_74 = arith.constant dense<0.000000e+00> : vector<1x8xf32>
    %140 = tpu.matmul %137, %135, %cst_74 {dimension_numbers = #tpu.dot_dimension_numbers<[1], [0], [0], [1], [0, 0, 1, 1], [], []>} : vector<1x512xf32>, vector<512x8xf32>, vector<1x8xf32> -> vector<1x8xf32>
    %cst_75 = arith.constant dense<0.000000e+00> : vector<1x8xf32>
    %141 = tpu.matmul %139, %135, %cst_75 {dimension_numbers = #tpu.dot_dimension_numbers<[1], [0], [0], [1], [0, 0, 1, 1], [], []>} : vector<1x512xf32>, vector<512x8xf32>, vector<1x8xf32> -> vector<1x8xf32>
    %142 = vector.broadcast %134 : f32 to vector<1x8xf32>
    %143 = arith.divf %140, %142 : vector<1x8xf32>
    %144 = vector.broadcast %134 : f32 to vector<1x8xf32>
    %145 = arith.divf %141, %144 : vector<1x8xf32>
    %146 = arith.mulf %143, %143 : vector<1x8xf32>
    %147 = arith.subf %145, %146 : vector<1x8xf32>
    %cst_76 = arith.constant 0.000000e+00 : f32
    %148 = vector.broadcast %cst_76 : f32 to vector<1x8xf32>
    %149 = arith.maximumf %147, %148 : vector<1x8xf32>
    %cst_77 = arith.constant 9.99999974E-5 : f32
    %150 = vector.broadcast %cst_77 : f32 to vector<1x8xf32>
    %151 = arith.addf %149, %150 : vector<1x8xf32>
    %152 = math.rsqrt %151 : vector<1x8xf32>
    %cst_78 = arith.constant dense<0.000000e+00> : vector<1x512xf32>
    %153 = tpu.matmul %152, %136, %cst_78 {dimension_numbers = #tpu.dot_dimension_numbers<[1], [0], [0], [1], [0, 0, 1, 1], [], []>} : vector<1x8xf32>, vector<8x512xf32>, vector<1x512xf32> -> vector<1x512xf32>
    %cst_79 = arith.constant 0.000000e+00 : f32
    %154 = vector.broadcast %cst_79 : f32 to vector<1x8xf32>
    %155 = arith.subf %154, %143 : vector<1x8xf32>
    %156 = arith.mulf %155, %152 : vector<1x8xf32>
    %cst_80 = arith.constant dense<0.000000e+00> : vector<1x512xf32>
    %157 = tpu.matmul %156, %136, %cst_80 {dimension_numbers = #tpu.dot_dimension_numbers<[1], [0], [0], [1], [0, 0, 1, 1], [], []>} : vector<1x8xf32>, vector<8x512xf32>, vector<1x512xf32> -> vector<1x512xf32>
    %158 = vector.broadcast %153 : vector<1x512xf32> to vector<8x512xf32>
    %159 = arith.mulf %133, %158 : vector<8x512xf32>
    %160 = vector.broadcast %157 : vector<1x512xf32> to vector<8x512xf32>
    %161 = arith.addf %159, %160 : vector<8x512xf32>
    %cst_81 = arith.constant 0.000000e+00 : f32
    %162 = vector.broadcast %cst_81 : f32 to vector<8x512xf32>
    %163 = arith.cmpf oge, %161, %162 : vector<8x512xf32>
    %cst_82 = arith.constant 0.00999999977 : f32
    %164 = vector.broadcast %cst_82 : f32 to vector<8x512xf32>
    %165 = arith.mulf %164, %161 : vector<8x512xf32>
    %166 = arith.select %163, %161, %165 : vector<8x512xi1>, vector<8x512xf32>
    %167 = arith.truncf %166 : vector<8x512xf32> to vector<8x512xbf16>
    %c0_83 = arith.constant 0 : index
    %c0_84 = arith.constant 0 : index
    %168 = vector.load %arg16[%c0_83, %c0_84] : memref<512x128xbf16, #tpu.memory_space<vmem>>, vector<512x128xbf16>
    %cst_85 = arith.constant dense<0.000000e+00> : vector<8x128xf32>
    %169 = tpu.matmul %167, %168, %cst_85 {dimension_numbers = #tpu.dot_dimension_numbers<[1], [0], [0], [1], [0, 0, 1, 1], [], []>} : vector<8x512xbf16>, vector<512x128xbf16>, vector<8x128xf32> -> vector<8x128xf32>
    %170 = arith.negf %169 : vector<8x128xf32>
    %171 = math.exp %170 : vector<8x128xf32>
    %cst_86 = arith.constant 1.000000e+00 : f32
    %172 = vector.broadcast %cst_86 : f32 to vector<8x128xf32>
    %173 = arith.addf %172, %171 : vector<8x128xf32>
    %174 = arith.divf %172, %173 : vector<8x128xf32>
    %c0_87 = arith.constant 0 : index
    %c0_88 = arith.constant 0 : index
    %175 = vector.load %arg17[%c0_87, %c0_88] : memref<8x128xf32, #tpu.memory_space<vmem>>, vector<8x128xf32>
    tpu.vector_store %arg17[%c0_87, %c0_88], %174 {strides = array<i32>} : memref<8x128xf32, #tpu.memory_space<vmem>>, vector<8x128xf32>,
    return
  }
  func.func @transform_0(%arg0: i32, %arg1: memref<1xi32, #tpu.memory_space<smem>>) -> (i32, i32) {
    %c0_i32 = arith.constant 0 : i32
    %c0_i32_0 = arith.constant 0 : i32
    return %arg0, %c0_i32 : i32, i32
  }
  func.func @transform_1(%arg0: i32, %arg1: memref<1xi32, #tpu.memory_space<smem>>) -> (i32, i32) {
    %c0_i32 = arith.constant 0 : i32
    %c0_i32_0 = arith.constant 0 : i32
    %c0_i32_1 = arith.constant 0 : i32
    return %c0_i32, %c0_i32_0 : i32, i32
  }
  func.func @transform_2(%arg0: i32, %arg1: memref<1xi32, #tpu.memory_space<smem>>) -> (i32, i32) {
    %c0_i32 = arith.constant 0 : i32
    %c0_i32_0 = arith.constant 0 : i32
    %c0_i32_1 = arith.constant 0 : i32
    return %c0_i32, %c0_i32_0 : i32, i32
  }
  func.func @transform_3(%arg0: i32, %arg1: memref<1xi32, #tpu.memory_space<smem>>) -> (i32, i32) {
    %c0_i32 = arith.constant 0 : i32
    %c0_i32_0 = arith.constant 0 : i32
    %c0_i32_1 = arith.constant 0 : i32
    return %c0_i32, %c0_i32_0 : i32, i32
  }
  func.func @transform_4(%arg0: i32, %arg1: memref<1xi32, #tpu.memory_space<smem>>) -> (i32, i32) {
    %c0_i32 = arith.constant 0 : i32
    %c0_i32_0 = arith.constant 0 : i32
    %c0_i32_1 = arith.constant 0 : i32
    return %c0_i32, %c0_i32_0 : i32, i32
  }
  func.func @transform_5(%arg0: i32, %arg1: memref<1xi32, #tpu.memory_space<smem>>) -> (i32, i32) {
    %c0_i32 = arith.constant 0 : i32
    %c0_i32_0 = arith.constant 0 : i32
    %c0_i32_1 = arith.constant 0 : i32
    return %c0_i32, %c0_i32_0 : i32, i32
  }
  func.func @transform_6(%arg0: i32, %arg1: memref<1xi32, #tpu.memory_space<smem>>) -> (i32, i32) {
    %c0_i32 = arith.constant 0 : i32
    %c0_i32_0 = arith.constant 0 : i32
    %c0_i32_1 = arith.constant 0 : i32
    return %c0_i32, %c0_i32_0 : i32, i32
  }
  func.func @transform_7(%arg0: i32, %arg1: memref<1xi32, #tpu.memory_space<smem>>) -> (i32, i32) {
    %c0_i32 = arith.constant 0 : i32
    %c0_i32_0 = arith.constant 0 : i32
    %c0_i32_1 = arith.constant 0 : i32
    return %c0_i32, %c0_i32_0 : i32, i32
  }
  func.func @transform_8(%arg0: i32, %arg1: memref<1xi32, #tpu.memory_space<smem>>) -> (i32, i32) {
    %c0_i32 = arith.constant 0 : i32
    %c0_i32_0 = arith.constant 0 : i32
    %c0_i32_1 = arith.constant 0 : i32
    return %c0_i32, %c0_i32_0 : i32, i32
  }
  func.func @transform_9(%arg0: i32, %arg1: memref<1xi32, #tpu.memory_space<smem>>) -> (i32, i32) {
    %c0_i32 = arith.constant 0 : i32
    %c0_i32_0 = arith.constant 0 : i32
    %c0_i32_1 = arith.constant 0 : i32
    return %c0_i32, %c0_i32_0 : i32, i32
  }
  func.func @transform_10(%arg0: i32, %arg1: memref<1xi32, #tpu.memory_space<smem>>) -> (i32, i32) {
    %c0_i32 = arith.constant 0 : i32
    %c0_i32_0 = arith.constant 0 : i32
    %c0_i32_1 = arith.constant 0 : i32
    return %c0_i32, %c0_i32_0 : i32, i32
  }
  func.func @transform_11(%arg0: i32, %arg1: memref<1xi32, #tpu.memory_space<smem>>) -> (i32, i32) {
    %c0_i32 = arith.constant 0 : i32
    %c0_i32_0 = arith.constant 0 : i32
    %c0_i32_1 = arith.constant 0 : i32
    return %c0_i32, %c0_i32_0 : i32, i32
  }
  func.func @transform_12(%arg0: i32, %arg1: memref<1xi32, #tpu.memory_space<smem>>) -> (i32, i32) {
    %c0_i32 = arith.constant 0 : i32
    %c0_i32_0 = arith.constant 0 : i32
    %c0_i32_1 = arith.constant 0 : i32
    return %c0_i32, %c0_i32_0 : i32, i32
  }
  func.func @transform_13(%arg0: i32, %arg1: memref<1xi32, #tpu.memory_space<smem>>) -> (i32, i32) {
    %c0_i32 = arith.constant 0 : i32
    %c0_i32_0 = arith.constant 0 : i32
    %c0_i32_1 = arith.constant 0 : i32
    return %c0_i32, %c0_i32_0 : i32, i32
  }
  func.func @transform_14(%arg0: i32, %arg1: memref<1xi32, #tpu.memory_space<smem>>) -> (i32, i32) {
    %c0_i32 = arith.constant 0 : i32
    %c0_i32_0 = arith.constant 0 : i32
    %c0_i32_1 = arith.constant 0 : i32
    return %c0_i32, %c0_i32_0 : i32, i32
  }
  func.func @transform_15(%arg0: i32, %arg1: memref<1xi32, #tpu.memory_space<smem>>) -> (i32, i32) {
    %c0_i32 = arith.constant 0 : i32
    %c0_i32_0 = arith.constant 0 : i32
    return %arg0, %c0_i32 : i32, i32
  }
}

</mosaic_0001>

<bundles_post_ra>
// kernel: tpu_custom_call.1
= control target key start
LH: loop header
LB: loop body
LE: loop exit
PB: predicated region body
PF: predicated region fallthrough
CT: control target
= control target key end

     0   :  { %s9838_s0 = inlined_call_operand.<no memory space> [shape: s32[1], index: 0, kind: input, shape index: {}]   ;;  %s9839_s1 = inlined_call_operand.vmem [shape: f32[8,128], index: 1, kind: input, shape index: {}]   ;;  %s9840_s2 = inlined_call_operand.vmem [shape: bf16[128,1024], index: 2, kind: input, shape index: {}]   ;;  %s9841_s3 = inlined_call_operand.vmem [shape: f32[1024,8], index: 3, kind: input, shape index: {}]   ;;  %s9842_s4 = inlined_call_operand.vmem [shape: f32[8,1024], index: 4, kind: input, shape index: {}]   ;;  %s9843_s5 = inlined_call_operand.vmem [shape: bf16[512,256], index: 5, kind: input, shape index: {}]   ;;  %s9844_s6 = inlined_call_operand.vmem [shape: f32[256,4], index: 6, kind: input, shape index: {}]   ;;  %s9845_s7 = inlined_call_operand.vmem [shape: f32[4,256], index: 7, kind: input, shape index: {}]   ;;  %s9846_s8 = inlined_call_operand.vmem [shape: f32[128,128], index: 8, kind: input, shape index: {}]   ;;  %s9847_s9 = inlined_call_operand.vmem [shape: f32[128,128], index: 9, kind: input, shape index: {}]   ;;  %s9848_s10 = inlined_call_operand.vmem [shape: f32[128,4], index: 10, kind: input, shape index: {}]   ;;  %s9849_s11 = inlined_call_operand.vmem [shape: f32[4,128], index: 11, kind: input, shape index: {}]   ;;  %s9850_s12 = inlined_call_operand.vmem [shape: bf16[128,512], index: 12, kind: input, shape index: {}]   ;;  %s9851_s13 = inlined_call_operand.vmem [shape: f32[512,8], index: 13, kind: input, shape index: {}]   ;;  %s9852_s14 = inlined_call_operand.vmem [shape: f32[8,512], index: 14, kind: input, shape index: {}]   ;;  %s9853_s15 = inlined_call_operand.vmem [shape: bf16[512,128], index: 15, kind: input, shape index: {}]   ;;  %s9854_s16 = inlined_call_operand.hbm [shape: f32[8,128], index: 16, kind: output, shape index: {}]  }
   0x1   :  { %9879 = sst [smem:[#allocation24_spill]] %s9838_s0 }
   0x2   :  { %v68_v0 = vld [vmem:[%s9840_s2] sm:$0xff]  ;;  %v69_v2 = vld [vmem:[%s9840_s2 + $0x8] sm:$0xff]  ;;  %v9856_v8 = vmov 0   ;;  %v70_v60 = vld [vmem:[%s9840_s2 + $0x10] sm:$0xff] }
   0x3   :  { %v72_v1 = vld [vmem:[%s9840_s2 + $0x20] sm:$0xff]  ;;  %v73_v4 = vld [vmem:[%s9840_s2 + $0x28] sm:$0xff]  ;;  %484 = vmatprep.mubr.bf16.mxu0 %v9856_v8  ;;  %525 = vmatprep.mubr.bf16.mxu1 %v9856_v8  ;;  %v74_v61 = vld [vmem:[%s9840_s2 + $0x30] sm:$0xff] }
   0x4   :  { %v5840_v3 = vcombine.high %v68_v0, %v72_v1  ;;  %v5839_v5 = vcombine.low %v68_v0, %v72_v1  ;;  %v76_v6 = vld [vmem:[%s9840_s2 + $0x40] sm:$0xff]  ;;  %v5842_v9 = vcombine.high %v69_v2, %v73_v4  ;;  %v5841_v10 = vcombine.low %v69_v2, %v73_v4  ;;  %v77_v12 = vld [vmem:[%s9840_s2 + $0x48] sm:$0xff]  ;;  %v71_v0 = vld [vmem:[%s9840_s2 + $0x18] sm:$0xff] }
   0x5   :  { %v80_v7 = vld [vmem:[%s9840_s2 + $0x60] sm:$0xff]  ;;  %v81_v13 = vld [vmem:[%s9840_s2 + $0x68] sm:$0xff]  ;;  %v75_v1 = vld [vmem:[%s9840_s2 + $0x38] sm:$0xff] }
   0x6   :  { %v5848_v11 = vcombine.high %v76_v6, %v80_v7  ;;  %v84_v14 = vld [vmem:[%s9840_s2 + $0x80] sm:$0xff]  ;;  %452 = vmatprep.subr.bf16.mxu0 %v5840_v3  ;;  %v5850_v15 = vcombine.high %v77_v12, %v81_v13  ;;  %v85_v17 = vld [vmem:[%s9840_s2 + $0x88] sm:$0xff]  ;;  %493 = vmatprep.subr.bf16.mxu1 %v5842_v9  ;;  %v5847_v19 = vcombine.low %v76_v6, %v80_v7  ;;  %v82_v6 = vld [vmem:[%s9840_s2 + $0x70] sm:$0xff] }
   0x7   :  { %v88_v16 = vld [vmem:[%s9840_s2 + $0xa0] sm:$0xff]  ;;  %v89_v18 = vld [vmem:[%s9840_s2 + $0xa8] sm:$0xff]  ;;  %453 = vmatpush1.bf16.msra.mxu0 %v5839_v5  ;;  %494 = vmatpush1.bf16.msra.mxu1 %v5841_v10  ;;  %v5849_v20 = vcombine.low %v77_v12, %v81_v13  ;;  %v78_v5 = vld [vmem:[%s9840_s2 + $0x50] sm:$0xff]  ;;  %v5844_v9 = vcombine.high %v70_v60, %v74_v61  ;;  %v5846_v12 = vcombine.high %v71_v0, %v75_v1 }
   0x8   :  { %454 = vmatprep.subr.bf16.mxu0 %v5848_v11  ;;  %v5856_v21 = vcombine.high %v84_v14, %v88_v16  ;;  %495 = vmatprep.subr.bf16.mxu1 %v5850_v15  ;;  %v5858_v22 = vcombine.high %v85_v17, %v89_v18  ;;  %v92_v23 = vld [vmem:[%s9840_s2 + $0xc0] sm:$0xff]  ;;  %v93_v25 = vld [vmem:[%s9840_s2 + $0xc8] sm:$0xff]  ;;  %v5855_v27 = vcombine.low %v84_v14, %v88_v16  ;;  %v79_v10 = vld [vmem:[%s9840_s2 + $0x58] sm:$0xff] }
   0x9   :  { %v96_v24 = vld [vmem:[%s9840_s2 + $0xe0] sm:$0xff]  ;;  %v97_v26 = vld [vmem:[%s9840_s2 + $0xe8] sm:$0xff]  ;;  %v5857_v28 = vcombine.low %v85_v17, %v89_v18  ;;  %v83_v11 = vld [vmem:[%s9840_s2 + $0x78] sm:$0xff]  ;;  %v5843_v14 = vcombine.low %v70_v60, %v74_v61  ;;  %v5845_v17 = vcombine.low %v71_v0, %v75_v1  ;;  %v5852_v18 = vcombine.high %v78_v5, %v82_v6 }
   0xa   :  { %v5864_v29 = vcombine.high %v92_v23, %v96_v24  ;;  %v5866_v30 = vcombine.high %v93_v25, %v97_v26  ;;  %v100_v31 = vld [vmem:[%s9840_s2 + $0x100] sm:$0xff]  ;;  %v101_v33 = vld [vmem:[%s9840_s2 + $0x108] sm:$0xff]  ;;  %v5863_v35 = vcombine.low %v92_v23, %v96_v24  ;;  %v5865_v36 = vcombine.low %v93_v25, %v97_v26  ;;  %v86_v15 = vld [vmem:[%s9840_s2 + $0x90] sm:$0xff] }
   0xb   :  { %455 = vmatpush1.bf16.msra.mxu0 %v5847_v19  ;;  %496 = vmatpush1.bf16.msra.mxu1 %v5849_v20  ;;  %v104_v32 = vld [vmem:[%s9840_s2 + $0x120] sm:$0xff]  ;;  %v105_v34 = vld [vmem:[%s9840_s2 + $0x128] sm:$0xff]  ;;  %v90_v16 = vld [vmem:[%s9840_s2 + $0xb0] sm:$0xff]  ;;  %v5853_v25 = vcombine.low %v79_v10, %v83_v11 }
   0xc   :  { %456 = vmatprep.subr.bf16.mxu0 %v5856_v21  ;;  %497 = vmatprep.subr.bf16.mxu1 %v5858_v22  ;;  %v5872_v37 = vcombine.high %v100_v31, %v104_v32  ;;  %v5874_v38 = vcombine.high %v101_v33, %v105_v34  ;;  %v108_v39 = vld [vmem:[%s9840_s2 + $0x140] sm:$0xff]  ;;  %v109_v41 = vld [vmem:[%s9840_s2 + $0x148] sm:$0xff]  ;;  %v5871_v43 = vcombine.low %v100_v31, %v104_v32  ;;  %v87_v19 = vld [vmem:[%s9840_s2 + $0x98] sm:$0xff] }
   0xd   :  { %v112_v40 = vld [vmem:[%s9840_s2 + $0x160] sm:$0xff]  ;;  %v113_v42 = vld [vmem:[%s9840_s2 + $0x168] sm:$0xff]  ;;  %v5873_v44 = vcombine.low %v101_v33, %v105_v34  ;;  %v91_v20 = vld [vmem:[%s9840_s2 + $0xb8] sm:$0xff]  ;;  %v5854_v21 = vcombine.high %v79_v10, %v83_v11  ;;  %v5851_v22 = vcombine.low %v78_v5, %v82_v6  ;;  %v5860_v26 = vcombine.high %v86_v15, %v90_v16 }
   0xe   :  { %v5880_v45 = vcombine.high %v108_v39, %v112_v40  ;;  %v5882_v46 = vcombine.high %v109_v41, %v113_v42  ;;  %v116_v47 = vld [vmem:[%s9840_s2 + $0x180] sm:$0xff]  ;;  %v117_v49 = vld [vmem:[%s9840_s2 + $0x188] sm:$0xff]  ;;  %v5879_v51 = vcombine.low %v108_v39, %v112_v40  ;;  %v5881_v54 = vcombine.low %v109_v41, %v113_v42  ;;  %v94_v23 = vld [vmem:[%s9840_s2 + $0xd0] sm:$0xff] }
   0xf   :  { %457 = vmatpush1.bf16.msra.mxu0 %v5855_v27  ;;  %498 = vmatpush1.bf16.msra.mxu1 %v5857_v28  ;;  %v120_v48 = vld [vmem:[%s9840_s2 + $0x1a0] sm:$0xff]  ;;  %v121_v50 = vld [vmem:[%s9840_s2 + $0x1a8] sm:$0xff]  ;;  %v98_v24 = vld [vmem:[%s9840_s2 + $0xf0] sm:$0xff]  ;;  %v5861_v33 = vcombine.low %v87_v19, %v91_v20 }
  0x10   :  { %458 = vmatprep.subr.bf16.mxu0 %v5864_v29  ;;  %499 = vmatprep.subr.bf16.mxu1 %v5866_v30  ;;  %v124_v52 = vld [vmem:[%s9840_s2 + $0x1c0] sm:$0xff]  ;;  %v5888_v55 = vcombine.high %v116_v47, %v120_v48  ;;  %v125_v56 = vld [vmem:[%s9840_s2 + $0x1c8] sm:$0xff]  ;;  %v5890_v58 = vcombine.high %v117_v49, %v121_v50  ;;  %v5887_v59 = vcombine.low %v116_v47, %v120_v48  ;;  %v95_v27 = vld [vmem:[%s9840_s2 + $0xd8] sm:$0xff] }
  0x11   :  { %v128_v53 = vld [vmem:[%s9840_s2 + $0x1e0] sm:$0xff]  ;;  %v129_v57 = vld [vmem:[%s9840_s2 + $0x1e8] sm:$0xff]  ;;  %v5889_v62 = vcombine.low %v117_v49, %v121_v50  ;;  %v99_v28 = vld [vmem:[%s9840_s2 + $0xf8] sm:$0xff]  ;;  %v5862_v29 = vcombine.high %v87_v19, %v91_v20  ;;  %v5859_v30 = vcombine.low %v86_v15, %v90_v16  ;;  %v5868_v34 = vcombine.high %v94_v23, %v98_v24 }
  0x12   :  { %v5896_v63 = vcombine.high %v124_v52, %v128_v53  ;;  %v5898_v2 = vcombine.high %v125_v56, %v129_v57  ;;  %v66_v3 = vld [vmem:[%s9839_s1] sm:$0xff]  ;;  %v5895_v4 = vcombine.low %v124_v52, %v128_v53  ;;  %v5897_v7 = vcombine.low %v125_v56, %v129_v57  ;;  %v102_v31 = vld [vmem:[%s9840_s2 + $0x110] sm:$0xff]  ;;  %v123_v52 = vld [vmem:[%s9840_s2 + $0x1b8] sm:$0xff] }
  0x13   :  { %459 = vmatpush1.bf16.msra.mxu0 %v5863_v35  ;;  %500 = vmatpush1.bf16.msra.mxu1 %v5865_v36  ;;  %v7827_v13 = vpack.c.bf16 %v66_v3, %v66_v3  ;;  %v106_v32 = vld [vmem:[%s9840_s2 + $0x130] sm:$0xff]  ;;  %v103_v35 = vld [vmem:[%s9840_s2 + $0x118] sm:$0xff]  ;;  %v5869_v41 = vcombine.low %v95_v27, %v99_v28 }
  0x14   :  { %460 = vmatprep.subr.bf16.mxu0 %v5872_v37  ;;  %501 = vmatprep.subr.bf16.mxu1 %v5874_v38  ;;  %v107_v36 = vld [vmem:[%s9840_s2 + $0x138] sm:$0xff]  ;;  %v5870_v37 = vcombine.high %v95_v27, %v99_v28  ;;  %v5867_v38 = vcombine.low %v94_v23, %v98_v24  ;;  %v110_v39 = vld [vmem:[%s9840_s2 + $0x150] sm:$0xff]  ;;  %v5876_v42 = vcombine.high %v102_v31, %v106_v32 }
  0x15   :  { %v114_v40 = vld [vmem:[%s9840_s2 + $0x170] sm:$0xff]  ;;  %v5877_v49 = vcombine.low %v103_v35, %v107_v36  ;;  %v131_v60 = vld [vmem:[%s9840_s2 + $0x1f8] sm:$0xff] }
  0x16   :  { %v118_v47 = vld [vmem:[%s9840_s2 + $0x190] sm:$0xff]  ;;  %v5884_v50 = vcombine.high %v110_v39, %v114_v40 }
  0x17   :  { %461 = vmatpush1.bf16.msra.mxu0 %v5871_v43  ;;  %502 = vmatpush1.bf16.msra.mxu1 %v5873_v44  ;;  %v111_v43 = vld [vmem:[%s9840_s2 + $0x158] sm:$0xff]  ;;  %v122_v48 = vld [vmem:[%s9840_s2 + $0x1b0] sm:$0xff] }
  0x18   :  { %462 = vmatprep.subr.bf16.mxu0 %v5880_v45  ;;  %503 = vmatprep.subr.bf16.mxu1 %v5882_v46  ;;  %v115_v44 = vld [vmem:[%s9840_s2 + $0x178] sm:$0xff]  ;;  %v5878_v45 = vcombine.high %v103_v35, %v107_v36  ;;  %v5875_v46 = vcombine.low %v102_v31, %v106_v32  ;;  %v130_v56 = vld [vmem:[%s9840_s2 + $0x1f0] sm:$0xff] }
  0x19   :  { %v5886_v53 = vcombine.high %v111_v43, %v115_v44  ;;  %v5885_v57 = vcombine.low %v111_v43, %v115_v44 }
  0x1b   :  { %463 = vmatpush1.bf16.msra.mxu0 %v5879_v51  ;;  %504 = vmatpush1.bf16.msra.mxu1 %v5881_v54  ;;  %v119_v51 = vld [vmem:[%s9840_s2 + $0x198] sm:$0xff]  ;;  %v5883_v54 = vcombine.low %v110_v39, %v114_v40 }
  0x1c   :  { %464 = vmatprep.subr.bf16.mxu0 %v5888_v55  ;;  %505 = vmatprep.subr.bf16.mxu1 %v5890_v58  ;;  %v126_v55 = vld [vmem:[%s9840_s2 + $0x1d0] sm:$0xff]  ;;  %v5892_v58 = vcombine.high %v118_v47, %v122_v48  ;;  %v5894_v61 = vcombine.high %v119_v51, %v123_v52 }
  0x1d   :  { %v5900_v0 = vcombine.high %v126_v55, %v130_v56 }
  0x1f   :  { %465 = vmatpush1.bf16.msra.mxu0 %v5887_v59  ;;  %506 = vmatpush1.bf16.msra.mxu1 %v5889_v62  ;;  %v127_v59 = vld [vmem:[%s9840_s2 + $0x1d8] sm:$0xff]  ;;  %v5891_v62 = vcombine.low %v118_v47, %v122_v48 }
  0x20   :  { %466 = vmatprep.subr.bf16.mxu0 %v5896_v63  ;;  %507 = vmatprep.subr.bf16.mxu1 %v5898_v2  ;;  %v5893_v63 = vcombine.low %v119_v51, %v123_v52  ;;  %v5902_v1 = vcombine.high %v127_v59, %v131_v60  ;;  %v5899_v2 = vcombine.low %v126_v55, %v130_v56 }
  0x21   :  { %v5901_v3 = vcombine.low %v127_v59, %v131_v60 }
  0x23   :  { %467 = vmatpush1.bf16.msra.mxu0 %v5895_v4  ;;  %508 = vmatpush1.bf16.msra.mxu1 %v5897_v7 }
  0x24   :  { %534 = vmatprep.subr.bf16.mxu0 %v5844_v9  ;;  %575 = vmatprep.subr.bf16.mxu1 %v5846_v12 }
  0x26   :  { %485 = vmatmul.mubr.bf16.vlgmr.msra.gmra.mrb[0].mxu0 %v7827_v13  ;;  %526 = vmatmul.mubr.bf16.vlgmr.msra.gmra.mrb[0].mxu1 %v7827_v13 }
  0x27   :  { %535 = vmatpush1.bf16.msra.mxu0 %v5843_v14  ;;  %576 = vmatpush1.bf16.msra.mxu1 %v5845_v17 }
  0x28   :  { %536 = vmatprep.subr.bf16.mxu0 %v5852_v18  ;;  %577 = vmatprep.subr.bf16.mxu1 %v5854_v21 }
  0x29   :  { %566 = vmatprep.mubr.bf16.mxu0 %v9856_v8  ;;  %607 = vmatprep.mubr.bf16.mxu1 %v9856_v8 }
  0x2b   :  { %537 = vmatpush1.bf16.msra.mxu0 %v5851_v22  ;;  %578 = vmatpush1.bf16.msra.mxu1 %v5853_v25 }
  0x2c   :  { %538 = vmatprep.subr.bf16.mxu0 %v5860_v26  ;;  %579 = vmatprep.subr.bf16.mxu1 %v5862_v29 }
  0x2f   :  { %539 = vmatpush1.bf16.msra.mxu0 %v5859_v30  ;;  %580 = vmatpush1.bf16.msra.mxu1 %v5861_v33 }
  0x30   :  { %540 = vmatprep.subr.bf16.mxu0 %v5868_v34  ;;  %581 = vmatprep.subr.bf16.mxu1 %v5870_v37 }
  0x33   :  { %541 = vmatpush1.bf16.msra.mxu0 %v5867_v38  ;;  %582 = vmatpush1.bf16.msra.mxu1 %v5869_v41 }
  0x34   :  { %542 = vmatprep.subr.bf16.mxu0 %v5876_v42  ;;  %583 = vmatprep.subr.bf16.mxu1 %v5878_v45 }
  0x37   :  { %543 = vmatpush1.bf16.msra.mxu0 %v5875_v46  ;;  %584 = vmatpush1.bf16.msra.mxu1 %v5877_v49 }
  0x38   :  { %544 = vmatprep.subr.bf16.mxu0 %v5884_v50  ;;  %585 = vmatprep.subr.bf16.mxu1 %v5886_v53 }
  0x3b   :  { %545 = vmatpush1.bf16.msra.mxu0 %v5883_v54  ;;  %586 = vmatpush1.bf16.msra.mxu1 %v5885_v57 }
  0x3c   :  { %546 = vmatprep.subr.bf16.mxu0 %v5892_v58  ;;  %587 = vmatprep.subr.bf16.mxu1 %v5894_v61 }
  0x3f   :  { %547 = vmatpush1.bf16.msra.mxu0 %v5891_v62  ;;  %588 = vmatpush1.bf16.msra.mxu1 %v5893_v63 }
  0x40   :  { %548 = vmatprep.subr.bf16.mxu0 %v5900_v0  ;;  %589 = vmatprep.subr.bf16.mxu1 %v5902_v1 }
  0x43   :  { %549 = vmatpush1.bf16.msra.mxu0 %v5899_v2  ;;  %590 = vmatpush1.bf16.msra.mxu1 %v5901_v3 }
  0x46   :  { %567 = vmatmul.mubr.bf16.vlgmr.msra.gmra.mrb[4].mxu0 %v7827_v13  ;;  %608 = vmatmul.mubr.bf16.vlgmr.msra.gmra.mrb[4].mxu1 %v7827_v13 }
  0x47   :  { %22 = vsyncpa [#allocation5], 0  ;;  %v9859_v4 = vmov 0.0   ;;  %v9858_v5 = vlaneseq  ;;  %s9880_s28 = sld [smem:[#allocation24_spill]]  ;;  %vm753_vm1 = vcmask 64512   ;;  %v633_v32 = vld [vmem:[%s9841_s3 + $0x80] sm:$0xff] }
  0x48   :  { %821 = vmatprep.mubr.f32.mxu0 %v9859_v4  ;;  %892 = vmatprep.mubr.f32.mxu1 %v9859_v4  ;;  %v634_v33 = vld [vmem:[%s9841_s3 + $0x88] sm:$0xff]  ;;  %v665_v34 = vld [vmem:[%s9841_s3 + $0x180] sm:$0xff]  ;;  %v635_v42 = vld [vmem:[%s9841_s3 + $0x90] sm:$0xff]  ;;  %vm3389_vm10 = vcmask 1043456   ;;  %vm3385_vm11 = vcmask 31744   ;;  %vm7615_vm12 = vmmov 0  }
  0x49   :  { %v61_v6 = vand.u32 127, %v9858_v5  ;;  %v666_v35 = vld [vmem:[%s9841_s3 + $0x188] sm:$0xff]  ;;  %v617_v36 = vld [vmem:[%s9841_s3] sm:$0xff]  ;;  %v7986_v40 = vpack.c.bf16 %v634_v33, %v633_v32  ;;  %v636_v43 = vld [vmem:[%s9841_s3 + $0x98] sm:$0xff] }
  0x4a   :  { %v618_v37 = vld [vmem:[%s9841_s3 + $0x8] sm:$0xff]  ;;  %v649_v38 = vld [vmem:[%s9841_s3 + $0x100] sm:$0xff]  ;;  %v8002_v45 = vpack.c.bf16 %v666_v35, %v665_v34  ;;  %v667_v46 = vld [vmem:[%s9841_s3 + $0x190] sm:$0xff]  ;;  %v8017_v50 = vpack.c.bf16 %v636_v43, %v635_v42 }
  0x4b   :  { %v650_v41 = vld [vmem:[%s9841_s3 + $0x108] sm:$0xff]  ;;  %v668_v47 = vld [vmem:[%s9841_s3 + $0x198] sm:$0xff]  ;;  %v8012_v48 = vpack.c.bf16 %v618_v37, %v617_v36  ;;  %v619_v51 = vld [vmem:[%s9841_s3 + $0x10] sm:$0xff] }
  0x4c   :  { %v8015_v49 = vpack.c.bf16 %v650_v41, %v649_v38  ;;  %v620_v52 = vld [vmem:[%s9841_s3 + $0x18] sm:$0xff]  ;;  %v651_v53 = vld [vmem:[%s9841_s3 + $0x110] sm:$0xff]  ;;  %v8030_v54 = vpack.c.bf16 %v668_v47, %v667_v46  ;;  %v637_v56 = vld [vmem:[%s9841_s3 + $0xa0] sm:$0xff] }
  0x4d   :  { %v62_v7 = vstv %s9880_s28  ;;  %v652_v55 = vld [vmem:[%s9841_s3 + $0x118] sm:$0xff]  ;;  %v638_v57 = vld [vmem:[%s9841_s3 + $0xa8] sm:$0xff]  ;;  %v669_v58 = vld [vmem:[%s9841_s3 + $0x1a0] sm:$0xff]  ;;  %v8053_v60 = vpack.c.bf16 %v620_v52, %v619_v51  ;;  %p57_p0 = scmp.lt.s32.totalorder %s9880_s28, 8 }
  0x4e   :  { %vm63_vm0 = vcmp.lt.s32.totalorder %v61_v6, %v62_v7  ;;  %v670_v59 = vld [vmem:[%s9841_s3 + $0x1a8] sm:$0xff]  ;;  %v8057_v61 = vpack.c.bf16 %v652_v55, %v651_v53  ;;  %v8059_v62 = vpack.c.bf16 %v638_v57, %v637_v56  ;;  %v621_v63 = vld [vmem:[%s9841_s3 + $0x20] sm:$0xff]  ;;  %v639_v6 = vld [vmem:[%s9841_s3 + $0xb0] sm:$0xff] }
  0x4f   :  { %v7920_v12 = vsel %vm63_vm0, 1.0, %v9859_v4  ;;  %v622_v0 = vld [vmem:[%s9841_s3 + $0x28] sm:$0xff]  ;;  %v653_v1 = vld [vmem:[%s9841_s3 + $0x120] sm:$0xff]  ;;  %v8071_v2 = vpack.c.bf16 %v670_v59, %v669_v58  ;;  %v640_v7 = vld [vmem:[%s9841_s3 + $0xb8] sm:$0xff]  ;;  %s9919_s28 = smov (!%p57_p0, %s9880_s28), 8 }
  0x50   :  { %9884 = vst [vmem:[#allocation10_spill] sm:$0xff] %v7920_v12  ;;  %v654_v3 = vld [vmem:[%s9841_s3 + $0x128] sm:$0xff]  ;;  %v625_v35 = vld [vmem:[%s9841_s3 + $0x40] sm:$0xff]  ;;  %v643_v41 = vld [vmem:[%s9841_s3 + $0xd0] sm:$0xff]  ;;  %s8662_s27 = scvt.s32.f32 %s9919_s28 }
  0x51   :  { %v626_v36 = vld [vmem:[%s9841_s3 + $0x48] sm:$0xff]  ;;  %v657_v37 = vld [vmem:[%s9841_s3 + $0x140] sm:$0xff]  ;;  %v644_v42 = vld [vmem:[%s9841_s3 + $0xd8] sm:$0xff] }
  0x52   :  { %v675_v43 = vld [vmem:[%s9841_s3 + $0x1d0] sm:$0xff]  ;;  %v8161_v46 = vpack.c.bf16 %v626_v36, %v625_v35  ;;  %v8167_v51 = vpack.c.bf16 %v644_v42, %v643_v41  ;;  %v628_v53 = vld [vmem:[%s9841_s3 + $0x58] sm:$0xff]  ;;  %v645_v58 = vld [vmem:[%s9841_s3 + $0xe0] sm:$0xff]  ;;  %s3056_s25 = smul.f32 64.0, %s8662_s27 }
  0x53   :  { %v627_v52 = vld [vmem:[%s9841_s3 + $0x50] sm:$0xff]  ;;  %v660_v57 = vld [vmem:[%s9841_s3 + $0x158] sm:$0xff]  ;;  %v646_v59 = vld [vmem:[%s9841_s3 + $0xe8] sm:$0xff] }
  0x54   :  { %v659_v55 = vld [vmem:[%s9841_s3 + $0x150] sm:$0xff]  ;;  %v664_v42 = vld [vmem:[%s9841_s3 + $0x178] sm:$0xff] }
  0x55   :  { %v631_v36 = vld [vmem:[%s9841_s3 + $0x70] sm:$0xff] }
  0x56   :  { %v663_v41 = vld [vmem:[%s9841_s3 + $0x170] sm:$0xff] }
  0x57   :  { %v687_v5 = vld [vmem:[%s9841_s3 + $0x230] sm:$0xff] }
  0xf9   :  { %v7913_v9 = vpop.f32.mrb[0].mxu0  ;;  %v7915_v10 = vpop.f32.mrb[0].mxu1 }
  0xfa   :  { %9881 = vst [vmem:[#allocation7_spill] sm:$0xff] %v7913_v9  ;;  %9882 = vst [vmem:[#allocation8_spill] sm:$0xff] %v7915_v10  ;;  %v7917_v11 = vpop.f32.mrb[1].mxu0  ;;  %v7922_v13 = vpop.f32.mrb[1].mxu1  ;;  %v1041_v26 = vmul.f32 %v7913_v9, %v7913_v9  ;;  %v1043_v30 = vmul.f32 %v7915_v10, %v7915_v10 }
  0xfb   :  { %9883 = vst [vmem:[#allocation9_spill] sm:$0xff] %v7917_v11  ;;  %9885 = vst [vmem:[#allocation11_spill] sm:$0xff] %v7922_v13  ;;  %v490_v14 = vpop.f32.mrb[2].mxu0  ;;  %757 = vmatprep.subr.mxu0 %v7917_v11  ;;  %v531_v15 = vpop.f32.mrb[2].mxu1  ;;  %828 = vmatprep.subr.mxu1 %v7922_v13  ;;  %v1042_v23 = vmul.f32 %v7917_v11, %v7917_v11  ;;  %v1044_v27 = vmul.f32 %v7922_v13, %v7922_v13  ;;  %v691_v11 = vld [vmem:[%s9841_s3 + $0x250] sm:$0xff] }
  0xfc   :  { %v491_v16 = vpop.f32.mrb[3].mxu0  ;;  %758 = vmatpush1.msra.mxu0 %v7913_v9  ;;  %v532_v17 = vpop.f32.mrb[3].mxu1  ;;  %829 = vmatpush1.msra.mxu1 %v7915_v10  ;;  %v671_v14 = vld [vmem:[%s9841_s3 + $0x1b0] sm:$0xff]  ;;  %v672_v15 = vld [vmem:[%s9841_s3 + $0x1b8] sm:$0xff] }
  0xfd   :  { %5903 = vmatmul.mubr.msk.f32.vlgmr.msra.gmra.mrb[8].mxu0 %vm753_vm1, %v7920_v12  ;;  %5904 = vmatmul.mubr.msk.f32.vlgmr.msra.gmra.mrb[8].mxu1 %vm753_vm1, %v7920_v12  ;;  %v8089_v16 = vpack.c.bf16 %v622_v0, %v621_v63  ;;  %v8093_v17 = vpack.c.bf16 %v654_v3, %v653_v1  ;;  %v677_v63 = vld [vmem:[%s9841_s3 + $0x1e0] sm:$0xff]  ;;  %v678_v0 = vld [vmem:[%s9841_s3 + $0x1e8] sm:$0xff]  ;;  %v8197_v1 = vpack.c.bf16 %v628_v53, %v627_v52  ;;  %v692_v10 = vld [vmem:[%s9841_s3 + $0x258] sm:$0xff] }
  0xfe   :  { %963 = vmatprep.mubr.f32.mxu0 %v9859_v4  ;;  %1034 = vmatprep.mubr.f32.mxu1 %v9859_v4  ;;  %v8201_v3 = vpack.c.bf16 %v660_v57, %v659_v55  ;;  %v697_v52 = vld [vmem:[%s9841_s3 + $0x280] sm:$0xff]  ;;  %v698_v53 = vld [vmem:[%s9841_s3 + $0x288] sm:$0xff] }
  0xff   :  { %v729_v55 = vld [vmem:[%s9841_s3 + $0x380] sm:$0xff]  ;;  %v8275_v57 = vpack.c.bf16 %v698_v53, %v697_v52  ;;  %v683_v52 = vld [vmem:[%s9841_s3 + $0x210] sm:$0xff]  ;;  %v684_v53 = vld [vmem:[%s9841_s3 + $0x218] sm:$0xff] }
 0x119   :  { %v7934_v18 = vpop.f32.mrb[4].mxu0  ;;  %v7936_v19 = vpop.f32.mrb[4].mxu1 }
 0x11a   :  { %9886 = vst [vmem:[#allocation12_spill] sm:$0xff] %v7934_v18  ;;  %9887 = vst [vmem:[#allocation13_spill] sm:$0xff] %v7936_v19  ;;  %v7938_v20 = vpop.f32.mrb[5].mxu0  ;;  %v7940_v21 = vpop.f32.mrb[5].mxu1  ;;  %v1045_v39 = vmul.f32 %v7934_v18, %v7934_v18  ;;  %v1047_v44 = vmul.f32 %v7936_v19, %v7936_v19 }
 0x11b   :  { %9888 = vst [vmem:[#allocation14_spill] sm:$0xff] %v7938_v20  ;;  %9889 = vst [vmem:[#allocation15_spill] sm:$0xff] %v7940_v21  ;;  %v572_v22 = vpop.f32.mrb[6].mxu0  ;;  %899 = vmatprep.subr.mxu0 %v7938_v20  ;;  %v613_v24 = vpop.f32.mrb[6].mxu1  ;;  %970 = vmatprep.subr.mxu1 %v7940_v21  ;;  %v1048_v28 = vmul.f32 %v7940_v21, %v7940_v21  ;;  %v1046_v31 = vmul.f32 %v7938_v20, %v7938_v20  ;;  %v689_v20 = vld [vmem:[%s9841_s3 + $0x240] sm:$0xff] }
 0x11c   :  { %v573_v25 = vpop.f32.mrb[7].mxu0  ;;  %900 = vmatpush1.msra.mxu0 %v7934_v18  ;;  %v614_v29 = vpop.f32.mrb[7].mxu1  ;;  %971 = vmatpush1.msra.mxu1 %v7936_v19  ;;  %v8095_v22 = vpack.c.bf16 %v640_v7, %v639_v6  ;;  %v624_v24 = vld [vmem:[%s9841_s3 + $0x38] sm:$0xff]  ;;  %v8203_v6 = vpack.c.bf16 %v646_v59, %v645_v58  ;;  %v629_v7 = vld [vmem:[%s9841_s3 + $0x60] sm:$0xff]  ;;  %v730_v58 = vld [vmem:[%s9841_s3 + $0x388] sm:$0xff] }
 0x11d   :  { %5905 = vmatmul.mubr.msk.f32.vlgmr.msra.gmra.mrb[10].mxu0 %vm753_vm1, %v7920_v12  ;;  %5906 = vmatmul.mubr.msk.f32.vlgmr.msra.gmra.mrb[10].mxu1 %vm753_vm1, %v7920_v12  ;;  %v655_v25 = vld [vmem:[%s9841_s3 + $0x130] sm:$0xff]  ;;  %v642_v29 = vld [vmem:[%s9841_s3 + $0xc8] sm:$0xff]  ;;  %v8280_v59 = vpack.c.bf16 %v730_v58, %v729_v55 }
 0x11e   :  { %1049 = vmatprep.subr.mxu0 %v1042_v23  ;;  %1120 = vmatprep.subr.mxu1 %v1044_v27  ;;  %v623_v23 = vld [vmem:[%s9841_s3 + $0x30] sm:$0xff]  ;;  %v656_v27 = vld [vmem:[%s9841_s3 + $0x138] sm:$0xff]  ;;  %v690_v19 = vld [vmem:[%s9841_s3 + $0x248] sm:$0xff] }
 0x11f   :  { %1050 = vmatpush1.msra.mxu0 %v1041_v26  ;;  %1121 = vmatpush1.msra.mxu1 %v1043_v30  ;;  %v8107_v26 = vpack.c.bf16 %v672_v15, %v671_v14  ;;  %v673_v30 = vld [vmem:[%s9841_s3 + $0x1c0] sm:$0xff]  ;;  %v8125_v32 = vpack.c.bf16 %v624_v24, %v623_v23  ;;  %v8129_v33 = vpack.c.bf16 %v656_v27, %v655_v25  ;;  %v630_v14 = vld [vmem:[%s9841_s3 + $0x68] sm:$0xff]  ;;  %v647_v25 = vld [vmem:[%s9841_s3 + $0xf0] sm:$0xff] }
 0x120   :  { %1191 = vmatprep.subr.mxu0 %v1046_v31  ;;  %1262 = vmatprep.subr.mxu1 %v1048_v28  ;;  %v641_v28 = vld [vmem:[%s9841_s3 + $0xc0] sm:$0xff]  ;;  %v674_v31 = vld [vmem:[%s9841_s3 + $0x1c8] sm:$0xff]  ;;  %v8215_v23 = vpack.c.bf16 %v678_v0, %v677_v63  ;;  %v648_v27 = vld [vmem:[%s9841_s3 + $0xf8] sm:$0xff] }
 0x121   :  { %1113 = vmatprep.mubr.f32.mxu0 %v9859_v4  ;;  %1184 = vmatprep.mubr.f32.mxu1 %v9859_v4  ;;  %v8131_v34 = vpack.c.bf16 %v642_v29, %v641_v28  ;;  %v8143_v38 = vpack.c.bf16 %v674_v31, %v673_v30  ;;  %v661_v15 = vld [vmem:[%s9841_s3 + $0x160] sm:$0xff]  ;;  %v662_v24 = vld [vmem:[%s9841_s3 + $0x168] sm:$0xff]  ;;  %v679_v28 = vld [vmem:[%s9841_s3 + $0x1f0] sm:$0xff]  ;;  %v8233_v30 = vpack.c.bf16 %v630_v14, %v629_v7 }
 0x122   :  { %5907 = vmatmul.mubr.msk.f32.vlgmr.msra.gmra.mrb[12].mxu0 %vm753_vm1, %v7920_v12  ;;  %5908 = vmatmul.mubr.msk.f32.vlgmr.msra.gmra.mrb[12].mxu1 %vm753_vm1, %v7920_v12  ;;  %v680_v29 = vld [vmem:[%s9841_s3 + $0x1f8] sm:$0xff]  ;;  %v8237_v31 = vpack.c.bf16 %v662_v24, %v661_v15  ;;  %v8239_v35 = vpack.c.bf16 %v648_v27, %v647_v25  ;;  %v681_v63 = vld [vmem:[%s9841_s3 + $0x200] sm:$0xff]  ;;  %v682_v0 = vld [vmem:[%s9841_s3 + $0x208] sm:$0xff] }
 0x123   :  { %1192 = vmatpush1.msra.mxu0 %v1045_v39  ;;  %1263 = vmatpush1.msra.mxu1 %v1047_v44  ;;  %v658_v39 = vld [vmem:[%s9841_s3 + $0x148] sm:$0xff]  ;;  %v676_v44 = vld [vmem:[%s9841_s3 + $0x1d8] sm:$0xff]  ;;  %v713_v7 = vld [vmem:[%s9841_s3 + $0x300] sm:$0xff] }
 0x124   :  { %1255 = vmatprep.mubr.f32.mxu0 %v9859_v4  ;;  %1326 = vmatprep.mubr.f32.mxu1 %v9859_v4  ;;  %v8165_v47 = vpack.c.bf16 %v658_v39, %v657_v37  ;;  %v8179_v56 = vpack.c.bf16 %v676_v44, %v675_v43  ;;  %v632_v37 = vld [vmem:[%s9841_s3 + $0x78] sm:$0xff]  ;;  %v8248_v39 = vpack.c.bf16 %v680_v29, %v679_v28  ;;  %v714_v14 = vld [vmem:[%s9841_s3 + $0x308] sm:$0xff]  ;;  %v699_v15 = vld [vmem:[%s9841_s3 + $0x290] sm:$0xff] }
 0x125   :  { %6841 = vmatprep.subr.bf16.mxu0 %v7986_v40  ;;  %6873 = vmatprep.subr.bf16.mxu1 %v8002_v45  ;;  %v8257_v43 = vpack.c.bf16 %v632_v37, %v631_v36  ;;  %v8261_v44 = vpack.c.bf16 %v664_v42, %v663_v41  ;;  %v700_v24 = vld [vmem:[%s9841_s3 + $0x298] sm:$0xff]  ;;  %v731_v25 = vld [vmem:[%s9841_s3 + $0x390] sm:$0xff]  ;;  %v8308_v29 = vpack.c.bf16 %v682_v0, %v681_v63 }
 0x126   :  { %5909 = vmatmul.mubr.msk.f32.vlgmr.msra.gmra.mrb[14].mxu0 %vm753_vm1, %v7920_v12  ;;  %5910 = vmatmul.mubr.msk.f32.vlgmr.msra.gmra.mrb[14].mxu1 %vm753_vm1, %v7920_v12  ;;  %v732_v27 = vld [vmem:[%s9841_s3 + $0x398] sm:$0xff]  ;;  %v8310_v41 = vpack.c.bf16 %v714_v14, %v713_v7  ;;  %v8312_v42 = vpack.c.bf16 %v700_v24, %v699_v15  ;;  %v715_v55 = vld [vmem:[%s9841_s3 + $0x310] sm:$0xff]  ;;  %v701_v7 = vld [vmem:[%s9841_s3 + $0x2a0] sm:$0xff] }
 0x127   :  { %6843 = vmatpush3.bf16.msra.mxu0 %v8012_v48  ;;  %6875 = vmatpush3.bf16.msra.mxu1 %v8015_v49  ;;  %v8323_v63 = vpack.c.bf16 %v732_v27, %v731_v25  ;;  %v716_v0 = vld [vmem:[%s9841_s3 + $0x318] sm:$0xff]  ;;  %v702_v14 = vld [vmem:[%s9841_s3 + $0x2a8] sm:$0xff]  ;;  %v733_v15 = vld [vmem:[%s9841_s3 + $0x3a0] sm:$0xff]  ;;  %v8341_v25 = vpack.c.bf16 %v684_v53, %v683_v52 }
 0x128   :  { %6845 = vmatprep.subr.bf16.mxu0 %v8017_v50  ;;  %6877 = vmatprep.subr.bf16.mxu1 %v8030_v54  ;;  %v734_v24 = vld [vmem:[%s9841_s3 + $0x3a8] sm:$0xff]  ;;  %v8345_v27 = vpack.c.bf16 %v716_v0, %v715_v55  ;;  %v717_v52 = vld [vmem:[%s9841_s3 + $0x320] sm:$0xff]  ;;  %v704_v0 = vld [vmem:[%s9841_s3 + $0x2b8] sm:$0xff] }
 0x129   :  { %v8359_v53 = vpack.c.bf16 %v734_v24, %v733_v15  ;;  %v718_v55 = vld [vmem:[%s9841_s3 + $0x328] sm:$0xff]  ;;  %v688_v4 = vld [vmem:[%s9841_s3 + $0x238] sm:$0xff] }
 0x12a   :  { %v8381_v24 = vpack.c.bf16 %v718_v55, %v717_v52  ;;  %v720_v52 = vld [vmem:[%s9841_s3 + $0x338] sm:$0xff]  ;;  %v705_v55 = vld [vmem:[%s9841_s3 + $0x2c0] sm:$0xff] }
 0x12b   :  { %6847 = vmatpush3.bf16.msra.mxu0 %v8053_v60  ;;  %6879 = vmatpush3.bf16.msra.mxu1 %v8057_v61 }
 0x12c   :  { %6849 = vmatprep.subr.bf16.mxu0 %v8059_v62  ;;  %6881 = vmatprep.subr.bf16.mxu1 %v8071_v2 }
 0x12f   :  { %6851 = vmatpush3.bf16.msra.mxu0 %v8089_v16  ;;  %6883 = vmatpush3.bf16.msra.mxu1 %v8093_v17 }
 0x130   :  { %6853 = vmatprep.subr.bf16.mxu0 %v8095_v22  ;;  %6885 = vmatprep.subr.bf16.mxu1 %v8107_v26 }
 0x133   :  { %6855 = vmatpush3.bf16.msra.mxu0 %v8125_v32  ;;  %6887 = vmatpush3.bf16.msra.mxu1 %v8129_v33 }
 0x134   :  { %6857 = vmatprep.subr.bf16.mxu0 %v8131_v34  ;;  %6889 = vmatprep.subr.bf16.mxu1 %v8143_v38 }
 0x137   :  { %6859 = vmatpush3.bf16.msra.mxu0 %v8161_v46  ;;  %6891 = vmatpush3.bf16.msra.mxu1 %v8165_v47 }
 0x138   :  { %6861 = vmatprep.subr.bf16.mxu0 %v8167_v51  ;;  %6893 = vmatprep.subr.bf16.mxu1 %v8179_v56 }
 0x13b   :  { %6863 = vmatpush3.bf16.msra.mxu0 %v8197_v1  ;;  %6895 = vmatpush3.bf16.msra.mxu1 %v8201_v3 }
 0x13c   :  { %6865 = vmatprep.subr.bf16.mxu0 %v8203_v6  ;;  %6897 = vmatprep.subr.bf16.mxu1 %v8215_v23 }
 0x13f   :  { %6867 = vmatpush3.bf16.msra.mxu0 %v8233_v30  ;;  %6899 = vmatpush3.bf16.msra.mxu1 %v8237_v31 }
 0x140   :  { %6869 = vmatprep.subr.bf16.mxu0 %v8239_v35  ;;  %6901 = vmatprep.subr.bf16.mxu1 %v8248_v39 }
 0x143   :  { %6871 = vmatpush3.bf16.msra.mxu0 %v8257_v43  ;;  %6903 = vmatpush3.bf16.msra.mxu1 %v8261_v44 }
 0x144   :  { %6905 = vmatprep.subr.bf16.mxu0 %v8275_v57  ;;  %6937 = vmatprep.subr.bf16.mxu1 %v8280_v59 }
 0x1d0   :  { %v823_v28 = vpop.f32.mrb[8].mxu0  ;;  %v894_v36 = vpop.f32.mrb[8].mxu1 }
 0x1d1   :  { %v825_v37 = vpop.f32.mrb[9].mxu0  ;;  %v896_v58 = vpop.f32.mrb[9].mxu1 }
 0x1d2   :  { %1397 = vmatprep.mubr.f32.mxu0 %v825_v37  ;;  %1467 = vmatprep.mubr.f32.mxu1 %v896_v58  ;;  %v685_v37 = vld [vmem:[%s9841_s3 + $0x220] sm:$0xff]  ;;  %v703_v58 = vld [vmem:[%s9841_s3 + $0x2b0] sm:$0xff] }
 0x1d3   :  { %1398 = vmatmul.mubr.f32.vlgmr.msra.gmra.mrb[16].mxu0 %v823_v28  ;;  %1468 = vmatmul.mubr.f32.vlgmr.msra.gmra.mrb[16].mxu1 %v894_v36  ;;  %v8347_v28 = vpack.c.bf16 %v702_v14, %v701_v7  ;;  %v686_v36 = vld [vmem:[%s9841_s3 + $0x228] sm:$0xff]  ;;  %v735_v7 = vld [vmem:[%s9841_s3 + $0x3b0] sm:$0xff]  ;;  %v736_v14 = vld [vmem:[%s9841_s3 + $0x3b8] sm:$0xff]  ;;  %v8383_v8 = vpack.c.bf16 %v704_v0, %v703_v58 }
 0x1d4   :  { %6907 = vmatpush3.bf16.msra.mxu0 %v8308_v29  ;;  %6939 = vmatpush3.bf16.msra.mxu1 %v8310_v41  ;;  %v8377_v15 = vpack.c.bf16 %v686_v36, %v685_v37  ;;  %v719_v37 = vld [vmem:[%s9841_s3 + $0x330] sm:$0xff]  ;;  %v8395_v36 = vpack.c.bf16 %v736_v14, %v735_v7  ;;  %v706_v58 = vld [vmem:[%s9841_s3 + $0x2c8] sm:$0xff]  ;;  %v737_v0 = vld [vmem:[%s9841_s3 + $0x3c0] sm:$0xff]  ;;  %v8413_v14 = vpack.c.bf16 %v688_v4, %v687_v5 }
 0x1d5   :  { %6909 = vmatprep.subr.bf16.mxu0 %v8312_v42  ;;  %6941 = vmatprep.subr.bf16.mxu1 %v8323_v63  ;;  %v738_v7 = vld [vmem:[%s9841_s3 + $0x3c8] sm:$0xff]  ;;  %v8417_v12 = vpack.c.bf16 %v720_v52, %v719_v37  ;;  %v8419_v21 = vpack.c.bf16 %v706_v58, %v705_v55  ;;  %v721_v4 = vld [vmem:[%s9841_s3 + $0x340] sm:$0xff]  ;;  %v707_v52 = vld [vmem:[%s9841_s3 + $0x2d0] sm:$0xff] }
 0x1d6   :  { %v8431_v5 = vpack.c.bf16 %v738_v7, %v737_v0  ;;  %v722_v37 = vld [vmem:[%s9841_s3 + $0x348] sm:$0xff]  ;;  %v708_v55 = vld [vmem:[%s9841_s3 + $0x2d8] sm:$0xff]  ;;  %v739_v58 = vld [vmem:[%s9841_s3 + $0x3d0] sm:$0xff]  ;;  %v8449_v7 = vpack.c.bf16 %v690_v19, %v689_v20 }
 0x1d7   :  { %9890 = vst [vmem:[#allocation16_spill] sm:$0xff] %v8417_v12  ;;  %9891 = vst [vmem:[#allocation17_spill] sm:$0xff] %v8419_v21  ;;  %v740_v0 = vld [vmem:[%s9841_s3 + $0x3d8] sm:$0xff]  ;;  %v8453_v18 = vpack.c.bf16 %v722_v37, %v721_v4  ;;  %v8455_v13 = vpack.c.bf16 %v708_v55, %v707_v52  ;;  %v723_v19 = vld [vmem:[%s9841_s3 + $0x350] sm:$0xff] }
 0x1d8   :  { %6911 = vmatpush3.bf16.msra.mxu0 %v8341_v25  ;;  %6943 = vmatpush3.bf16.msra.mxu1 %v8345_v27  ;;  %9892 = vst [vmem:[#allocation18_spill] sm:$0xff] %v8431_v5  ;;  %9893 = vst [vmem:[#allocation19_spill] sm:$0xff] %v8449_v7  ;;  %v8467_v20 = vpack.c.bf16 %v740_v0, %v739_v58  ;;  %v724_v4 = vld [vmem:[%s9841_s3 + $0x358] sm:$0xff]  ;;  %v709_v37 = vld [vmem:[%s9841_s3 + $0x2e0] sm:$0xff]  ;;  %v8485_v0 = vpack.c.bf16 %v692_v10, %v691_v11 }
 0x1d9   :  { %6913 = vmatprep.subr.bf16.mxu0 %v8347_v28  ;;  %6945 = vmatprep.subr.bf16.mxu1 %v8359_v53  ;;  %9894 = vst [vmem:[#allocation20_spill] sm:$0xff] %v8453_v18  ;;  %9895 = vst [vmem:[#allocation21_spill] sm:$0xff] %v8455_v13  ;;  %v710_v52 = vld [vmem:[%s9841_s3 + $0x2e8] sm:$0xff]  ;;  %v741_v55 = vld [vmem:[%s9841_s3 + $0x3e0] sm:$0xff]  ;;  %v8489_v9 = vpack.c.bf16 %v724_v4, %v723_v19 }
 0x1da   :  { %9896 = vst [vmem:[#allocation22_spill] sm:$0xff] %v8467_v20  ;;  %v742_v58 = vld [vmem:[%s9841_s3 + $0x3e8] sm:$0xff]  ;;  %v725_v10 = vld [vmem:[%s9841_s3 + $0x360] sm:$0xff]  ;;  %v711_v4 = vld [vmem:[%s9841_s3 + $0x2f0] sm:$0xff] }
 0x1db   :  { %v8503_v11 = vpack.c.bf16 %v742_v58, %v741_v55  ;;  %v726_v19 = vld [vmem:[%s9841_s3 + $0x368] sm:$0xff]  ;;  %v744_v55 = vld [vmem:[%s9841_s3 + $0x3f8] sm:$0xff] }
 0x1dc   :  { %6915 = vmatpush3.bf16.msra.mxu0 %v8377_v15  ;;  %6947 = vmatpush3.bf16.msra.mxu1 %v8381_v24 }
 0x1dd   :  { %6917 = vmatprep.subr.bf16.mxu0 %v8383_v8  ;;  %6949 = vmatprep.subr.bf16.mxu1 %v8395_v36 }
 0x1e0   :  { %6919 = vmatpush3.bf16.msra.mxu0 %v8413_v14  ;;  %6951 = vmatpush3.bf16.msra.mxu1 %v8417_v12  ;;  %v694_v12 = vld [vmem:[%s9841_s3 + $0x268] sm:$0xff] }
 0x1e1   :  { %6921 = vmatprep.subr.bf16.mxu0 %v8419_v21  ;;  %6953 = vmatprep.subr.bf16.mxu1 %v8431_v5  ;;  %v8491_v5 = vpack.c.bf16 %v710_v52, %v709_v37  ;;  %v693_v21 = vld [vmem:[%s9841_s3 + $0x260] sm:$0xff]  ;;  %v712_v37 = vld [vmem:[%s9841_s3 + $0x2f8] sm:$0xff]  ;;  %v743_v52 = vld [vmem:[%s9841_s3 + $0x3f0] sm:$0xff] }
 0x1e2   :  { %v8521_v58 = vpack.c.bf16 %v694_v12, %v693_v21  ;;  %v8536_v12 = vpack.c.bf16 %v744_v55, %v743_v52  ;;  %v727_v21 = vld [vmem:[%s9841_s3 + $0x370] sm:$0xff] }
 0x1e4   :  { %6923 = vmatpush3.bf16.msra.mxu0 %v8449_v7  ;;  %6955 = vmatpush3.bf16.msra.mxu1 %v8453_v18  ;;  %9897 = vst [vmem:[#allocation23_spill] sm:$0xff] %v8521_v58  ;;  %v695_v18 = vld [vmem:[%s9841_s3 + $0x270] sm:$0xff]  ;;  %v696_v7 = vld [vmem:[%s9841_s3 + $0x278] sm:$0xff] }
 0x1e5   :  { %6925 = vmatprep.subr.bf16.mxu0 %v8455_v13  ;;  %6957 = vmatprep.subr.bf16.mxu1 %v8467_v20  ;;  %v8525_v20 = vpack.c.bf16 %v726_v19, %v725_v10  ;;  %v8527_v13 = vpack.c.bf16 %v712_v37, %v711_v4  ;;  %v728_v10 = vld [vmem:[%s9841_s3 + $0x378] sm:$0xff]  ;;  %v8545_v19 = vpack.c.bf16 %v696_v7, %v695_v18  ;;  %s616_s3 = smul.f32 128.0, %s8662_s27 }
 0x1e6   :  { %v8549_v4 = vpack.c.bf16 %v728_v10, %v727_v21 }
 0x1e8   :  { %6927 = vmatpush3.bf16.msra.mxu0 %v8485_v0  ;;  %6959 = vmatpush3.bf16.msra.mxu1 %v8489_v9 }
 0x1e9   :  { %6929 = vmatprep.subr.bf16.mxu0 %v8491_v5  ;;  %6961 = vmatprep.subr.bf16.mxu1 %v8503_v11 }
 0x1ec   :  { %6931 = vmatpush3.bf16.msra.mxu0 %v8521_v58  ;;  %6963 = vmatpush3.bf16.msra.mxu1 %v8525_v20 }
 0x1ed   :  { %6933 = vmatprep.subr.bf16.mxu0 %v8527_v13  ;;  %6965 = vmatprep.subr.bf16.mxu1 %v8536_v12 }
 0x1f0   :  { %6935 = vmatpush3.bf16.msra.mxu0 %v8545_v19  ;;  %v965_v37 = vpop.f32.mrb[10].mxu0  ;;  %6967 = vmatpush3.bf16.msra.mxu1 %v8549_v4  ;;  %v1036_v52 = vpop.f32.mrb[10].mxu1 }
 0x1f1   :  { %v967_v55 = vpop.f32.mrb[11].mxu0  ;;  %6969 = vmatprep.subr.bf16.mxu0 %v7986_v40  ;;  %v1038_v58 = vpop.f32.mrb[11].mxu1  ;;  %7001 = vmatprep.subr.bf16.mxu1 %v8002_v45 }
 0x1f2   :  { %1537 = vmatprep.mubr.f32.mxu0 %v967_v55  ;;  %1607 = vmatprep.mubr.f32.mxu1 %v1038_v58 }
 0x1f3   :  { %1538 = vmatmul.mubr.f32.vlgmr.msra.gmra.mrb[18].mxu0 %v965_v37  ;;  %1608 = vmatmul.mubr.f32.vlgmr.msra.gmra.mrb[18].mxu1 %v1036_v52  ;;  %v749_v52 = vld [vmem:[%s9842_s4 + $0x20] sm:$0xff] }
 0x1f4   :  { %6971 = vmatpush3.bf16.msra.mxu0 %v8012_v48  ;;  %7003 = vmatpush3.bf16.msra.mxu1 %v8015_v49 }
 0x1f5   :  { %6973 = vmatprep.subr.bf16.mxu0 %v8017_v50  ;;  %v1115_v18 = vpop.f32.mrb[12].mxu0  ;;  %7005 = vmatprep.subr.bf16.mxu1 %v8030_v54  ;;  %v1186_v7 = vpop.f32.mrb[12].mxu1  ;;  %v9898_v50 = vld [vmem:[#allocation16_spill] sm:$0xff]  ;;  %v9899_v54 = vld [vmem:[#allocation17_spill] sm:$0xff] }
 0x1f6   :  { %v1117_v21 = vpop.f32.mrb[13].mxu0  ;;  %v1188_v10 = vpop.f32.mrb[13].mxu1 }
 0x1f7   :  { %1677 = vmatprep.mubr.f32.mxu0 %v1117_v21  ;;  %1747 = vmatprep.mubr.f32.mxu1 %v1188_v10  ;;  %v7395_v21 = vld [vmem:[%s9843_s5 + $0x4] ss:$8 sps:$4 sm:$0xff]   ;;  %v7393_v10 = vld [vmem:[%s9843_s5] ss:$8 sps:$4 sm:$0xff]  }
 0x1f8   :  { %6975 = vmatpush3.bf16.msra.mxu0 %v8053_v60  ;;  %7007 = vmatpush3.bf16.msra.mxu1 %v8057_v61  ;;  %v9900_v60 = vld [vmem:[#allocation18_spill] sm:$0xff]  ;;  %v9901_v61 = vld [vmem:[#allocation19_spill] sm:$0xff] }
 0x1f9   :  { %6977 = vmatprep.subr.bf16.mxu0 %v8059_v62  ;;  %v1257_v40 = vpop.f32.mrb[14].mxu0  ;;  %7009 = vmatprep.subr.bf16.mxu1 %v8071_v2  ;;  %v1328_v48 = vpop.f32.mrb[14].mxu1  ;;  %v9902_v62 = vld [vmem:[#allocation20_spill] sm:$0xff]  ;;  %v9903_v2 = vld [vmem:[#allocation21_spill] sm:$0xff] }
 0x1fa   :  { %v1259_v45 = vpop.f32.mrb[15].mxu0  ;;  %v1330_v49 = vpop.f32.mrb[15].mxu1 }
 0x1fc   :  { %6979 = vmatpush3.bf16.msra.mxu0 %v8089_v16  ;;  %7011 = vmatpush3.bf16.msra.mxu1 %v8093_v17  ;;  %v9904_v16 = vld [vmem:[#allocation22_spill] sm:$0xff]  ;;  %v9906_v17 = vmov 0.0  }
 0x1fd   :  { %6981 = vmatprep.subr.bf16.mxu0 %v8095_v22  ;;  %7013 = vmatprep.subr.bf16.mxu1 %v8107_v26  ;;  %v8633_v22 = vld [vmem:[%s9842_s4] sm:$0xff]  ;;  %v8640_v26 = vld [vmem:[%s9842_s4 + $0x10] sm:$0xff] }
 0x200   :  { %6983 = vmatpush3.bf16.msra.mxu0 %v8125_v32  ;;  %7015 = vmatpush3.bf16.msra.mxu1 %v8129_v33  ;;  %v8647_v32 = vld [vmem:[%s9842_s4 + $0x28] sm:$0xff]  ;;  %v8652_v33 = vld [vmem:[%s9842_s4 + $0x38] sm:$0xff] }
 0x201   :  { %6985 = vmatprep.subr.bf16.mxu0 %v8131_v34  ;;  %7017 = vmatprep.subr.bf16.mxu1 %v8143_v38 }
 0x204   :  { %6987 = vmatpush3.bf16.msra.mxu0 %v8161_v46  ;;  %7019 = vmatpush3.bf16.msra.mxu1 %v8165_v47 }
 0x205   :  { %6989 = vmatprep.subr.bf16.mxu0 %v8167_v51  ;;  %7021 = vmatprep.subr.bf16.mxu1 %v8179_v56 }
 0x208   :  { %6991 = vmatpush3.bf16.msra.mxu0 %v8197_v1  ;;  %7023 = vmatpush3.bf16.msra.mxu1 %v8201_v3 }
 0x209   :  { %6993 = vmatprep.subr.bf16.mxu0 %v8203_v6  ;;  %7025 = vmatprep.subr.bf16.mxu1 %v8215_v23 }
 0x20c   :  { %6995 = vmatpush3.bf16.msra.mxu0 %v8233_v30  ;;  %7027 = vmatpush3.bf16.msra.mxu1 %v8237_v31 }
 0x20d   :  { %6997 = vmatprep.subr.bf16.mxu0 %v8239_v35  ;;  %7029 = vmatprep.subr.bf16.mxu1 %v8248_v39 }
 0x210   :  { %6999 = vmatpush3.bf16.msra.mxu0 %v8257_v43  ;;  %7031 = vmatpush3.bf16.msra.mxu1 %v8261_v44 }
 0x211   :  { %7033 = vmatprep.subr.bf16.mxu0 %v8275_v57  ;;  %7065 = vmatprep.subr.bf16.mxu1 %v8280_v59 }
 0x213   :  { %1678 = vmatmul.mubr.f32.vlgmr.msra.gmra.mrb[20].mxu0 %v1115_v18  ;;  %1748 = vmatmul.mubr.f32.vlgmr.msra.gmra.mrb[20].mxu1 %v1186_v7  ;;  %v751_v18 = vld [vmem:[%s9842_s4 + $0x30] sm:$0xff] }
 0x214   :  { %7035 = vmatpush3.bf16.msra.mxu0 %v8308_v29  ;;  %7067 = vmatpush3.bf16.msra.mxu1 %v8310_v41 }
 0x215   :  { %7037 = vmatprep.subr.bf16.mxu0 %v8312_v42  ;;  %7069 = vmatprep.subr.bf16.mxu1 %v8323_v63 }
 0x216   :  { %1817 = vmatprep.mubr.f32.mxu0 %v1259_v45  ;;  %1887 = vmatprep.mubr.f32.mxu1 %v1330_v49  ;;  %v7396_v45 = vld [vmem:[%s9843_s5 + $0x10] ss:$8 sps:$4 sm:$0xff]   ;;  %v7399_v49 = vld [vmem:[%s9843_s5 + $0x20] ss:$8 sps:$4 sm:$0xff]  }
 0x218   :  { %7039 = vmatpush3.bf16.msra.mxu0 %v8341_v25  ;;  %7071 = vmatpush3.bf16.msra.mxu1 %v8345_v27  ;;  %v1893_v25 = vstv %s616_s3  ;;  %s3743_s3 = smul.f32 32.0, %s8662_s27 }
 0x219   :  { %7041 = vmatprep.subr.bf16.mxu0 %v8347_v28  ;;  %7073 = vmatprep.subr.bf16.mxu1 %v8359_v53  ;;  %7570 = vrcp.f32 %v1893_v25 }
 0x21c   :  { %7043 = vmatpush3.bf16.msra.mxu0 %v8377_v15  ;;  %7075 = vmatpush3.bf16.msra.mxu1 %v8381_v24 }
 0x21d   :  { %7045 = vmatprep.subr.bf16.mxu0 %v8383_v8  ;;  %7077 = vmatprep.subr.bf16.mxu1 %v8395_v36  ;;  %v9905_v8 = vld [vmem:[#allocation23_spill] sm:$0xff] }
 0x220   :  { %7047 = vmatpush3.bf16.msra.mxu0 %v8413_v14  ;;  %7079 = vmatpush3.bf16.msra.mxu1 %v9898_v50  ;;  %v7404_v50 = vld [vmem:[%s9843_s5 + $0x34] ss:$8 sps:$4 sm:$0xff]  }
 0x221   :  { %7049 = vmatprep.subr.bf16.mxu0 %v9899_v54  ;;  %7081 = vmatprep.subr.bf16.mxu1 %v9900_v60  ;;  %v7402_v54 = vld [vmem:[%s9843_s5 + $0x30] ss:$8 sps:$4 sm:$0xff]   ;;  %v7407_v60 = vld [vmem:[%s9843_s5 + $0x44] ss:$8 sps:$4 sm:$0xff]  }
 0x223   :  { %v7571_v28 = vpop.eup %7570 }
 0x224   :  { %7051 = vmatpush3.bf16.msra.mxu0 %v9901_v61  ;;  %7083 = vmatpush3.bf16.msra.mxu1 %v9902_v62  ;;  %v7405_v61 = vld [vmem:[%s9843_s5 + $0x40] ss:$8 sps:$4 sm:$0xff]   ;;  %v7410_v62 = vld [vmem:[%s9843_s5 + $0x54] ss:$8 sps:$4 sm:$0xff]  }
 0x225   :  { %7053 = vmatprep.subr.bf16.mxu0 %v9903_v2  ;;  %7085 = vmatprep.subr.bf16.mxu1 %v9904_v16  ;;  %v7408_v2 = vld [vmem:[%s9843_s5 + $0x50] ss:$8 sps:$4 sm:$0xff]   ;;  %v7413_v16 = vld [vmem:[%s9843_s5 + $0x64] ss:$8 sps:$4 sm:$0xff]  }
 0x228   :  { %7055 = vmatpush3.bf16.msra.mxu0 %v8485_v0  ;;  %7087 = vmatpush3.bf16.msra.mxu1 %v8489_v9  ;;  %v8623_v9 = vld [vmem:[%s9842_s4 + $0x8] sm:$0xff] }
 0x229   :  { %7057 = vmatprep.subr.bf16.mxu0 %v8491_v5  ;;  %7089 = vmatprep.subr.bf16.mxu1 %v8503_v11 }
 0x22c   :  { %7059 = vmatpush3.bf16.msra.mxu0 %v9905_v8  ;;  %7091 = vmatpush3.bf16.msra.mxu1 %v8525_v20  ;;  %v7411_v8 = vld [vmem:[%s9843_s5 + $0x60] ss:$8 sps:$4 sm:$0xff]  }
 0x22d   :  { %7061 = vmatprep.subr.bf16.mxu0 %v8527_v13  ;;  %7093 = vmatprep.subr.bf16.mxu1 %v8536_v12  ;;  %v8628_v13 = vld [vmem:[%s9842_s4 + $0x18] sm:$0xff] }
 0x230   :  { %7063 = vmatpush3.bf16.msra.mxu0 %v8545_v19  ;;  %7095 = vmatpush3.bf16.msra.mxu1 %v8549_v4 }
 0x231   :  { %1905 = vmatprep.subr.mxu0 %v8623_v9  ;;  %1976 = vmatprep.subr.mxu1 %v8628_v13 }
 0x233   :  { %1818 = vmatmul.mubr.f32.vlgmr.msra.gmra.mrb[22].mxu0 %v1257_v40  ;;  %1888 = vmatmul.mubr.f32.vlgmr.msra.gmra.mrb[22].mxu1 %v1328_v48  ;;  %v7398_v40 = vld [vmem:[%s9843_s5 + $0x14] ss:$8 sps:$4 sm:$0xff]   ;;  %v7401_v48 = vld [vmem:[%s9843_s5 + $0x24] ss:$8 sps:$4 sm:$0xff]  }
 0x234   :  { %1969 = vmatprep.mubr.f32.mxu0 %v9906_v17  ;;  %2040 = vmatprep.mubr.f32.mxu1 %v9906_v17 }
 0x235   :  { %1906 = vmatpush1.msra.mxu0 %v8633_v22  ;;  %1977 = vmatpush1.msra.mxu1 %v8640_v26 }
 0x236   :  { %2047 = vmatprep.subr.mxu0 %v8647_v32  ;;  %2118 = vmatprep.subr.mxu1 %v8652_v33 }
 0x2a6   :  { %v6102_v34 = vpop.f32.mrb[16].mxu0  ;;  %v6137_v38 = vpop.f32.mrb[16].mxu1 }
 0x2a7   :  { %v6103_v46 = vpop.f32.mrb[17].mxu0  ;;  %v6138_v51 = vpop.f32.mrb[17].mxu1 }
 0x2a8   :  { %v6104_v47 = vadd.f32 %v6103_v46, %v6102_v34  ;;  %v6139_v56 = vadd.f32 %v6138_v51, %v6137_v38  ;;  %v7425_v34 = vld [vmem:[%s9843_s5 + $0xa4] ss:$8 sps:$4 sm:$0xff]   ;;  %v7423_v38 = vld [vmem:[%s9843_s5 + $0xa0] ss:$8 sps:$4 sm:$0xff]   ;;  %v7428_v46 = vld [vmem:[%s9843_s5 + $0xb4] ss:$8 sps:$4 sm:$0xff]  }
 0x2a9   :  { %v7431_v51 = vld [vmem:[%s9843_s5 + $0xc4] ss:$8 sps:$4 sm:$0xff]  }
 0x2aa   :  { %v1470_v1 = vadd.f32 %v6139_v56, %v6104_v47  ;;  %v7426_v47 = vld [vmem:[%s9843_s5 + $0xb0] ss:$8 sps:$4 sm:$0xff]   ;;  %v7429_v56 = vld [vmem:[%s9843_s5 + $0xc0] ss:$8 sps:$4 sm:$0xff]  }
 0x2c6   :  { %v6172_v3 = vpop.f32.mrb[18].mxu0  ;;  %v6207_v6 = vpop.f32.mrb[18].mxu1 }
 0x2c7   :  { %v6173_v23 = vpop.f32.mrb[19].mxu0  ;;  %v6208_v31 = vpop.f32.mrb[19].mxu1 }
 0x2c8   :  { %v6174_v30 = vadd.f32 %v6173_v23, %v6172_v3  ;;  %v6209_v35 = vadd.f32 %v6208_v31, %v6207_v6  ;;  %v7432_v3 = vld [vmem:[%s9843_s5 + $0xd0] ss:$8 sps:$4 sm:$0xff]   ;;  %v7437_v6 = vld [vmem:[%s9843_s5 + $0xe4] ss:$8 sps:$4 sm:$0xff]   ;;  %v7435_v23 = vld [vmem:[%s9843_s5 + $0xe0] ss:$8 sps:$4 sm:$0xff]  }
 0x2c9   :  { %v7440_v31 = vld [vmem:[%s9843_s5 + $0xf4] ss:$8 sps:$4 sm:$0xff]  }
 0x2ca   :  { %v1540_v39 = vadd.f32 %v6174_v30, %v1470_v1  ;;  %v7434_v1 = vld [vmem:[%s9843_s5 + $0xd4] ss:$8 sps:$4 sm:$0xff]   ;;  %v7438_v30 = vld [vmem:[%s9843_s5 + $0xf0] ss:$8 sps:$4 sm:$0xff]  }
 0x2cc   :  { %v1610_v43 = vadd.f32 %v6209_v35, %v1540_v39  ;;  %v7443_v35 = vld [vmem:[%s9843_s5 + $0x104] ss:$8 sps:$4 sm:$0xff]   ;;  %v9907_v39 = vlaneseq }
 0x2ce   :  { %v1895_v5 = vmul.f32 %v7571_v28, %v1610_v43  ;;  %v2479_v43 = vshrl.u32 %v9907_v39, 7 }
 0x2d0   :  { %v1897_v11 = vmul.f32 %v1895_v5, %v1895_v5  ;;  %v2189_v37 = vsub.f32 0.0, %v1895_v5  ;;  %v9911_v5 = vld [vmem:[#allocation11_spill] sm:$0xff] }
 0x2e6   :  { %v6242_v44 = vpop.f32.mrb[20].mxu0  ;;  %v6277_v57 = vpop.f32.mrb[20].mxu1 }
 0x2e7   :  { %v6243_v59 = vpop.f32.mrb[21].mxu0  ;;  %v6278_v41 = vpop.f32.mrb[21].mxu1 }
 0x2e8   :  { %v6244_v29 = vadd.f32 %v6243_v59, %v6242_v44  ;;  %v6279_v42 = vadd.f32 %v6278_v41, %v6277_v57  ;;  %v8792_v44 = vsub.s32 0, %v2479_v43 }
 0x2ea   :  { %v1750_v63 = vadd.f32 %v6279_v42, %v6244_v29 }
 0x306   :  { %v6312_v27 = vpop.f32.mrb[22].mxu0  ;;  %v6347_v53 = vpop.f32.mrb[22].mxu1 }
 0x307   :  { %v6313_v15 = vpop.f32.mrb[23].mxu0  ;;  %v6348_v36 = vpop.f32.mrb[23].mxu1 }
 0x308   :  { %v6314_v24 = vadd.f32 %v6313_v15, %v6312_v27  ;;  %v6349_v14 = vadd.f32 %v6348_v36, %v6347_v53  ;;  %v9909_v15 = vld [vmem:[#allocation8_spill] sm:$0xff]  ;;  %v9910_v36 = vld [vmem:[#allocation9_spill] sm:$0xff] }
 0x30a   :  { %v1820_v20 = vadd.f32 %v6314_v24, %v1750_v63 }
 0x30c   :  { %v1890_v0 = vadd.f32 %v6349_v14, %v1820_v20 }
 0x30e   :  { %v1896_v58 = vmul.f32 %v7571_v28, %v1890_v0  ;;  %v9908_v28 = vld [vmem:[#allocation7_spill] sm:$0xff] }
 0x310   :  { %v1898_v12 = vsub.f32 %v1896_v58, %v1897_v11 }
 0x312   :  { %v1899_v19 = vmax.f32 %v1898_v12, 0.0 }
 0x314   :  { %v1900_v4 = vadd.f32 0.0001, %v1899_v19 }
 0x316   :  { %7572 = vrsqrt.f32 %v1900_v4 }
 0x320   :  { %v7573_v55 = vpop.eup %7572 }
 0x321   :  { %5911 = vmatmul.mubr.msk.f32.vlgmr.msra.gmra.mrb[24].mxu0 %vm753_vm1, %v7573_v55  ;;  %5912 = vmatmul.mubr.msk.f32.vlgmr.msra.gmra.mrb[24].mxu1 %vm753_vm1, %v7573_v55  ;;  %v2190_v7 = vmul.f32 %v7573_v55, %v2189_v37 }
 0x322   :  { %2048 = vmatpush1.msra.mxu0 %v749_v52  ;;  %2111 = vmatprep.mubr.f32.mxu0 %v9906_v17 }
 0x323   :  { %2119 = vmatpush1.msra.mxu1 %v751_v18  ;;  %2182 = vmatprep.mubr.f32.mxu1 %v9906_v17 }
 0x324   :  { %2194 = vmatprep.subr.mxu0 %v8623_v9  ;;  %2265 = vmatprep.subr.mxu1 %v8628_v13  ;;  %v7416_v9 = vld [vmem:[%s9843_s5 + $0x74] ss:$8 sps:$4 sm:$0xff]   ;;  %v7414_v13 = vld [vmem:[%s9843_s5 + $0x70] ss:$8 sps:$4 sm:$0xff]  }
 0x325   :  { %5913 = vmatmul.mubr.msk.f32.vlgmr.msra.gmra.mrb[26].mxu0 %vm753_vm1, %v7573_v55  ;;  %5914 = vmatmul.mubr.msk.f32.vlgmr.msra.gmra.mrb[26].mxu1 %vm753_vm1, %v7573_v55  ;;  %v9912_v55 = vld [vmem:[#allocation12_spill] sm:$0xff] }
 0x326   :  { %2195 = vmatpush1.msra.mxu0 %v8633_v22  ;;  %2258 = vmatprep.mubr.f32.mxu0 %v9906_v17  ;;  %v7419_v22 = vld [vmem:[%s9843_s5 + $0x84] ss:$8 sps:$4 sm:$0xff]  }
 0x327   :  { %2266 = vmatpush1.msra.mxu1 %v8640_v26  ;;  %2329 = vmatprep.mubr.f32.mxu1 %v9906_v17  ;;  %v7417_v26 = vld [vmem:[%s9843_s5 + $0x80] ss:$8 sps:$4 sm:$0xff]  }
 0x328   :  { %2336 = vmatprep.subr.mxu0 %v8647_v32  ;;  %2407 = vmatprep.subr.mxu1 %v8652_v33  ;;  %v7422_v32 = vld [vmem:[%s9843_s5 + $0x94] ss:$8 sps:$4 sm:$0xff]   ;;  %v7420_v33 = vld [vmem:[%s9843_s5 + $0x90] ss:$8 sps:$4 sm:$0xff]  }
 0x329   :  { %5915 = vmatmul.mubr.msk.f32.vlgmr.msra.gmra.mrb[28].mxu0 %vm753_vm1, %v2190_v7  ;;  %5916 = vmatmul.mubr.msk.f32.vlgmr.msra.gmra.mrb[28].mxu1 %vm753_vm1, %v2190_v7 }
 0x32a   :  { %2337 = vmatpush1.msra.mxu0 %v749_v52  ;;  %2400 = vmatprep.mubr.f32.mxu0 %v9906_v17 }
 0x32b   :  { %2408 = vmatpush1.msra.mxu1 %v751_v18  ;;  %2471 = vmatprep.mubr.f32.mxu1 %v9906_v17 }
 0x32c   :  { %2974 = vmatprep.subr.bf16.mxu0 %v7395_v21 }
 0x32d   :  { %5917 = vmatmul.mubr.msk.f32.vlgmr.msra.gmra.mrb[30].mxu0 %vm753_vm1, %v2190_v7  ;;  %5918 = vmatmul.mubr.msk.f32.vlgmr.msra.gmra.mrb[30].mxu1 %vm753_vm1, %v2190_v7  ;;  %v9913_v7 = vld [vmem:[#allocation13_spill] sm:$0xff] }
 0x32e   :  { %2975 = vmatpush1.bf16.msra.mxu0 %v7393_v10  ;;  %3154 = vmatprep.mubr.f32.mxu1 %v9906_v17  ;;  %v9914_v10 = vld [vmem:[#allocation14_spill] sm:$0xff] }
 0x32f   :  { %2976 = vmatprep.subr.bf16.mxu0 %v7398_v40 }
 0x332   :  { %2977 = vmatpush1.bf16.msra.mxu0 %v7396_v45  ;;  %v9915_v45 = vld [vmem:[#allocation15_spill] sm:$0xff] }
 0x333   :  { %2978 = vmatprep.subr.bf16.mxu0 %v7401_v48 }
 0x336   :  { %2979 = vmatpush1.bf16.msra.mxu0 %v7399_v49 }
 0x337   :  { %2980 = vmatprep.subr.bf16.mxu0 %v7404_v50 }
 0x33a   :  { %2981 = vmatpush1.bf16.msra.mxu0 %v7402_v54 }
 0x33b   :  { %2982 = vmatprep.subr.bf16.mxu0 %v7407_v60 }
 0x33e   :  { %2983 = vmatpush1.bf16.msra.mxu0 %v7405_v61 }
 0x33f   :  { %2984 = vmatprep.subr.bf16.mxu0 %v7410_v62 }
 0x342   :  { %2985 = vmatpush1.bf16.msra.mxu0 %v7408_v2 }
 0x343   :  { %2986 = vmatprep.subr.bf16.mxu0 %v7413_v16 }
 0x346   :  { %2987 = vmatpush1.bf16.msra.mxu0 %v7411_v8 }
 0x347   :  { %2988 = vmatprep.subr.bf16.mxu0 %v7416_v9 }
 0x34a   :  { %2989 = vmatpush1.bf16.msra.mxu0 %v7414_v13 }
 0x34b   :  { %2990 = vmatprep.subr.bf16.mxu0 %v7419_v22 }
 0x34e   :  { %2991 = vmatpush1.bf16.msra.mxu0 %v7417_v26 }
 0x34f   :  { %2992 = vmatprep.subr.bf16.mxu0 %v7422_v32 }
 0x352   :  { %2993 = vmatpush1.bf16.msra.mxu0 %v7420_v33 }
 0x353   :  { %2994 = vmatprep.subr.bf16.mxu0 %v7425_v34 }
 0x356   :  { %2995 = vmatpush1.bf16.msra.mxu0 %v7423_v38 }
 0x357   :  { %2996 = vmatprep.subr.bf16.mxu0 %v7428_v46 }
 0x35a   :  { %2997 = vmatpush1.bf16.msra.mxu0 %v7426_v47 }
 0x35b   :  { %2998 = vmatprep.subr.bf16.mxu0 %v7431_v51 }
 0x35e   :  { %2999 = vmatpush1.bf16.msra.mxu0 %v7429_v56 }
 0x35f   :  { %3000 = vmatprep.subr.bf16.mxu0 %v7434_v1 }
 0x362   :  { %3001 = vmatpush1.bf16.msra.mxu0 %v7432_v3 }
 0x363   :  { %3002 = vmatprep.subr.bf16.mxu0 %v7437_v6 }
 0x366   :  { %3003 = vmatpush1.bf16.msra.mxu0 %v7435_v23 }
 0x367   :  { %3004 = vmatprep.subr.bf16.mxu0 %v7440_v31 }
 0x36a   :  { %3005 = vmatpush1.bf16.msra.mxu0 %v7438_v30 }
 0x36b   :  { %3015 = vmatprep.subr.bf16.mxu0 %v7443_v35 }
 0x3f4   :  { %v1971_v57 = vpop.f32.mrb[24].mxu0  ;;  %v2042_v59 = vpop.f32.mrb[24].mxu1 }
 0x3f5   :  { %v2481_v29 = vrot.slane %v1971_v57, %v8792_v44  ;;  %v2489_v41 = vrot.slane %v2042_v59, %v8792_v44  ;;  %v1973_v42 = vpop.f32.mrb[25].mxu0  ;;  %v2044_v63 = vpop.f32.mrb[25].mxu1 }
 0x3f6   :  { %v2485_v25 = vrot.slane %v1973_v42, %v8792_v44  ;;  %v2493_v27 = vrot.slane %v2044_v63, %v8792_v44 }
 0x3f7   :  { %v2510_v53 = vmul.f32 %v2481_v29, %v9908_v28  ;;  %v2512_v24 = vmul.f32 %v2489_v41, %v9909_v15 }
 0x3f8   :  { %v2511_v14 = vmul.f32 %v2485_v25, %v9910_v36  ;;  %v2513_v20 = vmul.f32 %v2493_v27, %v9911_v5  ;;  %v2113_v0 = vpop.f32.mrb[26].mxu0  ;;  %v2184_v11 = vpop.f32.mrb[26].mxu1 }
 0x3f9   :  { %v2497_v58 = vrot.slane %v2113_v0, %v8792_v44  ;;  %v2505_v12 = vrot.slane %v2184_v11, %v8792_v44  ;;  %v2115_v19 = vpop.f32.mrb[27].mxu0  ;;  %v2186_v4 = vpop.f32.mrb[27].mxu1  ;;  %v7446_v11 = vld [vmem:[%s9843_s5 + $0x114] ss:$8 sps:$4 sm:$0xff]  }
 0x3fa   :  { %v2501_v37 = vrot.slane %v2115_v19, %v8792_v44  ;;  %v2509_v52 = vrot.slane %v2186_v4, %v8792_v44  ;;  %v7449_v19 = vld [vmem:[%s9843_s5 + $0x124] ss:$8 sps:$4 sm:$0xff]   ;;  %v7447_v4 = vld [vmem:[%s9843_s5 + $0x120] ss:$8 sps:$4 sm:$0xff]  }
 0x3fb   :  { %v2514_v18 = vmul.f32 %v2497_v58, %v9912_v55  ;;  %v2516_v21 = vmul.f32 %v2505_v12, %v9913_v7  ;;  %v7444_v12 = vld [vmem:[%s9843_s5 + $0x110] ss:$8 sps:$4 sm:$0xff]   ;;  %v7455_v55 = vld [vmem:[%s9843_s5 + $0x144] ss:$8 sps:$4 sm:$0xff]   ;;  %v7458_v7 = vld [vmem:[%s9843_s5 + $0x154] ss:$8 sps:$4 sm:$0xff]  }
 0x3fc   :  { %v2515_v40 = vmul.f32 %v2501_v37, %v9914_v10  ;;  %v2517_v48 = vmul.f32 %v2509_v52, %v9915_v45  ;;  %v2260_v49 = vpop.f32.mrb[28].mxu0  ;;  %v2331_v50 = vpop.f32.mrb[28].mxu1  ;;  %v7452_v37 = vld [vmem:[%s9843_s5 + $0x134] ss:$8 sps:$4 sm:$0xff]   ;;  %v7450_v52 = vld [vmem:[%s9843_s5 + $0x130] ss:$8 sps:$4 sm:$0xff]  }
 0x3fd   :  { %v2521_v54 = vrot.slane %v2260_v49, %v8792_v44  ;;  %v2529_v60 = vrot.slane %v2331_v50, %v8792_v44  ;;  %v2262_v61 = vpop.f32.mrb[29].mxu0  ;;  %v2333_v62 = vpop.f32.mrb[29].mxu1  ;;  %v7461_v10 = vld [vmem:[%s9843_s5 + $0x164] ss:$8 sps:$4 sm:$0xff]   ;;  %v7464_v45 = vld [vmem:[%s9843_s5 + $0x174] ss:$8 sps:$4 sm:$0xff]  }
 0x3fe   :  { %v2525_v2 = vrot.slane %v2262_v61, %v8792_v44  ;;  %v2533_v16 = vrot.slane %v2333_v62, %v8792_v44  ;;  %v7467_v49 = vld [vmem:[%s9843_s5 + $0x184] ss:$8 sps:$4 sm:$0xff]   ;;  %v7465_v50 = vld [vmem:[%s9843_s5 + $0x180] ss:$8 sps:$4 sm:$0xff]  }
 0x3ff   :  { %v2550_v8 = vadd.f32 %v2521_v54, %v2510_v53  ;;  %v2552_v9 = vadd.f32 %v2529_v60, %v2512_v24  ;;  %v7470_v54 = vld [vmem:[%s9843_s5 + $0x194] ss:$8 sps:$4 sm:$0xff]   ;;  %v7468_v60 = vld [vmem:[%s9843_s5 + $0x190] ss:$8 sps:$4 sm:$0xff]   ;;  %v7473_v61 = vld [vmem:[%s9843_s5 + $0x1a4] ss:$8 sps:$4 sm:$0xff]  }
 0x400   :  { %v2551_v13 = vadd.f32 %v2525_v2, %v2511_v14  ;;  %v2553_v22 = vadd.f32 %v2533_v16, %v2513_v20  ;;  %v2402_v26 = vpop.f32.mrb[30].mxu0  ;;  %v2473_v32 = vpop.f32.mrb[30].mxu1  ;;  %v7441_v20 = vld [vmem:[%s9843_s5 + $0x100] ss:$8 sps:$4 sm:$0xff]   ;;  %v7476_v2 = vld [vmem:[%s9843_s5 + $0x1b4] ss:$8 sps:$4 sm:$0xff]  }
 0x401   :  { %v2566_v33 = vmul.f32 0.01, %v2550_v8  ;;  %v2568_v34 = vmul.f32 0.01, %v2552_v9  ;;  %vm2558_vm2 = vcmp.ge.f32.partialorder %v2550_v8, 0.0  ;;  %vm2560_vm3 = vcmp.ge.f32.partialorder %v2552_v9, 0.0 }
 0x402   :  { %v2537_v38 = vrot.slane %v2402_v26, %v8792_v44  ;;  %v2545_v46 = vrot.slane %v2473_v32, %v8792_v44  ;;  %v2404_v47 = vpop.f32.mrb[31].mxu0  ;;  %v2475_v51 = vpop.f32.mrb[31].mxu1  ;;  %vm2559_vm4 = vcmp.ge.f32.partialorder %v2551_v13, 0.0  ;;  %v2567_v56 = vmul.f32 0.01, %v2551_v13 }
 0x403   :  { %v2541_v1 = vrot.slane %v2404_v47, %v8792_v44  ;;  %v2549_v3 = vrot.slane %v2475_v51, %v8792_v44  ;;  %vm2561_vm5 = vcmp.ge.f32.partialorder %v2553_v22, 0.0  ;;  %v2569_v6 = vmul.f32 0.01, %v2553_v22  ;;  %v7471_v62 = vld [vmem:[%s9843_s5 + $0x1a0] ss:$8 sps:$4 sm:$0xff]  }
 0x404   :  { %v2554_v23 = vadd.f32 %v2537_v38, %v2514_v18  ;;  %v2556_v30 = vadd.f32 %v2545_v46, %v2516_v21  ;;  %v2574_v31 = vsel %vm2558_vm2, %v2550_v8, %v2566_v33  ;;  %v2576_v35 = vsel %vm2560_vm3, %v2552_v9, %v2568_v34  ;;  %v7453_v18 = vld [vmem:[%s9843_s5 + $0x140] ss:$8 sps:$4 sm:$0xff]   ;;  %v7456_v21 = vld [vmem:[%s9843_s5 + $0x150] ss:$8 sps:$4 sm:$0xff]   ;;  %v7479_v8 = vld [vmem:[%s9843_s5 + $0x1c4] ss:$8 sps:$4 sm:$0xff]  }
 0x405   :  { %v2555_v39 = vadd.f32 %v2541_v1, %v2515_v40  ;;  %v2557_v43 = vadd.f32 %v2549_v3, %v2517_v48  ;;  %v2575_v25 = vsel %vm2559_vm4, %v2551_v13, %v2567_v56  ;;  %v2577_v27 = vsel %vm2561_vm5, %v2553_v22, %v2569_v6  ;;  %v7459_v40 = vld [vmem:[%s9843_s5 + $0x160] ss:$8 sps:$4 sm:$0xff]   ;;  %v7462_v48 = vld [vmem:[%s9843_s5 + $0x170] ss:$8 sps:$4 sm:$0xff]   ;;  %v7482_v13 = vld [vmem:[%s9843_s5 + $0x1d4] ss:$8 sps:$4 sm:$0xff]  }
 0x406   :  { %vm2562_vm6 = vcmp.ge.f32.partialorder %v2554_v23, 0.0  ;;  %v2570_v57 = vmul.f32 0.01, %v2554_v23  ;;  %vm2564_vm7 = vcmp.ge.f32.partialorder %v2556_v30, 0.0  ;;  %v2572_v59 = vmul.f32 0.01, %v2556_v30 }
 0x407   :  { %vm2563_vm8 = vcmp.ge.f32.partialorder %v2555_v39, 0.0  ;;  %v2571_v29 = vmul.f32 0.01, %v2555_v39  ;;  %vm2565_vm9 = vcmp.ge.f32.partialorder %v2557_v43, 0.0  ;;  %v2573_v41 = vmul.f32 0.01, %v2557_v43 }
 0x408   :  { %v2578_v42 = vsel %vm2562_vm6, %v2554_v23, %v2570_v57  ;;  %v2580_v63 = vsel %vm2564_vm7, %v2556_v30, %v2572_v59  ;;  %v7474_v16 = vld [vmem:[%s9843_s5 + $0x1b0] ss:$8 sps:$4 sm:$0xff]   ;;  %v7477_v9 = vld [vmem:[%s9843_s5 + $0x1c0] ss:$8 sps:$4 sm:$0xff]   ;;  %v7485_v26 = vld [vmem:[%s9843_s5 + $0x1e4] ss:$8 sps:$4 sm:$0xff]  }
 0x409   :  { %v2579_v28 = vsel %vm2563_vm8, %v2555_v39, %v2571_v29  ;;  %v2582_v53 = vmax.f32 %v2574_v31, %v2578_v42  ;;  %v2581_v15 = vsel %vm2565_vm9, %v2557_v43, %v2573_v41  ;;  %v8820_v24 = vmax.f32 %v2576_v35, %v2580_v63  ;;  %v7480_v22 = vld [vmem:[%s9843_s5 + $0x1d0] ss:$8 sps:$4 sm:$0xff]   ;;  %v7483_v32 = vld [vmem:[%s9843_s5 + $0x1e0] ss:$8 sps:$4 sm:$0xff]   ;;  %v7488_v33 = vld [vmem:[%s9843_s5 + $0x1f4] ss:$8 sps:$4 sm:$0xff]  }
 0x40a   :  { %v2583_v36 = vmax.f32 %v2575_v25, %v2579_v28  ;;  %v2585_v14 = vmax.f32 %v2577_v27, %v2581_v15  ;;  %v7486_v34 = vld [vmem:[%s9843_s5 + $0x1f0] ss:$8 sps:$4 sm:$0xff]   ;;  %v3073_v46 = vld [vmem:[%s9844_s6 + $0x80] sm:$0xff]  ;;  %v3074_v47 = vld [vmem:[%s9844_s6 + $0x88] sm:$0xff] }
 0x40b   :  { %v2586_v0 = vpack.c.bf16 %v2582_v53, %v2582_v53  ;;  %v2588_v38 = vpack.c.bf16 %v8820_v24, %v8820_v24  ;;  %v8931_v6 = vpack.c.bf16 %v3074_v47, %v3073_v46  ;;  %v3057_v23 = vld [vmem:[%s9844_s6] sm:$0xff]  ;;  %v3058_v30 = vld [vmem:[%s9844_s6 + $0x8] sm:$0xff]  ;;  %v3075_v39 = vld [vmem:[%s9844_s6 + $0x90] sm:$0xff] }
 0x40c   :  { %v2587_v5 = vpack.c.bf16 %v2583_v36, %v2583_v36  ;;  %v2589_v58 = vpack.c.bf16 %v2585_v14, %v2585_v14  ;;  %v3076_v43 = vld [vmem:[%s9844_s6 + $0x98] sm:$0xff]  ;;  %v9916_v57 = vld [vmem:[#allocation10_spill] sm:$0xff]  ;;  %v7098_v59 = vpack.c.bf16 %v3058_v30, %v3057_v23  ;;  %v3059_v41 = vld [vmem:[%s9844_s6 + $0x10] sm:$0xff] }
 0x40d   :  { %v7100_v29 = vpack.c.bf16 %v3076_v43, %v3075_v39  ;;  %v3060_v42 = vld [vmem:[%s9844_s6 + $0x18] sm:$0xff]  ;;  %v3077_v63 = vld [vmem:[%s9844_s6 + $0xa0] sm:$0xff]  ;;  %v3078_v25 = vld [vmem:[%s9844_s6 + $0xa8] sm:$0xff] }
 0x40e   :  { %3006 = vmatprep.mubr.bf16.mxu0 %v2587_v5  ;;  %v7102_v27 = vpack.c.bf16 %v3060_v42, %v3059_v41  ;;  %v7104_v28 = vpack.c.bf16 %v3078_v25, %v3077_v63  ;;  %v3061_v53 = vld [vmem:[%s9844_s6 + $0x20] sm:$0xff]  ;;  %v3062_v15 = vld [vmem:[%s9844_s6 + $0x28] sm:$0xff]  ;;  %v3079_v24 = vld [vmem:[%s9844_s6 + $0xb0] sm:$0xff] }
 0x40f   :  { %3007 = vmatmul.mubr.bf16.vlgmr.msra.gmra.mrb[32].mxu0 %v2586_v0  ;;  %v3080_v36 = vld [vmem:[%s9844_s6 + $0xb8] sm:$0xff]  ;;  %v7106_v14 = vpack.c.bf16 %v3062_v15, %v3061_v53  ;;  %v3568_v42 = vld [vmem:[%s9846_s8] sm:$0xff]  ;;  %v3569_v63 = vld [vmem:[%s9846_s8 + $0x8] sm:$0xff]  ;;  %v7614_v53 = vmov 0.0|0.0  }
 0x410   :  { %3016 = vmatpush1.bf16.msra.mxu0 %v7441_v20  ;;  %3047 = vmatprep.mubr.bf16.mxu0 %v2589_v58  ;;  %v7108_v5 = vpack.c.bf16 %v3080_v36, %v3079_v24  ;;  %v3063_v20 = vld [vmem:[%s9844_s6 + $0x30] sm:$0xff]  ;;  %v3064_v0 = vld [vmem:[%s9844_s6 + $0x38] sm:$0xff]  ;;  %v3082_v58 = vld [vmem:[%s9844_s6 + $0xc8] sm:$0xff] }
 0x411   :  { %3017 = vmatprep.subr.bf16.mxu0 %v7446_v11  ;;  %v3081_v11 = vld [vmem:[%s9844_s6 + $0xc0] sm:$0xff]  ;;  %v3570_v15 = vld [vmem:[%s9846_s8 + $0x10] sm:$0xff]  ;;  %v3571_v24 = vld [vmem:[%s9846_s8 + $0x18] sm:$0xff] }
 0x412   :  { %v7164_v36 = vpack.c.bf16 %v3571_v24, %v3570_v15  ;;  %v3671_v15 = vld [vmem:[%s9847_s9 + $0x70] sm:$0xff]  ;;  %v3672_v24 = vld [vmem:[%s9847_s9 + $0x78] sm:$0xff] }
 0x414   :  { %3018 = vmatpush1.bf16.msra.mxu0 %v7444_v12  ;;  %v7110_v12 = vpack.c.bf16 %v3064_v0, %v3063_v20  ;;  %v3574_v0 = vld [vmem:[%s9846_s8 + $0x30] sm:$0xff] }
 0x415   :  { %3019 = vmatprep.subr.bf16.mxu0 %v7449_v19  ;;  %v7112_v19 = vpack.c.bf16 %v3082_v58, %v3081_v11  ;;  %v3575_v11 = vld [vmem:[%s9846_s8 + $0x38] sm:$0xff] }
 0x416   :  { %v7170_v58 = vpack.c.bf16 %v3575_v11, %v3574_v0  ;;  %v3744_v11 = vld [vmem:[%s9848_s10] sm:$0xff] }
 0x418   :  { %3020 = vmatpush1.bf16.msra.mxu0 %v7447_v4  ;;  %v3065_v4 = vld [vmem:[%s9844_s6 + $0x40] sm:$0xff] }
 0x419   :  { %3021 = vmatprep.subr.bf16.mxu0 %v7452_v37  ;;  %v3066_v37 = vld [vmem:[%s9844_s6 + $0x48] sm:$0xff] }
 0x41c   :  { %3022 = vmatpush1.bf16.msra.mxu0 %v7450_v52  ;;  %v3083_v52 = vld [vmem:[%s9844_s6 + $0xd0] sm:$0xff] }
 0x41d   :  { %3023 = vmatprep.subr.bf16.mxu0 %v7455_v55  ;;  %v3084_v55 = vld [vmem:[%s9844_s6 + $0xd8] sm:$0xff] }
 0x420   :  { %3024 = vmatpush1.bf16.msra.mxu0 %v7453_v18  ;;  %v7114_v18 = vpack.c.bf16 %v3066_v37, %v3065_v4  ;;  %v3578_v37 = vld [vmem:[%s9846_s8 + $0x50] sm:$0xff] }
 0x421   :  { %3025 = vmatprep.subr.bf16.mxu0 %v7458_v7  ;;  %v7116_v7 = vpack.c.bf16 %v3084_v55, %v3083_v52  ;;  %v3579_v52 = vld [vmem:[%s9846_s8 + $0x58] sm:$0xff] }
 0x422   :  { %v7176_v55 = vpack.c.bf16 %v3579_v52, %v3578_v37  ;;  %v3748_v52 = vld [vmem:[%s9848_s10 + $0x20] sm:$0xff] }
 0x424   :  { %3026 = vmatpush1.bf16.msra.mxu0 %v7456_v21  ;;  %v3067_v21 = vld [vmem:[%s9844_s6 + $0x50] sm:$0xff] }
 0x425   :  { %3027 = vmatprep.subr.bf16.mxu0 %v7461_v10  ;;  %v3068_v10 = vld [vmem:[%s9844_s6 + $0x58] sm:$0xff] }
 0x428   :  { %3028 = vmatpush1.bf16.msra.mxu0 %v7459_v40  ;;  %v3085_v40 = vld [vmem:[%s9844_s6 + $0xe0] sm:$0xff] }
 0x429   :  { %3029 = vmatprep.subr.bf16.mxu0 %v7464_v45  ;;  %v3086_v45 = vld [vmem:[%s9844_s6 + $0xe8] sm:$0xff] }
 0x42c   :  { %3030 = vmatpush1.bf16.msra.mxu0 %v7462_v48  ;;  %v7118_v48 = vpack.c.bf16 %v3068_v10, %v3067_v21  ;;  %v3582_v10 = vld [vmem:[%s9846_s8 + $0x70] sm:$0xff] }
 0x42d   :  { %3031 = vmatprep.subr.bf16.mxu0 %v7467_v49  ;;  %v7120_v49 = vpack.c.bf16 %v3086_v45, %v3085_v40  ;;  %v3583_v40 = vld [vmem:[%s9846_s8 + $0x78] sm:$0xff] }
 0x42e   :  { %v7182_v45 = vpack.c.bf16 %v3583_v40, %v3582_v10  ;;  %v3752_v40 = vld [vmem:[%s9848_s10 + $0x40] sm:$0xff] }
 0x430   :  { %3032 = vmatpush1.bf16.msra.mxu0 %v7465_v50  ;;  %v3069_v50 = vld [vmem:[%s9844_s6 + $0x60] sm:$0xff] }
 0x431   :  { %3033 = vmatprep.subr.bf16.mxu0 %v7470_v54  ;;  %v3070_v54 = vld [vmem:[%s9844_s6 + $0x68] sm:$0xff] }
 0x434   :  { %3034 = vmatpush1.bf16.msra.mxu0 %v7468_v60  ;;  %v3087_v60 = vld [vmem:[%s9844_s6 + $0xf0] sm:$0xff] }
 0x435   :  { %3035 = vmatprep.subr.bf16.mxu0 %v7473_v61  ;;  %v3088_v61 = vld [vmem:[%s9844_s6 + $0xf8] sm:$0xff] }
 0x438   :  { %3036 = vmatpush1.bf16.msra.mxu0 %v7471_v62  ;;  %v7122_v62 = vpack.c.bf16 %v3070_v54, %v3069_v50 }
 0x439   :  { %3037 = vmatprep.subr.bf16.mxu0 %v7476_v2  ;;  %v7124_v2 = vpack.c.bf16 %v3088_v61, %v3087_v60 }
 0x43c   :  { %3038 = vmatpush1.bf16.msra.mxu0 %v7474_v16  ;;  %v3071_v16 = vld [vmem:[%s9844_s6 + $0x70] sm:$0xff] }
 0x43d   :  { %3039 = vmatprep.subr.bf16.mxu0 %v7479_v8  ;;  %v3072_v8 = vld [vmem:[%s9844_s6 + $0x78] sm:$0xff] }
 0x440   :  { %3040 = vmatpush1.bf16.msra.mxu0 %v7477_v9  ;;  %v7126_v9 = vpack.c.bf16 %v3072_v8, %v3071_v16 }
 0x441   :  { %3041 = vmatprep.subr.bf16.mxu0 %v7482_v13 }
 0x444   :  { %3042 = vmatpush1.bf16.msra.mxu0 %v7480_v22 }
 0x445   :  { %3043 = vmatprep.subr.bf16.mxu0 %v7485_v26 }
 0x448   :  { %3044 = vmatpush1.bf16.msra.mxu0 %v7483_v32 }
 0x449   :  { %3045 = vmatprep.subr.bf16.mxu0 %v7488_v33  ;;  %v3089_v33 = vld [vmem:[%s9845_s7] sm:$0xff] }
 0x44c   :  { %3046 = vmatpush1.bf16.msra.mxu0 %v7486_v34  ;;  %v3384_v34 = vcombine.high %v3089_v33, %v3089_v33 }
 0x44d   :  { %6750 = vmatprep.subr.mxu0 %v9906_v17 }
 0x44f   :  { %3048 = vmatmul.mubr.bf16.vlgmr.msra.gmra.mrb[32].mxu0 %v2588_v38 }
 0x450   :  { %6752 = vmatprep.mubr.msk.f32.mxu0 %vm7615_vm12, %v9906_v17 }
 0x522   :  { %v8924_v51 = vpop.f32.mrb[32].mxu0 }
 0x523   :  { %v8926_v56 = vpop.f32.mrb[33].mxu0  ;;  %v3161_v31 = vmul.f32 %v8924_v51, %v8924_v51 }
 0x524   :  { %v3162_v1 = vmul.f32 %v8926_v56, %v8926_v56  ;;  %v3053_v3 = vpop.f32.mrb[34].mxu0  ;;  %3090 = vmatprep.subr.mxu1 %v8926_v56 }
 0x525   :  { %v3054_v35 = vpop.f32.mrb[35].mxu0  ;;  %3091 = vmatpush1.msra.mxu1 %v8924_v51 }
 0x526   :  { %5983 = vmatmul.mubr.msk.f32.vlgmr.msra.gmra.mrb[32].mxu1 %vm753_vm1, %v9916_v57  ;;  %3163 = vmatprep.subr.mxu1 %v3162_v1  ;;  %v3374_v1 = vstv %s3056_s25 }
 0x527   :  { %3164 = vmatpush1.msra.mxu1 %v3161_v31  ;;  %3227 = vmatprep.mubr.f32.mxu1 %v9906_v17  ;;  %7574 = vrcp.f32 %v3374_v1 }
 0x528   :  { %7097 = vmatprep.subr.bf16.mxu1 %v8931_v6 }
 0x52a   :  { %5984 = vmatmul.mubr.msk.f32.vlgmr.msra.gmra.mrb[34].mxu1 %vm753_vm1, %v9916_v57 }
 0x52b   :  { %7099 = vmatpush3.bf16.msra.mxu1 %v7098_v59 }
 0x52c   :  { %7101 = vmatprep.subr.bf16.mxu1 %v7100_v29 }
 0x52f   :  { %7103 = vmatpush3.bf16.msra.mxu1 %v7102_v27 }
 0x530   :  { %7105 = vmatprep.subr.bf16.mxu1 %v7104_v28 }
 0x531   :  { %v9041_v3 = vpop.eup %7574 }
 0x533   :  { %7107 = vmatpush3.bf16.msra.mxu1 %v7106_v14 }
 0x534   :  { %7109 = vmatprep.subr.bf16.mxu1 %v7108_v5 }
 0x537   :  { %7111 = vmatpush3.bf16.msra.mxu1 %v7110_v12 }
 0x538   :  { %7113 = vmatprep.subr.bf16.mxu1 %v7112_v19 }
 0x53b   :  { %7115 = vmatpush3.bf16.msra.mxu1 %v7114_v18 }
 0x53c   :  { %7117 = vmatprep.subr.bf16.mxu1 %v7116_v7 }
 0x53f   :  { %7119 = vmatpush3.bf16.msra.mxu1 %v7118_v48 }
 0x540   :  { %7121 = vmatprep.subr.bf16.mxu1 %v7120_v49 }
 0x543   :  { %7123 = vmatpush3.bf16.msra.mxu1 %v7122_v62 }
 0x544   :  { %7125 = vmatprep.subr.bf16.mxu1 %v7124_v2 }
 0x547   :  { %7127 = vmatpush3.bf16.msra.mxu1 %v7126_v9 }
 0x548   :  { %7129 = vmatprep.subr.bf16.mxu1 %v8931_v6 }
 0x5f9   :  { %v3156_v13 = vpop.f32.mrb[32].mxu1 }
 0x5fa   :  { %v3158_v22 = vpop.f32.mrb[33].mxu1 }
 0x5fb   :  { %3298 = vmatprep.mubr.f32.mxu1 %v3158_v22 }
 0x5fc   :  { %3299 = vmatmul.mubr.f32.vlgmr.msra.gmra.mrb[36].mxu1 %v3156_v13 }
 0x5fd   :  { %7131 = vmatpush3.bf16.msra.mxu1 %v7098_v59  ;;  %v3229_v26 = vpop.f32.mrb[34].mxu1 }
 0x5fe   :  { %7133 = vmatprep.subr.bf16.mxu1 %v7100_v29  ;;  %v3231_v32 = vpop.f32.mrb[35].mxu1 }
 0x5ff   :  { %3368 = vmatprep.mubr.f32.mxu1 %v3231_v32 }
 0x601   :  { %7135 = vmatpush3.bf16.msra.mxu1 %v7102_v27 }
 0x602   :  { %7137 = vmatprep.subr.bf16.mxu1 %v7104_v28  ;;  %v7161_v28 = vpack.c.bf16 %v3569_v63, %v3568_v42  ;;  %v3668_v42 = vld [vmem:[%s9847_s9 + $0x58] sm:$0xff] }
 0x605   :  { %7139 = vmatpush3.bf16.msra.mxu1 %v7106_v14  ;;  %v3572_v14 = vld [vmem:[%s9846_s8 + $0x20] sm:$0xff] }
 0x606   :  { %7141 = vmatprep.subr.bf16.mxu1 %v7108_v5  ;;  %v3573_v5 = vld [vmem:[%s9846_s8 + $0x28] sm:$0xff] }
 0x607   :  { %v7167_v20 = vpack.c.bf16 %v3573_v5, %v3572_v14 }
 0x609   :  { %7143 = vmatpush3.bf16.msra.mxu1 %v7110_v12  ;;  %v3576_v12 = vld [vmem:[%s9846_s8 + $0x40] sm:$0xff] }
 0x60a   :  { %7145 = vmatprep.subr.bf16.mxu1 %v7112_v19  ;;  %v3577_v19 = vld [vmem:[%s9846_s8 + $0x48] sm:$0xff] }
 0x60b   :  { %v7173_v4 = vpack.c.bf16 %v3577_v19, %v3576_v12  ;;  %v3746_v19 = vld [vmem:[%s9848_s10 + $0x10] sm:$0xff] }
 0x60d   :  { %7147 = vmatpush3.bf16.msra.mxu1 %v7114_v18  ;;  %v3580_v18 = vld [vmem:[%s9846_s8 + $0x60] sm:$0xff] }
 0x60e   :  { %7149 = vmatprep.subr.bf16.mxu1 %v7116_v7  ;;  %v3581_v7 = vld [vmem:[%s9846_s8 + $0x68] sm:$0xff] }
 0x60f   :  { %v7179_v21 = vpack.c.bf16 %v3581_v7, %v3580_v18  ;;  %v3750_v7 = vld [vmem:[%s9848_s10 + $0x30] sm:$0xff] }
 0x611   :  { %7151 = vmatpush3.bf16.msra.mxu1 %v7118_v48 }
 0x612   :  { %7153 = vmatprep.subr.bf16.mxu1 %v7120_v49 }
 0x615   :  { %7155 = vmatpush3.bf16.msra.mxu1 %v7122_v62 }
 0x616   :  { %7157 = vmatprep.subr.bf16.mxu1 %v7124_v2 }
 0x619   :  { %7159 = vmatpush3.bf16.msra.mxu1 %v7126_v9 }
 0x61a   :  { %5985 = vmatprep.subr.msk.mxu1 %vm3389_vm10, %v3384_v34 }
 0x61c   :  { %3369 = vmatmul.mubr.f32.vlgmr.msra.gmra.mrb[38].mxu1 %v3229_v26  ;;  %v3657_v26 = vld [vmem:[%s9847_s9] sm:$0xff] }
 0x61d   :  { %3458 = vmatprep.mubr.f32.mxu1 %v9906_v17  ;;  %5986 = vmatpush1.msk.msra.mxu1 %vm3389_vm10, %v3089_v33 }
 0x61e   :  { %5988 = vmatprep.subr.msk.mxu1 %vm3389_vm10, %v3384_v34 }
 0x6cf   :  { %v6382_v38 = vpop.f32.mrb[36].mxu1 }
 0x6d0   :  { %v6383_v46 = vpop.f32.mrb[37].mxu1 }
 0x6d1   :  { %v6384_v47 = vadd.f32 %v6383_v46, %v6382_v38  ;;  %v3659_v46 = vld [vmem:[%s9847_s9 + $0x10] sm:$0xff] }
 0x6d3   :  { %v3376_v6 = vmul.f32 %v9041_v3, %v6384_v47  ;;  %v3660_v47 = vld [vmem:[%s9847_s9 + $0x18] sm:$0xff] }
 0x6d4   :  { %v7188_v1 = vpack.c.bf16 %v3660_v47, %v3659_v46  ;;  %v7498_v46 = vld [vmem:[%s9850_s12 + $0x24] ss:$16 sps:$4 sm:$0xff]   ;;  %v7496_v47 = vld [vmem:[%s9850_s12 + $0x20] ss:$16 sps:$4 sm:$0xff]  }
 0x6d5   :  { %v3378_v35 = vmul.f32 %v3376_v6, %v3376_v6  ;;  %v3465_v41 = vsub.f32 0.0, %v3376_v6  ;;  %v3661_v6 = vld [vmem:[%s9847_s9 + $0x20] sm:$0xff] }
 0x6ef   :  { %v6417_v23 = vpop.f32.mrb[38].mxu1 }
 0x6f0   :  { %v6418_v30 = vpop.f32.mrb[39].mxu1 }
 0x6f1   :  { %v6419_v31 = vadd.f32 %v6418_v30, %v6417_v23  ;;  %v3662_v23 = vld [vmem:[%s9847_s9 + $0x28] sm:$0xff] }
 0x6f2   :  { %v7191_v30 = vpack.c.bf16 %v3662_v23, %v3661_v6  ;;  %v7502_v6 = vld [vmem:[%s9850_s12 + $0x40] ss:$16 sps:$4 sm:$0xff]   ;;  %v7510_v23 = vld [vmem:[%s9850_s12 + $0x64] ss:$16 sps:$4 sm:$0xff]  }
 0x6f3   :  { %v3377_v39 = vmul.f32 %v9041_v3, %v6419_v31  ;;  %v3663_v31 = vld [vmem:[%s9847_s9 + $0x30] sm:$0xff] }
 0x6f5   :  { %v3379_v43 = vsub.f32 %v3377_v39, %v3378_v35  ;;  %v3664_v35 = vld [vmem:[%s9847_s9 + $0x38] sm:$0xff] }
 0x6f6   :  { %v7194_v39 = vpack.c.bf16 %v3664_v35, %v3663_v31  ;;  %v7516_v31 = vld [vmem:[%s9850_s12 + $0x84] ss:$16 sps:$4 sm:$0xff]   ;;  %v7514_v35 = vld [vmem:[%s9850_s12 + $0x80] ss:$16 sps:$4 sm:$0xff]  }
 0x6f7   :  { %v3380_v59 = vmax.f32 %v3379_v43, 0.0  ;;  %v3665_v43 = vld [vmem:[%s9847_s9 + $0x40] sm:$0xff] }
 0x6f9   :  { %v3381_v29 = vadd.f32 0.0001, %v3380_v59  ;;  %v3666_v59 = vld [vmem:[%s9847_s9 + $0x48] sm:$0xff] }
 0x6fb   :  { %7576 = vrsqrt.f32 %v3381_v29  ;;  %v7197_v29 = vpack.c.bf16 %v3666_v59, %v3665_v43 }
 0x705   :  { %v7577_v25 = vpop.eup %7576 }
 0x706   :  { %5987 = vmatmul.mubr.msk.f32.vlgmr.msra.gmra.mrb[40].mxu1 %vm3385_vm11, %v7577_v25  ;;  %v3466_v27 = vmul.f32 %v7577_v25, %v3465_v41  ;;  %v3667_v41 = vld [vmem:[%s9847_s9 + $0x50] sm:$0xff]  ;;  %v3669_v25 = vld [vmem:[%s9847_s9 + $0x60] sm:$0xff] }
 0x707   :  { %5989 = vmatpush1.msk.msra.mxu1 %vm3389_vm10, %v3089_v33  ;;  %3534 = vmatprep.mubr.f32.mxu1 %v9906_v17  ;;  %v7200_v63 = vpack.c.bf16 %v3668_v42, %v3667_v41 }
 0x708   :  { %7160 = vmatprep.subr.bf16.mxu1 %v7614_v53 }
 0x70a   :  { %5990 = vmatmul.mubr.msk.f32.vlgmr.msra.gmra.mrb[42].mxu1 %vm3385_vm11, %v3466_v27  ;;  %v3670_v27 = vld [vmem:[%s9847_s9 + $0x68] sm:$0xff] }
 0x70b   :  { %7162 = vmatpush3.bf16.msra.mxu1 %v7161_v28  ;;  %6712 = vmatprep.mubr.msk.f32.mxu1 %vm7615_vm12, %v9906_v17  ;;  %v7203_v28 = vpack.c.bf16 %v3670_v27, %v3669_v25 }
 0x70c   :  { %7163 = vmatprep.subr.bf16.mxu1 %v7614_v53 }
 0x70f   :  { %7165 = vmatpush3.bf16.msra.mxu1 %v7164_v36  ;;  %v7206_v36 = vpack.c.bf16 %v3672_v24, %v3671_v15 }
 0x710   :  { %7166 = vmatprep.subr.bf16.mxu1 %v7614_v53 }
 0x713   :  { %7168 = vmatpush3.bf16.msra.mxu1 %v7167_v20 }
 0x714   :  { %7169 = vmatprep.subr.bf16.mxu1 %v7614_v53 }
 0x717   :  { %7171 = vmatpush3.bf16.msra.mxu1 %v7170_v58  ;;  %v3745_v58 = vld [vmem:[%s9848_s10 + $0x8] sm:$0xff] }
 0x718   :  { %7172 = vmatprep.subr.bf16.mxu1 %v7614_v53  ;;  %v7209_v12 = vpack.c.bf16 %v3745_v58, %v3744_v11  ;;  %v7501_v11 = vld [vmem:[%s9850_s12 + $0x2c] ss:$16 sps:$4 sm:$0xff]   ;;  %v7499_v58 = vld [vmem:[%s9850_s12 + $0x28] ss:$16 sps:$4 sm:$0xff]  }
 0x71b   :  { %7174 = vmatpush3.bf16.msra.mxu1 %v7173_v4  ;;  %v3747_v4 = vld [vmem:[%s9848_s10 + $0x18] sm:$0xff] }
 0x71c   :  { %7175 = vmatprep.subr.bf16.mxu1 %v7614_v53  ;;  %v7212_v37 = vpack.c.bf16 %v3747_v4, %v3746_v19  ;;  %v7505_v19 = vld [vmem:[%s9850_s12 + $0x48] ss:$16 sps:$4 sm:$0xff]   ;;  %v7513_v4 = vld [vmem:[%s9850_s12 + $0x6c] ss:$16 sps:$4 sm:$0xff]  }
 0x71f   :  { %7177 = vmatpush3.bf16.msra.mxu1 %v7176_v55  ;;  %v3749_v55 = vld [vmem:[%s9848_s10 + $0x28] sm:$0xff] }
 0x720   :  { %7178 = vmatprep.subr.bf16.mxu1 %v7614_v53  ;;  %v7215_v18 = vpack.c.bf16 %v3749_v55, %v3748_v52  ;;  %v7519_v52 = vld [vmem:[%s9850_s12 + $0x8c] ss:$16 sps:$4 sm:$0xff]   ;;  %v7517_v55 = vld [vmem:[%s9850_s12 + $0x88] ss:$16 sps:$4 sm:$0xff]  }
 0x723   :  { %7180 = vmatpush3.bf16.msra.mxu1 %v7179_v21  ;;  %v3751_v21 = vld [vmem:[%s9848_s10 + $0x38] sm:$0xff] }
 0x724   :  { %7181 = vmatprep.subr.bf16.mxu1 %v7614_v53  ;;  %v7218_v10 = vpack.c.bf16 %v3751_v21, %v3750_v7  ;;  %v7525_v7 = vld [vmem:[%s9850_s12 + $0xac] ss:$16 sps:$4 sm:$0xff]   ;;  %v7520_v21 = vld [vmem:[%s9850_s12 + $0xa0] ss:$16 sps:$4 sm:$0xff]  }
 0x727   :  { %7183 = vmatpush3.bf16.msra.mxu1 %v7182_v45  ;;  %v3753_v45 = vld [vmem:[%s9848_s10 + $0x48] sm:$0xff] }
 0x728   :  { %7184 = vmatprep.subr.bf16.mxu1 %v7614_v53 }
 0x7d9   :  { %v3460_v48 = vpop.f32.mrb[40].mxu1 }
 0x7da   :  { %v3544_v49 = vrot.slane %v3460_v48, %v8792_v44  ;;  %v3462_v50 = vpop.f32.mrb[41].mxu1  ;;  %v7221_v48 = vpack.c.bf16 %v3753_v45, %v3752_v40  ;;  %v7528_v40 = vld [vmem:[%s9850_s12 + $0xc4] ss:$16 sps:$4 sm:$0xff]   ;;  %v7531_v45 = vld [vmem:[%s9850_s12 + $0xcc] ss:$16 sps:$4 sm:$0xff]  }
 0x7db   :  { %v3548_v54 = vrot.slane %v3462_v50, %v8792_v44  ;;  %v3755_v50 = vld [vmem:[%s9848_s10 + $0x58] sm:$0xff] }
 0x7dc   :  { %v3549_v60 = vmul.f32 %v3544_v49, %v8924_v51  ;;  %v3658_v51 = vld [vmem:[%s9847_s9 + $0x8] sm:$0xff]  ;;  %v3754_v49 = vld [vmem:[%s9848_s10 + $0x50] sm:$0xff] }
 0x7dd   :  { %v3550_v61 = vmul.f32 %v3548_v54, %v8926_v56  ;;  %v3536_v62 = vpop.f32.mrb[42].mxu1  ;;  %v7185_v34 = vpack.c.bf16 %v3658_v51, %v3657_v26  ;;  %v7224_v54 = vpack.c.bf16 %v3755_v50, %v3754_v49  ;;  %v7529_v49 = vld [vmem:[%s9850_s12 + $0xc8] ss:$16 sps:$4 sm:$0xff]   ;;  %v7534_v50 = vld [vmem:[%s9850_s12 + $0xe4] ss:$16 sps:$4 sm:$0xff]  }
 0x7de   :  { %v3554_v2 = vrot.slane %v3536_v62, %v8792_v44  ;;  %v3538_v16 = vpop.f32.mrb[43].mxu1 }
 0x7df   :  { %v3558_v8 = vrot.slane %v3538_v16, %v8792_v44  ;;  %v3759_v16 = vld [vmem:[%s9848_s10 + $0x78] sm:$0xff] }
 0x7e0   :  { %v3559_v9 = vadd.f32 %v3554_v2, %v3549_v60  ;;  %v3756_v60 = vld [vmem:[%s9848_s10 + $0x60] sm:$0xff]  ;;  %v3758_v2 = vld [vmem:[%s9848_s10 + $0x70] sm:$0xff] }
 0x7e1   :  { %v3560_v13 = vadd.f32 %v3558_v8, %v3550_v61  ;;  %v3757_v61 = vld [vmem:[%s9848_s10 + $0x68] sm:$0xff]  ;;  %v7230_v8 = vpack.c.bf16 %v3759_v16, %v3758_v2 }
 0x7e2   :  { %vm3561_vm13 = vcmp.ge.f32.partialorder %v3559_v9, 0.0  ;;  %v3563_v22 = vmul.f32 0.01, %v3559_v9  ;;  %v7227_v62 = vpack.c.bf16 %v3757_v61, %v3756_v60  ;;  %v7532_v60 = vld [vmem:[%s9850_s12 + $0xe0] ss:$16 sps:$4 sm:$0xff]  }
 0x7e3   :  { %vm3562_vm14 = vcmp.ge.f32.partialorder %v3560_v13, 0.0  ;;  %v3564_v56 = vmul.f32 0.01, %v3560_v13  ;;  %v7535_v61 = vld [vmem:[%s9850_s12 + $0xe8] ss:$16 sps:$4 sm:$0xff]  }
 0x7e4   :  { %v3565_v32 = vsel %vm3561_vm13, %v3559_v9, %v3563_v22 }
 0x7e5   :  { %v3566_v33 = vsel %vm3562_vm14, %v3560_v13, %v3564_v56 }
 0x7e6   :  { %v3567_v38 = vmax.f32 %v3565_v32, %v3566_v33  ;;  %v9917_v33 = vmov 0  }
 0x7e8   :  { %6713 = vmatmul.mubr.f32.vlgmr.msra.gmra.mrb[44].mxu1 %v3567_v38  ;;  %v7492_v38 = vld [vmem:[%s9850_s12 + $0x4] ss:$16 sps:$4 sm:$0xff]  }
 0x7e9   :  { %7186 = vmatpush3.bf16.msra.mxu1 %v7185_v34  ;;  %6747 = vmatprep.mubr.msk.f32.mxu1 %vm7615_vm12, %v9906_v17  ;;  %v3760_v34 = vld [vmem:[%s9849_s11] sm:$0xf] }
 0x7ea   :  { %7187 = vmatprep.subr.bf16.mxu1 %v7614_v53 }
 0x7ed   :  { %7189 = vmatpush3.bf16.msra.mxu1 %v7188_v1  ;;  %v7504_v1 = vld [vmem:[%s9850_s12 + $0x44] ss:$16 sps:$4 sm:$0xff]  }
 0x7ee   :  { %7190 = vmatprep.subr.bf16.mxu1 %v7614_v53 }
 0x7f1   :  { %7192 = vmatpush3.bf16.msra.mxu1 %v7191_v30  ;;  %v7508_v30 = vld [vmem:[%s9850_s12 + $0x60] ss:$16 sps:$4 sm:$0xff]  }
 0x7f2   :  { %7193 = vmatprep.subr.bf16.mxu1 %v7614_v53 }
 0x7f5   :  { %7195 = vmatpush3.bf16.msra.mxu1 %v7194_v39  ;;  %v4042_v39 = vstv %s3743_s3 }
 0x7f6   :  { %7196 = vmatprep.subr.bf16.mxu1 %v7614_v53  ;;  %7578 = vrcp.f32 %v4042_v39  ;;  %v4490_v39 = vld [vmem:[%s9851_s13] sm:$0xff] }
 0x7f9   :  { %7198 = vmatpush3.bf16.msra.mxu1 %v7197_v29 }
 0x7fa   :  { %7199 = vmatprep.subr.bf16.mxu1 %v7614_v53 }
 0x7fd   :  { %7201 = vmatpush3.bf16.msra.mxu1 %v7200_v63 }
 0x7fe   :  { %7202 = vmatprep.subr.bf16.mxu1 %v7614_v53 }
 0x800   :  { %v7579_v43 = vpop.eup %7578 }
 0x801   :  { %7204 = vmatpush3.bf16.msra.mxu1 %v7203_v28 }
 0x802   :  { %7205 = vmatprep.subr.bf16.mxu1 %v7614_v53 }
 0x805   :  { %7207 = vmatpush3.bf16.msra.mxu1 %v7206_v36 }
 0x806   :  { %7232 = vmatprep.subr.bf16.mxu1 %v7614_v53 }
 0x8bb   :  { %v3650_v14 = vpop.f32.mrb[44].mxu1 }
 0x8bc   :  { %vm3654_vm15 = vcmp.ge.f32.partialorder %v3650_v14, 0.0  ;;  %v3655_v5 = vmul.f32 0.01, %v3650_v14  ;;  %v6714_v20 = vpop.f32.mrb[45].mxu1 }
 0x8be   :  { %v3656_v0 = vsel %vm3654_vm15, %v3650_v14, %v3655_v5  ;;  %v7495_v14 = vld [vmem:[%s9850_s12 + $0xc] ss:$16 sps:$4 sm:$0xff]  }
 0x8bf   :  { %6748 = vmatmul.mubr.f32.vlgmr.msra.gmra.mrb[46].mxu1 %v3656_v0  ;;  %v7493_v0 = vld [vmem:[%s9850_s12 + $0x8] ss:$16 sps:$4 sm:$0xff]  }
 0x8c0   :  { %6827 = vmatprep.mubr.msk.f32.mxu1 %vm7615_vm12, %v9906_v17  ;;  %7234 = vmatpush3.bf16.msra.mxu1 %v7209_v12 }
 0x8c1   :  { %7235 = vmatprep.subr.bf16.mxu1 %v7614_v53 }
 0x8c4   :  { %7237 = vmatpush3.bf16.msra.mxu1 %v7212_v37 }
 0x8c5   :  { %7238 = vmatprep.subr.bf16.mxu1 %v7614_v53 }
 0x8c8   :  { %7240 = vmatpush3.bf16.msra.mxu1 %v7215_v18 }
 0x8c9   :  { %7241 = vmatprep.subr.bf16.mxu1 %v7614_v53 }
 0x8cc   :  { %7243 = vmatpush3.bf16.msra.mxu1 %v7218_v10 }
 0x8cd   :  { %7244 = vmatprep.subr.bf16.mxu1 %v7614_v53 }
 0x8d0   :  { %7246 = vmatpush3.bf16.msra.mxu1 %v7221_v48 }
 0x8d1   :  { %7247 = vmatprep.subr.bf16.mxu1 %v7614_v53 }
 0x8d4   :  { %7249 = vmatpush3.bf16.msra.mxu1 %v7224_v54 }
 0x8d5   :  { %7250 = vmatprep.subr.bf16.mxu1 %v7614_v53 }
 0x8d8   :  { %7252 = vmatpush3.bf16.msra.mxu1 %v7227_v62 }
 0x8d9   :  { %7253 = vmatprep.subr.bf16.mxu1 %v7614_v53 }
 0x8dc   :  { %7255 = vmatpush3.bf16.msra.mxu1 %v7230_v8 }
 0x8dd   :  { %4408 = vmatprep.subr.bf16.mxu1 %v7492_v38 }
 0x992   :  { %v9231_v9 = vpop.f32.mrb[46].mxu1 }
 0x993   :  { %v3831_v13 = vmul.f32 %v9231_v9, %v9231_v9  ;;  %v6749_v22 = vpop.f32.mrb[47].mxu1  ;;  %6751 = vmatpush3.msra.mxu0 %v9231_v9 }
 0x994   :  { %6753 = vmatmul.mubr.msk.f32.vlgmr.msra.gmra.mrb[36].mxu0 %vm753_vm1, %v9916_v57  ;;  %6755 = vmatprep.subr.mxu0 %v9906_v17 }
 0x995   :  { %6756 = vmatpush3.msra.mxu0 %v3831_v13  ;;  %6757 = vmatprep.mubr.msk.f32.mxu0 %vm7615_vm12, %v9906_v17 }
 0x996   :  { %7208 = vmatprep.subr.bf16.mxu0 %v7614_v53 }
 0x998   :  { %6758 = vmatmul.mubr.msk.f32.vlgmr.msra.gmra.mrb[38].mxu0 %vm753_vm1, %v9916_v57 }
 0x999   :  { %7210 = vmatpush3.bf16.msra.mxu0 %v7209_v12  ;;  %6792 = vmatprep.mubr.msk.f32.mxu0 %vm7615_vm12, %v9906_v17  ;;  %v7507_v12 = vld [vmem:[%s9850_s12 + $0x4c] ss:$16 sps:$4 sm:$0xff]  }
 0x99a   :  { %7211 = vmatprep.subr.bf16.mxu0 %v7614_v53 }
 0x99d   :  { %7213 = vmatpush3.bf16.msra.mxu0 %v7212_v37  ;;  %v7511_v37 = vld [vmem:[%s9850_s12 + $0x68] ss:$16 sps:$4 sm:$0xff]  }
 0x99e   :  { %7214 = vmatprep.subr.bf16.mxu0 %v7614_v53 }
 0x9a1   :  { %7216 = vmatpush3.bf16.msra.mxu0 %v7215_v18  ;;  %v7522_v18 = vld [vmem:[%s9850_s12 + $0xa4] ss:$16 sps:$4 sm:$0xff]  }
 0x9a2   :  { %7217 = vmatprep.subr.bf16.mxu0 %v7614_v53 }
 0x9a5   :  { %7219 = vmatpush3.bf16.msra.mxu0 %v7218_v10  ;;  %v7523_v10 = vld [vmem:[%s9850_s12 + $0xa8] ss:$16 sps:$4 sm:$0xff]  }
 0x9a6   :  { %7220 = vmatprep.subr.bf16.mxu0 %v7614_v53 }
 0x9a9   :  { %7222 = vmatpush3.bf16.msra.mxu0 %v7221_v48  ;;  %v7526_v48 = vld [vmem:[%s9850_s12 + $0xc0] ss:$16 sps:$4 sm:$0xff]  }
 0x9aa   :  { %7223 = vmatprep.subr.bf16.mxu0 %v7614_v53 }
 0x9ad   :  { %7225 = vmatpush3.bf16.msra.mxu0 %v7224_v54  ;;  %v7537_v54 = vld [vmem:[%s9850_s12 + $0xec] ss:$16 sps:$4 sm:$0xff]  }
 0x9ae   :  { %7226 = vmatprep.subr.bf16.mxu0 %v7614_v53 }
 0x9b1   :  { %7228 = vmatpush3.bf16.msra.mxu0 %v7227_v62 }
 0x9b2   :  { %7229 = vmatprep.subr.bf16.mxu0 %v7614_v53  ;;  %v7490_v53 = vld [vmem:[%s9850_s12] ss:$16 sps:$4 sm:$0xff]  }
 0x9b5   :  { %7231 = vmatpush3.bf16.msra.mxu0 %v7230_v8 }
 0x9b6   :  { %6830 = vmatprep.subr.mxu0 %v9906_v17 }
 0xa67   :  { %v3827_v26 = vpop.f32.mrb[36].mxu0 }
 0xa68   :  { %v6754_v51 = vpop.f32.mrb[37].mxu0  ;;  %6793 = vmatmul.mubr.f32.vlgmr.msra.gmra.mrb[40].mxu0 %v3827_v26 }
 0xa69   :  { %6832 = vmatprep.mubr.msk.f32.mxu0 %vm7615_vm12, %v9906_v17  ;;  %6831 = vmatpush3.msk.msra.mxu0 %vm3389_vm10, %v3760_v34 }
 0xa6a   :  { %6835 = vmatprep.subr.mxu0 %v9906_v17 }
 0xa6b   :  { %v3898_v56 = vpop.f32.mrb[38].mxu0 }
 0xa6c   :  { %v6759_v32 = vpop.f32.mrb[39].mxu0  ;;  %6828 = vmatmul.mubr.f32.vlgmr.msra.gmra.mrb[48].mxu1 %v3898_v56 }
 0xa6d   :  { %4440 = vmatprep.mubr.bf16.mxu1 %v9917_v33  ;;  %4409 = vmatpush1.bf16.msra.mxu1 %v7490_v53 }
 0xa6e   :  { %4410 = vmatprep.subr.bf16.mxu1 %v7498_v46  ;;  %v4506_v46 = vld [vmem:[%s9851_s13 + $0x80] sm:$0xff] }
 0xa71   :  { %4411 = vmatpush1.bf16.msra.mxu1 %v7496_v47  ;;  %v4507_v47 = vld [vmem:[%s9851_s13 + $0x88] sm:$0xff] }
 0xa72   :  { %4412 = vmatprep.subr.bf16.mxu1 %v7504_v1  ;;  %v4538_v1 = vld [vmem:[%s9851_s13 + $0x180] sm:$0xff] }
 0xa75   :  { %4413 = vmatpush1.bf16.msra.mxu1 %v7502_v6 }
 0xa76   :  { %4414 = vmatprep.subr.bf16.mxu1 %v7510_v23 }
 0xa79   :  { %4415 = vmatpush1.bf16.msra.mxu1 %v7508_v30 }
 0xa7a   :  { %4416 = vmatprep.subr.bf16.mxu1 %v7516_v31 }
 0xa7d   :  { %4417 = vmatpush1.bf16.msra.mxu1 %v7514_v35  ;;  %v4539_v35 = vld [vmem:[%s9851_s13 + $0x188] sm:$0xff] }
 0xa7e   :  { %4418 = vmatprep.subr.bf16.mxu1 %v7522_v18  ;;  %v4543_v18 = vld [vmem:[%s9851_s13 + $0x1a8] sm:$0xff] }
 0xa81   :  { %4419 = vmatpush1.bf16.msra.mxu1 %v7520_v21  ;;  %v4494_v21 = vld [vmem:[%s9851_s13 + $0x20] sm:$0xff] }
 0xa82   :  { %4420 = vmatprep.subr.bf16.mxu1 %v7528_v40 }
 0xa85   :  { %4421 = vmatpush1.bf16.msra.mxu1 %v7526_v48  ;;  %v4526_v48 = vld [vmem:[%s9851_s13 + $0x120] sm:$0xff] }
 0xa86   :  { %4422 = vmatprep.subr.bf16.mxu1 %v7534_v50  ;;  %v4512_v50 = vld [vmem:[%s9851_s13 + $0xb0] sm:$0xff] }
 0xa89   :  { %4423 = vmatpush1.bf16.msra.mxu1 %v7532_v60  ;;  %v4544_v60 = vld [vmem:[%s9851_s13 + $0x1b0] sm:$0xff] }
 0xb3b   :  { %v3968_v59 = vpop.f32.mrb[40].mxu0 }
 0xb3c   :  { %v4044_v29 = vmul.f32 %v7579_v43, %v3968_v59  ;;  %v6794_v41 = vpop.f32.mrb[41].mxu0 }
 0xb3d   :  { %v4522_v41 = vld [vmem:[%s9851_s13 + $0x100] sm:$0xff] }
 0xb3e   :  { %v4046_v63 = vmul.f32 %v4044_v29, %v4044_v29  ;;  %v4127_v36 = vsub.f32 0.0, %v4044_v29 }
 0xb3f   :  { %v4038_v42 = vpop.f32.mrb[48].mxu1 }
 0xb40   :  { %v4045_v25 = vmul.f32 %v7579_v43, %v4038_v42  ;;  %v6829_v27 = vpop.f32.mrb[49].mxu1  ;;  %v4491_v43 = vld [vmem:[%s9851_s13 + $0x8] sm:$0xff] }
 0xb41   :  { %v4523_v42 = vld [vmem:[%s9851_s13 + $0x108] sm:$0xff] }
 0xb42   :  { %v4047_v28 = vsub.f32 %v4045_v25, %v4046_v63  ;;  %v4508_v63 = vld [vmem:[%s9851_s13 + $0x90] sm:$0xff] }
 0xb44   :  { %v4048_v15 = vmax.f32 %v4047_v28, 0.0  ;;  %v4509_v28 = vld [vmem:[%s9851_s13 + $0x98] sm:$0xff] }
 0xb46   :  { %v4049_v24 = vadd.f32 0.0001, %v4048_v15  ;;  %v4540_v15 = vld [vmem:[%s9851_s13 + $0x190] sm:$0xff] }
 0xb48   :  { %7580 = vrsqrt.f32 %v4049_v24  ;;  %v4541_v24 = vld [vmem:[%s9851_s13 + $0x198] sm:$0xff] }
 0xb52   :  { %v7581_v5 = vpop.eup %7580 }
 0xb53   :  { %6833 = vmatmul.mubr.msk.f32.vlgmr.msra.gmra.mrb[42].mxu0 %vm3385_vm11, %v7581_v5  ;;  %v4128_v20 = vmul.f32 %v7581_v5, %v4127_v36  ;;  %v9430_v36 = vpack.c.bf16 %v4507_v47, %v4506_v46  ;;  %v9434_v5 = vpack.c.bf16 %v4491_v43, %v4490_v39  ;;  %v4547_v46 = vld [vmem:[%s9851_s13 + $0x1c8] sm:$0xff]  ;;  %v4516_v43 = vld [vmem:[%s9851_s13 + $0xd0] sm:$0xff] }
 0xb54   :  { %6836 = vmatpush3.msk.msra.mxu0 %vm3389_vm10, %v3760_v34  ;;  %6837 = vmatprep.mubr.msk.f32.mxu0 %vm7615_vm12, %v9906_v17  ;;  %v4531_v39 = vld [vmem:[%s9851_s13 + $0x148] sm:$0xff] }
 0xb55   :  { %4449 = vmatprep.subr.bf16.mxu0 %v7495_v14  ;;  %v9432_v14 = vpack.c.bf16 %v4539_v35, %v4538_v1  ;;  %v4530_v35 = vld [vmem:[%s9851_s13 + $0x140] sm:$0xff] }
 0xb57   :  { %6838 = vmatmul.mubr.msk.f32.vlgmr.msra.gmra.mrb[44].mxu0 %vm3385_vm11, %v4128_v20  ;;  %v9436_v20 = vpack.c.bf16 %v4523_v42, %v4522_v41  ;;  %v4549_v41 = vld [vmem:[%s9851_s13 + $0x1d8] sm:$0xff] }
 0xb58   :  { %4450 = vmatpush1.bf16.msra.mxu0 %v7493_v0  ;;  %4481 = vmatprep.mubr.bf16.mxu0 %v9917_v33  ;;  %v4492_v0 = vld [vmem:[%s9851_s13 + $0x10] sm:$0xff] }
 0xb59   :  { %4451 = vmatprep.subr.bf16.mxu0 %v7501_v11  ;;  %v4493_v11 = vld [vmem:[%s9851_s13 + $0x18] sm:$0xff] }
 0xb5c   :  { %4452 = vmatpush1.bf16.msra.mxu0 %v7499_v58  ;;  %v9446_v58 = vpack.c.bf16 %v4509_v28, %v4508_v63  ;;  %v9586_v63 = vpack.c.bf16 %v4531_v39, %v4530_v35 }
 0xb5d   :  { %4453 = vmatprep.subr.bf16.mxu0 %v7507_v12  ;;  %v9448_v12 = vpack.c.bf16 %v4541_v24, %v4540_v15  ;;  %v4532_v24 = vld [vmem:[%s9851_s13 + $0x150] sm:$0xff] }
 0xb60   :  { %4454 = vmatpush1.bf16.msra.mxu0 %v7505_v19  ;;  %v4524_v19 = vld [vmem:[%s9851_s13 + $0x110] sm:$0xff] }
 0xb61   :  { %4455 = vmatprep.subr.bf16.mxu0 %v7513_v4  ;;  %v4525_v4 = vld [vmem:[%s9851_s13 + $0x118] sm:$0xff] }
 0xb64   :  { %4456 = vmatpush1.bf16.msra.mxu0 %v7511_v37  ;;  %v4510_v37 = vld [vmem:[%s9851_s13 + $0xa0] sm:$0xff] }
 0xb65   :  { %4457 = vmatprep.subr.bf16.mxu0 %v7519_v52  ;;  %v4511_v52 = vld [vmem:[%s9851_s13 + $0xa8] sm:$0xff] }
 0xb66   :  { %v9488_v40 = vpack.c.bf16 %v4511_v52, %v4510_v37  ;;  %v4551_v37 = vld [vmem:[%s9851_s13 + $0x1e8] sm:$0xff] }
 0xb68   :  { %4458 = vmatpush1.bf16.msra.mxu0 %v7517_v55  ;;  %v4542_v55 = vld [vmem:[%s9851_s13 + $0x1a0] sm:$0xff] }
 0xb69   :  { %4459 = vmatprep.subr.bf16.mxu0 %v7525_v7  ;;  %v9478_v7 = vpack.c.bf16 %v4525_v4, %v4524_v19  ;;  %v4519_v19 = vld [vmem:[%s9851_s13 + $0xe8] sm:$0xff]  ;;  %v4550_v4 = vld [vmem:[%s9851_s13 + $0x1e0] sm:$0xff] }
 0xb6c   :  { %4460 = vmatpush1.bf16.msra.mxu0 %v7523_v10  ;;  %v4495_v10 = vld [vmem:[%s9851_s13 + $0x28] sm:$0xff] }
 0xb6d   :  { %4461 = vmatprep.subr.bf16.mxu0 %v7531_v45  ;;  %v9490_v45 = vpack.c.bf16 %v4543_v18, %v4542_v55  ;;  %v4502_v18 = vld [vmem:[%s9851_s13 + $0x60] sm:$0xff] }
 0xb70   :  { %4462 = vmatpush1.bf16.msra.mxu0 %v7529_v49  ;;  %v4527_v49 = vld [vmem:[%s9851_s13 + $0x128] sm:$0xff] }
 0xb71   :  { %4463 = vmatprep.subr.bf16.mxu0 %v7537_v54  ;;  %v4513_v54 = vld [vmem:[%s9851_s13 + $0xb8] sm:$0xff] }
 0xb74   :  { %4464 = vmatpush1.bf16.msra.mxu0 %v7535_v61  ;;  %v4545_v61 = vld [vmem:[%s9851_s13 + $0x1b8] sm:$0xff] }
 0xc26   :  { %v4123_v62 = vpop.f32.mrb[42].mxu0 }
 0xc27   :  { %v4205_v2 = vrot.slane %v4123_v62, %v8792_v44  ;;  %v6834_v16 = vpop.f32.mrb[43].mxu0  ;;  %v9512_v62 = vpack.c.bf16 %v4495_v10, %v4494_v21  ;;  %v4503_v21 = vld [vmem:[%s9851_s13 + $0x68] sm:$0xff] }
 0xc28   :  { %v4496_v16 = vld [vmem:[%s9851_s13 + $0x30] sm:$0xff] }
 0xc29   :  { %v4206_v8 = vmul.f32 %v4205_v2, %v9231_v9  ;;  %v9514_v2 = vpack.c.bf16 %v4527_v49, %v4526_v48  ;;  %v9634_v48 = vpack.c.bf16 %v4551_v37, %v4550_v4  ;;  %v4534_v49 = vld [vmem:[%s9851_s13 + $0x160] sm:$0xff] }
 0xc2a   :  { %v4198_v13 = vpop.f32.mrb[44].mxu0  ;;  %v7538_v37 = vld [vmem:[%s9853_s15 + $0x40] sm:$0xff]  }
 0xc2b   :  { %v4210_v22 = vrot.slane %v4198_v13, %v8792_v44  ;;  %v6839_v26 = vpop.f32.mrb[45].mxu0  ;;  %v9524_v13 = vpack.c.bf16 %v4513_v54, %v4512_v50  ;;  %v4535_v50 = vld [vmem:[%s9851_s13 + $0x168] sm:$0xff]  ;;  %v4520_v54 = vld [vmem:[%s9851_s13 + $0xf0] sm:$0xff] }
 0xc2c   :  { %v4528_v26 = vld [vmem:[%s9851_s13 + $0x130] sm:$0xff] }
 0xc2d   :  { %v4211_v51 = vadd.f32 %v4210_v22, %v4206_v8  ;;  %v4497_v8 = vld [vmem:[%s9851_s13 + $0x38] sm:$0xff]  ;;  %v9526_v22 = vpack.c.bf16 %v4545_v61, %v4544_v60  ;;  %v4552_v61 = vld [vmem:[%s9851_s13 + $0x1f0] sm:$0xff] }
 0xc2e   :  { %v9548_v47 = vpack.c.bf16 %v4497_v8, %v4496_v16  ;;  %v4521_v60 = vld [vmem:[%s9851_s13 + $0xf8] sm:$0xff]  ;;  %v7282_v8 = vpack.c.bf16 %v4503_v21, %v4502_v18  ;;  %v7541_v18 = vld [vmem:[%s9853_s15 + $0x80] sm:$0xff]   ;;  %v7542_v21 = vld [vmem:[%s9853_s15 + $0x48] sm:$0xff]  }
 0xc2f   :  { %vm4212_vm0 = vcmp.ge.f32.partialorder %v4211_v51, 0.0  ;;  %v4213_v56 = vmul.f32 0.01, %v4211_v51  ;;  %v4553_v16 = vld [vmem:[%s9851_s13 + $0x1f8] sm:$0xff] }
 0xc31   :  { %v4214_v32 = vsel %vm4212_vm0, %v4211_v51, %v4213_v56  ;;  %v4529_v51 = vld [vmem:[%s9851_s13 + $0x138] sm:$0xff]  ;;  %v4514_v56 = vld [vmem:[%s9851_s13 + $0xc0] sm:$0xff] }
 0xc32   :  { %v4215_v33 = vpack.c.bf16 %v4214_v32, %v4214_v32  ;;  %v4515_v32 = vld [vmem:[%s9851_s13 + $0xc8] sm:$0xff]  ;;  %v9550_v1 = vpack.c.bf16 %v4529_v51, %v4528_v26  ;;  %v7314_v26 = vpack.c.bf16 %v4535_v50, %v4534_v49  ;;  %v4504_v51 = vld [vmem:[%s9851_s13 + $0x70] sm:$0xff] }
 0xc33   :  { %v7546_v49 = vld [vmem:[%s9853_s15 + $0x50] sm:$0xff]  }
 0xc34   :  { %4441 = vmatmul.mubr.bf16.vlgmr.msra.gmra.mrb[52].mxu1 %v4215_v33  ;;  %4482 = vmatmul.mubr.bf16.vlgmr.msra.gmra.mrb[48].mxu0 %v4215_v33  ;;  %v4546_v33 = vld [vmem:[%s9851_s13 + $0x1c0] sm:$0xff]  ;;  %v7547_v50 = vld [vmem:[%s9853_s15 + $0xd0] sm:$0xff]  }
 0xc35   :  { %4622 = vmatprep.mubr.f32.mxu1 %v9906_v17  ;;  %4693 = vmatprep.mubr.f32.mxu0 %v9906_v17 }
 0xd07   :  { %v9370_v34 = vpop.f32.mrb[52].mxu1  ;;  %v9372_v53 = vpop.f32.mrb[48].mxu0 }
 0xd08   :  { %v9374_v9 = vpop.f32.mrb[53].mxu1  ;;  %v9376_v38 = vpop.f32.mrb[49].mxu0  ;;  %v4700_v25 = vmul.f32 %v9370_v34, %v9370_v34  ;;  %v4702_v27 = vmul.f32 %v9372_v53, %v9372_v53 }
 0xd09   :  { %v4701_v6 = vmul.f32 %v9374_v9, %v9374_v9  ;;  %v4703_v23 = vmul.f32 %v9376_v38, %v9376_v38  ;;  %v4446_v30 = vpop.f32.mrb[54].mxu1  ;;  %v4487_v31 = vpop.f32.mrb[50].mxu0  ;;  %4558 = vmatprep.subr.mxu1 %v9374_v9  ;;  %4629 = vmatprep.subr.mxu0 %v9376_v38 }
 0xd0a   :  { %v4447_v59 = vpop.f32.mrb[55].mxu1  ;;  %v4488_v29 = vpop.f32.mrb[51].mxu0  ;;  %4559 = vmatpush1.msra.mxu1 %v9370_v34  ;;  %4630 = vmatpush1.msra.mxu0 %v9372_v53  ;;  %v9560_v30 = vpack.c.bf16 %v4515_v32, %v4514_v56  ;;  %v9562_v31 = vpack.c.bf16 %v4547_v46, %v4546_v33  ;;  %v7284_v56 = vpack.c.bf16 %v4521_v60, %v4520_v54  ;;  %v4505_v33 = vld [vmem:[%s9851_s13 + $0x78] sm:$0xff]  ;;  %v4536_v46 = vld [vmem:[%s9851_s13 + $0x170] sm:$0xff] }
 0xd0b   :  { %6029 = vmatmul.mubr.msk.f32.vlgmr.msra.gmra.mrb[50].mxu1 %vm753_vm1, %v9916_v57  ;;  %6030 = vmatmul.mubr.msk.f32.vlgmr.msra.gmra.mrb[46].mxu0 %vm753_vm1, %v9916_v57  ;;  %v4517_v59 = vld [vmem:[%s9851_s13 + $0xd8] sm:$0xff]  ;;  %v4548_v29 = vld [vmem:[%s9851_s13 + $0x1d0] sm:$0xff]  ;;  %v7316_v32 = vpack.c.bf16 %v4553_v16, %v4552_v61 }
 0xd0c   :  { %4704 = vmatprep.subr.mxu1 %v4701_v6  ;;  %4775 = vmatprep.subr.mxu0 %v4703_v23  ;;  %v4498_v6 = vld [vmem:[%s9851_s13 + $0x40] sm:$0xff]  ;;  %v4499_v23 = vld [vmem:[%s9851_s13 + $0x48] sm:$0xff]  ;;  %v9596_v28 = vpack.c.bf16 %v4517_v59, %v4516_v43  ;;  %v9598_v15 = vpack.c.bf16 %v4549_v41, %v4548_v29  ;;  %v7548_v54 = vld [vmem:[%s9853_s15 + $0x10] sm:$0xff]  }
 0xd0d   :  { %4705 = vmatpush1.msra.mxu1 %v4700_v25  ;;  %4776 = vmatpush1.msra.mxu0 %v4702_v27  ;;  %v9584_v42 = vpack.c.bf16 %v4499_v23, %v4498_v6  ;;  %v4500_v25 = vld [vmem:[%s9851_s13 + $0x50] sm:$0xff]  ;;  %v4501_v27 = vld [vmem:[%s9851_s13 + $0x58] sm:$0xff]  ;;  %v7286_v23 = vpack.c.bf16 %v4505_v33, %v4504_v51  ;;  %v7554_v51 = vld [vmem:[%s9853_s15 + $0x60] sm:$0xff]  }
 0xd0e   :  { %4768 = vmatprep.mubr.f32.mxu1 %v9906_v17  ;;  %4839 = vmatprep.mubr.f32.mxu0 %v9906_v17  ;;  %v9620_v52 = vpack.c.bf16 %v4501_v27, %v4500_v25  ;;  %v4537_v6 = vld [vmem:[%s9851_s13 + $0x178] sm:$0xff]  ;;  %v7549_v60 = vld [vmem:[%s9853_s15 + $0x90] sm:$0xff]   ;;  %v7557_v33 = vld [vmem:[%s9853_s15 + $0xa0] sm:$0xff]  }
 0xd0f   :  { %6031 = vmatmul.mubr.msk.f32.vlgmr.msra.gmra.mrb[56].mxu1 %vm753_vm1, %v9916_v57  ;;  %6032 = vmatmul.mubr.msk.f32.vlgmr.msra.gmra.mrb[52].mxu0 %vm753_vm1, %v9916_v57  ;;  %v9476_v57 = vpack.c.bf16 %v4493_v11, %v4492_v0  ;;  %v4533_v0 = vld [vmem:[%s9851_s13 + $0x158] sm:$0xff]  ;;  %v4518_v11 = vld [vmem:[%s9851_s13 + $0xe0] sm:$0xff]  ;;  %v7318_v35 = vpack.c.bf16 %v4537_v6, %v4536_v46  ;;  %v7558_v46 = vld [vmem:[%s9853_s15 + $0x68] sm:$0xff]  }
 0xd10   :  { %7257 = vmatprep.subr.bf16.mxu1 %v9430_v36  ;;  %7289 = vmatprep.subr.bf16.mxu0 %v9432_v14  ;;  %v9622_v55 = vpack.c.bf16 %v4533_v0, %v4532_v24  ;;  %v9632_v10 = vpack.c.bf16 %v4519_v19, %v4518_v11  ;;  %v7550_v61 = vld [vmem:[%s9853_s15 + $0x58] sm:$0xff]   ;;  %v7559_v6 = vld [vmem:[%s9853_s15 + $0xe8] sm:$0xff]  }
 0xd11   :  { %7259 = vmatpush3.bf16.msra.mxu1 %v9434_v5  ;;  %7291 = vmatpush3.bf16.msra.mxu0 %v9436_v20  ;;  %v7551_v16 = vld [vmem:[%s9853_s15 + $0xd8] sm:$0xff]  }
 0xd12   :  { %7261 = vmatprep.subr.bf16.mxu1 %v9446_v58  ;;  %7293 = vmatprep.subr.bf16.mxu0 %v9448_v12 }
 0xd15   :  { %7263 = vmatpush3.bf16.msra.mxu1 %v9476_v57  ;;  %7295 = vmatpush3.bf16.msra.mxu0 %v9478_v7 }
 0xd16   :  { %7265 = vmatprep.subr.bf16.mxu1 %v9488_v40  ;;  %7297 = vmatprep.subr.bf16.mxu0 %v9490_v45 }
 0xd19   :  { %7267 = vmatpush3.bf16.msra.mxu1 %v9512_v62  ;;  %7299 = vmatpush3.bf16.msra.mxu0 %v9514_v2 }
 0xd1a   :  { %7269 = vmatprep.subr.bf16.mxu1 %v9524_v13  ;;  %7301 = vmatprep.subr.bf16.mxu0 %v9526_v22 }
 0xd1d   :  { %7271 = vmatpush3.bf16.msra.mxu1 %v9548_v47  ;;  %7303 = vmatpush3.bf16.msra.mxu0 %v9550_v1 }
 0xd1e   :  { %7273 = vmatprep.subr.bf16.mxu1 %v9560_v30  ;;  %7305 = vmatprep.subr.bf16.mxu0 %v9562_v31 }
 0xd21   :  { %7275 = vmatpush3.bf16.msra.mxu1 %v9584_v42  ;;  %7307 = vmatpush3.bf16.msra.mxu0 %v9586_v63 }
 0xd22   :  { %7277 = vmatprep.subr.bf16.mxu1 %v9596_v28  ;;  %7309 = vmatprep.subr.bf16.mxu0 %v9598_v15 }
 0xd25   :  { %7279 = vmatpush3.bf16.msra.mxu1 %v9620_v52  ;;  %7311 = vmatpush3.bf16.msra.mxu0 %v9622_v55 }
 0xd26   :  { %7281 = vmatprep.subr.bf16.mxu1 %v9632_v10  ;;  %7313 = vmatprep.subr.bf16.mxu0 %v9634_v48 }
 0xd29   :  { %7283 = vmatpush3.bf16.msra.mxu1 %v7282_v8  ;;  %7315 = vmatpush3.bf16.msra.mxu0 %v7314_v26 }
 0xd2a   :  { %7285 = vmatprep.subr.bf16.mxu1 %v7284_v56  ;;  %7317 = vmatprep.subr.bf16.mxu0 %v7316_v32 }
 0xd2d   :  { %7287 = vmatpush3.bf16.msra.mxu1 %v7286_v23  ;;  %7319 = vmatpush3.bf16.msra.mxu0 %v7318_v35 }
 0xd2e   :  { %7321 = vmatprep.subr.bf16.mxu1 %v9430_v36  ;;  %7353 = vmatprep.subr.bf16.mxu0 %v9432_v14 }
 0xdde   :  { %v4624_v39 = vpop.f32.mrb[50].mxu1  ;;  %v4695_v43 = vpop.f32.mrb[46].mxu0 }
 0xddf   :  { %v4626_v59 = vpop.f32.mrb[51].mxu1  ;;  %v4697_v29 = vpop.f32.mrb[47].mxu0 }
 0xde0   :  { %4910 = vmatprep.mubr.f32.mxu1 %v4626_v59  ;;  %4980 = vmatprep.mubr.f32.mxu0 %v4697_v29  ;;  %v7564_v59 = vld [vmem:[%s9853_s15 + $0x30] sm:$0xff]  }
 0xde1   :  { %4911 = vmatmul.mubr.f32.vlgmr.msra.gmra.mrb[58].mxu1 %v4624_v39  ;;  %4981 = vmatmul.mubr.f32.vlgmr.msra.gmra.mrb[54].mxu0 %v4695_v43  ;;  %v7562_v39 = vld [vmem:[%s9853_s15 + $0x70] sm:$0xff]  }
 0xde2   :  { %7323 = vmatpush3.bf16.msra.mxu1 %v9434_v5  ;;  %7355 = vmatpush3.bf16.msra.mxu0 %v9436_v20  ;;  %v4770_v41 = vpop.f32.mrb[56].mxu1  ;;  %v4841_v25 = vpop.f32.mrb[52].mxu0  ;;  %v4555_v5 = vld [vmem:[%s9852_s14 + $0x8] sm:$0xff]  ;;  %v4557_v20 = vld [vmem:[%s9852_s14 + $0x18] sm:$0xff]  ;;  %v7563_v43 = vld [vmem:[%s9853_s15 + $0xf0] sm:$0xff]  }
 0xde3   :  { %7325 = vmatprep.subr.bf16.mxu1 %v9446_v58  ;;  %7357 = vmatprep.subr.bf16.mxu0 %v9448_v12  ;;  %v4772_v36 = vpop.f32.mrb[57].mxu1  ;;  %v4843_v14 = vpop.f32.mrb[53].mxu0  ;;  %v4554_v58 = vld [vmem:[%s9852_s14] sm:$0xff]  ;;  %v4556_v12 = vld [vmem:[%s9852_s14 + $0x10] sm:$0xff] }
 0xde4   :  { %5050 = vmatprep.mubr.f32.mxu1 %v4772_v36  ;;  %5120 = vmatprep.mubr.f32.mxu0 %v4843_v14  ;;  %v7565_v29 = vld [vmem:[%s9853_s15 + $0xb0] sm:$0xff]   ;;  %v7568_v36 = vld [vmem:[%s9853_s15 + $0x38] sm:$0xff]  }
 0xde5   :  { %v7569_v14 = vld [vmem:[%s9853_s15 + $0xb8] sm:$0xff]  }
 0xde6   :  { %7327 = vmatpush3.bf16.msra.mxu1 %v9476_v57  ;;  %7359 = vmatpush3.bf16.msra.mxu0 %v9478_v7 }
 0xde7   :  { %7329 = vmatprep.subr.bf16.mxu1 %v9488_v40  ;;  %7361 = vmatprep.subr.bf16.mxu0 %v9490_v45 }
 0xdea   :  { %7331 = vmatpush3.bf16.msra.mxu1 %v9512_v62  ;;  %7363 = vmatpush3.bf16.msra.mxu0 %v9514_v2 }
 0xdeb   :  { %7333 = vmatprep.subr.bf16.mxu1 %v9524_v13  ;;  %7365 = vmatprep.subr.bf16.mxu0 %v9526_v22 }
 0xdee   :  { %7335 = vmatpush3.bf16.msra.mxu1 %v9548_v47  ;;  %7367 = vmatpush3.bf16.msra.mxu0 %v9550_v1 }
 0xdef   :  { %7337 = vmatprep.subr.bf16.mxu1 %v9560_v30  ;;  %7369 = vmatprep.subr.bf16.mxu0 %v9562_v31 }
 0xdf2   :  { %7339 = vmatpush3.bf16.msra.mxu1 %v9584_v42  ;;  %7371 = vmatpush3.bf16.msra.mxu0 %v9586_v63 }
 0xdf3   :  { %7341 = vmatprep.subr.bf16.mxu1 %v9596_v28  ;;  %7373 = vmatprep.subr.bf16.mxu0 %v9598_v15 }
 0xdf6   :  { %7343 = vmatpush3.bf16.msra.mxu1 %v9620_v52  ;;  %7375 = vmatpush3.bf16.msra.mxu0 %v9622_v55  ;;  %v7539_v52 = vld [vmem:[%s9853_s15 + $0xc0] sm:$0xff]  }
 0xdf7   :  { %7345 = vmatprep.subr.bf16.mxu1 %v9632_v10  ;;  %7377 = vmatprep.subr.bf16.mxu0 %v9634_v48  ;;  %v7543_v10 = vld [vmem:[%s9853_s15 + $0xc8] sm:$0xff]  }
 0xdf8   :  { %v7545_v48 = vld [vmem:[%s9853_s15 + $0x88] sm:$0xff]  }
 0xdfa   :  { %7347 = vmatpush3.bf16.msra.mxu1 %v7282_v8  ;;  %7379 = vmatpush3.bf16.msra.mxu0 %v7314_v26  ;;  %v7552_v8 = vld [vmem:[%s9853_s15 + $0x18] sm:$0xff]  }
 0xdfb   :  { %7349 = vmatprep.subr.bf16.mxu1 %v7284_v56  ;;  %7381 = vmatprep.subr.bf16.mxu0 %v7316_v32  ;;  %v7553_v26 = vld [vmem:[%s9853_s15 + $0x98] sm:$0xff]   ;;  %v7555_v56 = vld [vmem:[%s9853_s15 + $0xe0] sm:$0xff]  }
 0xdfc   :  { %v7556_v32 = vld [vmem:[%s9853_s15 + $0x20] sm:$0xff]  }
 0xdfe   :  { %7351 = vmatpush3.bf16.msra.mxu1 %v7286_v23  ;;  %7383 = vmatpush3.bf16.msra.mxu0 %v7318_v35  ;;  %v7560_v23 = vld [vmem:[%s9853_s15 + $0x28] sm:$0xff]  }
 0xdff   :  { %5136 = vmatprep.subr.mxu1 %v4555_v5  ;;  %5207 = vmatprep.subr.mxu0 %v4557_v20  ;;  %v7561_v35 = vld [vmem:[%s9853_s15 + $0xa8] sm:$0xff]  }
 0xe01   :  { %5051 = vmatmul.mubr.f32.vlgmr.msra.gmra.mrb[60].mxu1 %v4770_v41  ;;  %5121 = vmatmul.mubr.f32.vlgmr.msra.gmra.mrb[56].mxu0 %v4841_v25  ;;  %v7566_v41 = vld [vmem:[%s9853_s15 + $0x78] sm:$0xff]  }
 0xe02   :  { %5200 = vmatprep.mubr.f32.mxu1 %v9906_v17  ;;  %5271 = vmatprep.mubr.f32.mxu0 %v9906_v17  ;;  %v7567_v25 = vld [vmem:[%s9853_s15 + $0xf8] sm:$0xff]  }
 0xe03   :  { %5137 = vmatpush1.msra.mxu1 %v4554_v58  ;;  %5208 = vmatpush1.msra.mxu0 %v4556_v12 }
 0xe04   :  { %5283 = vmatprep.subr.mxu1 %v4555_v5  ;;  %5354 = vmatprep.subr.mxu0 %v4557_v20 }
 0xeb4   :  { %v6528_v57 = vpop.f32.mrb[58].mxu1  ;;  %v6563_v7 = vpop.f32.mrb[54].mxu0 }
 0xeb5   :  { %v6529_v40 = vpop.f32.mrb[59].mxu1  ;;  %v6564_v45 = vpop.f32.mrb[55].mxu0 }
 0xeb6   :  { %v6530_v62 = vadd.f32 %v6529_v40, %v6528_v57  ;;  %v6565_v2 = vadd.f32 %v6564_v45, %v6563_v7 }
 0xeb8   :  { %v4983_v13 = vadd.f32 %v6565_v2, %v6530_v62 }
 0xeba   :  { %v5126_v31 = vmul.f32 %v9041_v3, %v4983_v13 }
 0xebc   :  { %v5128_v28 = vmul.f32 %v5126_v31, %v5126_v31  ;;  %v5278_v19 = vsub.f32 0.0, %v5126_v31 }
 0xed4   :  { %v6598_v22 = vpop.f32.mrb[60].mxu1  ;;  %v6633_v47 = vpop.f32.mrb[56].mxu0 }
 0xed5   :  { %v6599_v1 = vpop.f32.mrb[61].mxu1  ;;  %v6634_v30 = vpop.f32.mrb[57].mxu0 }
 0xed6   :  { %v6600_v42 = vadd.f32 %v6599_v1, %v6598_v22  ;;  %v6635_v63 = vadd.f32 %v6634_v30, %v6633_v47 }
 0xed8   :  { %v5123_v27 = vadd.f32 %v6635_v63, %v6600_v42 }
 0xeda   :  { %v5127_v15 = vmul.f32 %v9041_v3, %v5123_v27  ;;  %v7540_v3 = vld [vmem:[%s9853_s15] sm:$0xff]  }
 0xedc   :  { %v5129_v24 = vsub.f32 %v5127_v15, %v5128_v28 }
 0xede   :  { %v5130_v0 = vmax.f32 %v5129_v24, 0.0 }
 0xee0   :  { %v5131_v11 = vadd.f32 0.0001, %v5130_v0 }
 0xee2   :  { %7582 = vrsqrt.f32 %v5131_v11 }
 0xeec   :  { %v7583_v4 = vpop.eup %7582 }
 0xeed   :  { %6033 = vmatmul.mubr.msk.f32.vlgmr.msra.gmra.mrb[62].mxu1 %vm753_vm1, %v7583_v4  ;;  %6034 = vmatmul.mubr.msk.f32.vlgmr.msra.gmra.mrb[58].mxu0 %vm753_vm1, %v7583_v4  ;;  %v5279_v55 = vmul.f32 %v7583_v4, %v5278_v19 }
 0xeee   :  { %5284 = vmatpush1.msra.mxu1 %v4554_v58  ;;  %5347 = vmatprep.mubr.f32.mxu1 %v9906_v17 }
 0xeef   :  { %5355 = vmatpush1.msra.mxu0 %v4556_v12  ;;  %5418 = vmatprep.mubr.f32.mxu0 %v9906_v17  ;;  %v7544_v17 = vld [vmem:[%s9853_s15 + $0x8] sm:$0xff]   ;;  %s7616_s15 = smov [#allocation4]  }
 0xef0   :  { %6636 = vmatprep.subr.bf16.mxu1 %v7538_v37  ;;  %6658 = vmatprep.subr.bf16.mxu0 %v7539_v52  ;;  %s5830_s1 = sshll.u32 %s7616_s15, 4  ;;  %s5831_s1 = int_to_ptr.vmem [resolvable:$true] %s5830_s1 }
 0xef1   :  { %6035 = vmatmul.mubr.msk.f32.vlgmr.msra.gmra.mrb[64].mxu1 %vm753_vm1, %v5279_v55  ;;  %6036 = vmatmul.mubr.msk.f32.vlgmr.msra.gmra.mrb[60].mxu0 %vm753_vm1, %v5279_v55  ;;  %s7588_s9 = scalar_lea.vmem %s5831_s1, 128  ;;  %p7593_p2 = scmp.lt.s32.totalorder %s5831_s1, %s5831_s1 }
 0xef2   :  { %6637 = vmatpush3.bf16.msra.mxu1 %v7540_v3  ;;  %6659 = vmatpush3.bf16.msra.mxu0 %v7541_v18  ;;  %p7589_p1 = scmp.ne.s32.totalorder %s5831_s1, %s7588_s9  ;;  %p7594_p3 = scmp.lt.s32.totalorder %s7588_s9, %s7588_s9 }
 0xef3   :  { %6638 = vmatprep.subr.bf16.mxu1 %v7542_v21  ;;  %6660 = vmatprep.subr.bf16.mxu0 %v7543_v10 }
 0xef4   :  { %p7595_p4 = por %p7594_p3, %p7593_p2 }
 0xef6   :  { %6639 = vmatpush3.bf16.msra.mxu1 %v7544_v17  ;;  %6661 = vmatpush3.bf16.msra.mxu0 %v7545_v48  ;;  %p7596_p5 = pnand %p7595_p4, %p7589_p1 }
 0xef7   :  { %6640 = vmatprep.subr.bf16.mxu1 %v7546_v49  ;;  %6662 = vmatprep.subr.bf16.mxu0 %v7547_v50 }
 0xefa   :  { %6641 = vmatpush3.bf16.msra.mxu1 %v7548_v54  ;;  %6663 = vmatpush3.bf16.msra.mxu0 %v7549_v60 }
 0xefb   :  { %6642 = vmatprep.subr.bf16.mxu1 %v7550_v61  ;;  %6664 = vmatprep.subr.bf16.mxu0 %v7551_v16 }
 0xefe   :  { %6643 = vmatpush3.bf16.msra.mxu1 %v7552_v8  ;;  %6665 = vmatpush3.bf16.msra.mxu0 %v7553_v26 }
 0xeff   :  { %6644 = vmatprep.subr.bf16.mxu1 %v7554_v51  ;;  %6666 = vmatprep.subr.bf16.mxu0 %v7555_v56 }
 0xf02   :  { %6645 = vmatpush3.bf16.msra.mxu1 %v7556_v32  ;;  %6667 = vmatpush3.bf16.msra.mxu0 %v7557_v33 }
 0xf03   :  { %6646 = vmatprep.subr.bf16.mxu1 %v7558_v46  ;;  %6668 = vmatprep.subr.bf16.mxu0 %v7559_v6 }
 0xf06   :  { %6647 = vmatpush3.bf16.msra.mxu1 %v7560_v23  ;;  %6669 = vmatpush3.bf16.msra.mxu0 %v7561_v35 }
 0xf07   :  { %6648 = vmatprep.subr.bf16.mxu1 %v7562_v39  ;;  %6670 = vmatprep.subr.bf16.mxu0 %v7563_v43 }
 0xf0a   :  { %6649 = vmatpush3.bf16.msra.mxu1 %v7564_v59  ;;  %6671 = vmatpush3.bf16.msra.mxu0 %v7565_v29 }
 0xf0b   :  { %6650 = vmatprep.subr.bf16.mxu1 %v7566_v41  ;;  %6672 = vmatprep.subr.bf16.mxu0 %v7567_v25 }
 0xf0e   :  { %6651 = vmatpush3.bf16.msra.mxu1 %v7568_v36  ;;  %6673 = vmatpush3.bf16.msra.mxu0 %v7569_v14 }
 0xfc0   :  { %v5202_v5 = vpop.f32.mrb[62].mxu1  ;;  %v5273_v20 = vpop.f32.mrb[58].mxu0 }
 0xfc1   :  { %v5428_v58 = vrot.slane %v5202_v5, %v8792_v44  ;;  %v5436_v12 = vrot.slane %v5273_v20, %v8792_v44  ;;  %v5204_v57 = vpop.f32.mrb[63].mxu1  ;;  %v5275_v7 = vpop.f32.mrb[59].mxu0 }
 0xfc2   :  { %v5432_v40 = vrot.slane %v5204_v57, %v8792_v44  ;;  %v5440_v45 = vrot.slane %v5275_v7, %v8792_v44 }
 0xfc3   :  { %v5441_v62 = vmul.f32 %v5428_v58, %v9370_v34  ;;  %v5443_v2 = vmul.f32 %v5436_v12, %v9372_v53 }
 0xfc4   :  { %v5442_v13 = vmul.f32 %v5432_v40, %v9374_v9  ;;  %v5444_v22 = vmul.f32 %v5440_v45, %v9376_v38  ;;  %v5349_v47 = vpop.f32.mrb[64].mxu1  ;;  %v5420_v1 = vpop.f32.mrb[60].mxu0 }
 0xfc5   :  { %v5448_v30 = vrot.slane %v5349_v47, %v8792_v44  ;;  %v5456_v31 = vrot.slane %v5420_v1, %v8792_v44  ;;  %v5351_v42 = vpop.f32.mrb[65].mxu1  ;;  %v5422_v63 = vpop.f32.mrb[61].mxu0 }
 0xfc6   :  { %v5452_v27 = vrot.slane %v5351_v42, %v8792_v44  ;;  %v5460_v28 = vrot.slane %v5422_v63, %v8792_v44 }
 0xfc7   :  { %v5461_v15 = vadd.f32 %v5448_v30, %v5441_v62  ;;  %v5463_v34 = vadd.f32 %v5456_v31, %v5443_v2 }
 0xfc8   :  { %v5462_v24 = vadd.f32 %v5452_v27, %v5442_v13  ;;  %v5464_v53 = vadd.f32 %v5460_v28, %v5444_v22 }
 0xfc9   :  { %vm5465_vm1 = vcmp.ge.f32.partialorder %v5461_v15, 0.0  ;;  %v5469_v9 = vmul.f32 0.01, %v5461_v15  ;;  %vm5467_vm2 = vcmp.ge.f32.partialorder %v5463_v34, 0.0  ;;  %v5471_v38 = vmul.f32 0.01, %v5463_v34 }
 0xfca   :  { %v5470_v0 = vmul.f32 0.01, %v5462_v24  ;;  %v5472_v11 = vmul.f32 0.01, %v5464_v53  ;;  %vm5466_vm3 = vcmp.ge.f32.partialorder %v5462_v24, 0.0  ;;  %vm5468_vm4 = vcmp.ge.f32.partialorder %v5464_v53, 0.0 }
 0xfcb   :  { %v5473_v19 = vsel %vm5465_vm1, %v5461_v15, %v5469_v9  ;;  %v5475_v4 = vsel %vm5467_vm2, %v5463_v34, %v5471_v38 }
 0xfcc   :  { %v5474_v37 = vsel %vm5466_vm3, %v5462_v24, %v5470_v0  ;;  %v5476_v52 = vsel %vm5468_vm4, %v5464_v53, %v5472_v11  ;;  %v5477_v18 = vpack.c.bf16 %v5473_v19, %v5473_v19  ;;  %v5479_v44 = vpack.c.bf16 %v5475_v4, %v5475_v4 }
 0xfcd   :  { %v5478_v55 = vpack.c.bf16 %v5474_v37, %v5474_v37  ;;  %v5480_v3 = vpack.c.bf16 %v5476_v52, %v5476_v52 }
 0xfcf   :  { %5769 = vmatprep.mubr.bf16.mxu1 %v5478_v55  ;;  %5809 = vmatprep.mubr.bf16.mxu0 %v5480_v3 }
 0xfd0   :  { %5770 = vmatmul.mubr.bf16.vlgmr.msra.gmra.mrb[68].mxu1 %v5477_v18  ;;  %5810 = vmatmul.mubr.bf16.vlgmr.msra.gmra.mrb[64].mxu0 %v5479_v44 }
0x10a3   :  { %v6652_v21 = vpop.f32.mrb[68].mxu1  ;;  %v6674_v10 = vpop.f32.mrb[64].mxu0 }
0x10a4   :  { %v6653_v17 = vpop.f32.mrb[69].mxu1  ;;  %v6675_v48 = vpop.f32.mrb[65].mxu0 }
0x10a5   :  { %v6654_v49 = vadd.f32 %v6653_v17, %v6652_v21  ;;  %v6676_v50 = vadd.f32 %v6675_v48, %v6674_v10  ;;  %v6655_v54 = vpop.f32.mrb[70].mxu1  ;;  %v6677_v60 = vpop.f32.mrb[66].mxu0 }
0x10a6   :  { %v6656_v61 = vpop.f32.mrb[71].mxu1  ;;  %v6678_v16 = vpop.f32.mrb[67].mxu0 }
0x10a7   :  { %v5812_v8 = vadd.f32 %v6676_v50, %v6654_v49 }
0x10a9   :  { %v6069_v26 = vmul.f32 -1.442695, %v5812_v8 }
0x10ab   :  { %7584 = vpow2.f32 %v6069_v26 }
0x10b5   :  { %v7585_v51 = vpop.eup %7584 }
0x10b6   :  { %v5820_v56 = vadd.f32 1.0, %v7585_v51 }
0x10b8   :  { %7586 = vrcp.f32 %v5820_v56 }
0x10c2   :  { %v7587_v32 = vpop.eup %7586 }
0x10c3   :  { %5823 = vst [vmem:[#allocation4] sm:$0xff] %v7587_v32 }
0x10c4   :  { %7599 = shalt.err (!%p7596_p5)
}
0x10c5   :  { %s7600_s28 = scalar_lea.hbm %s9854_s16, 128 }
0x10c6   :  { %p7601_p6 = scmp.ne.s32.totalorder %s9854_s16, %s7600_s28  ;;  %p7604_p7 = scmp.lt.u32.totalorder %s7600_s28, %s9854_s16 }
0x10c8   :  { %p7606_p8 = pnand %p7604_p7, %p7601_p6 }
0x10ca   :  { %7609 = shalt.err (!%p7606_p8)
}
0x10cb   :  { %5833 = dma.vmem_to_hbm [thread:$0]  %s5831_s1, 128, %s9854_s16, [#allocation5]  }
0x10cc   :  { %7610 = dma.done.wait [#allocation5], 128  }
0x10cd   :  { %7611 = vsyncadd [#allocation5], 4294967168 }
0x10ce   :  { %5837 = vsyncpa [#allocation5], 1 }

</bundles_post_ra>
